<compile_context>
chip_gen: v6e
topology: v6e:2x2x1
jax: 0.10.0
libtpu: 0.0.40
codegen_flags: <defaults>
</compile_context>

<pallas_src>
import jax
import jax.numpy as jnp
from jax import lax
from jax.experimental import pallas as pl
from jax.experimental.pallas import tpu as pltpu
import numpy as np

EPS = 1e-5
LANES = 128


# --------------------------------------------------------------------------
# helpers
# --------------------------------------------------------------------------
def _round_up(x, m):
    return (x + m - 1) // m * m


def _tpu_vmem_capacity():
    """Physical VMEM bytes; conservative fallback (v7x = 64 MiB)."""
    try:
        info = pltpu.get_tpu_info()
        cap = getattr(info, "vmem_capacity_bytes", None)
        if cap:
            return int(cap)
    except Exception:
        pass
    return 64 * 1024 * 1024


def _is_v5x():
    """True on v5-generation parts (128-wide MXU -> skip K-concat in head)."""
    try:
        return "v5" in jax.devices()[0].device_kind.lower()
    except Exception:
        return False


def _pick_row_tile(nhw, max_tile=1024, min_steps=4):
    """Row tile (multiple of 8) targeting >= min_steps grid steps (even count
    for balanced v7x megacore sharding).  The grid uses pl.cdiv, so nhw does
    NOT need to be an exact multiple (the last block may be partial)."""
    steps = max(min_steps, pl.cdiv(nhw, max_tile))
    if steps % 2:
        steps += 1
    tile = _round_up(pl.cdiv(nhw, steps), 8)
    return max(8, min(tile, _round_up(nhw, 8)))


def _bn1_scale_shift(x_nhwc, gamma, beta, c_pad):
    """BN1 folded to (scale, shift).  Stats come from the external input, so
    they stay a (single, unavoidable) XLA reduction over x."""
    xf = x_nhwc.astype(jnp.float32)
    mean = jnp.mean(xf, axis=(0, 1, 2))
    var = jnp.mean(jnp.square(xf - mean), axis=(0, 1, 2))
    c = gamma.shape[0]
    mean = jnp.pad(mean, (0, c_pad - c))
    var = jnp.pad(var, (0, c_pad - c))
    g = jnp.pad(gamma.astype(jnp.float32), (0, c_pad - c))
    b = jnp.pad(beta.astype(jnp.float32), (0, c_pad - c))
    s = g * lax.rsqrt(var + EPS)
    t = b - mean * s
    return s.reshape(1, c_pad), t.reshape(1, c_pad)


def _bn_scale_shift_from_stats(stats, count, gamma, beta, c_pad):
    """Finish BN scale/shift from fused per-tile partials.

    stats: (tiles, 8, c_pad) f32; row 0 = sum, row 1 = sum of squares.
    count: real element count (N*H*W) per channel."""
    tot = jnp.sum(stats, axis=0)                       # (8, c_pad)
    mean = tot[0] / count
    var = jnp.maximum(tot[1] / count - mean * mean, 0.0)
    c = gamma.shape[0]
    g = jnp.pad(gamma.astype(jnp.float32), (0, c_pad - c))
    b = jnp.pad(beta.astype(jnp.float32), (0, c_pad - c))
    s = g * lax.rsqrt(var + EPS)
    t = b - mean * s
    return s.reshape(1, c_pad), t.reshape(1, c_pad)


def _pad2(w, rows, cols):
    return jnp.pad(w, ((0, rows - w.shape[0]), (0, cols - w.shape[1])))


def _vec(v, c):
    return jnp.pad(v.astype(jnp.float32), (0, c - v.shape[0])).reshape(1, c)


def _pack_stats(ps, pss, c):
    """Build an (8, c) stats block: row0=sum, row1=sumsq, rest zero (pure VPU
    broadcasts/selects; no sublane concat)."""
    srow = lax.broadcasted_iota(jnp.int32, (8, 1), 0)
    return jnp.where(srow == 0, ps, jnp.where(srow == 1, pss, 0.0))


# --------------------------------------------------------------------------
# kernels
# --------------------------------------------------------------------------
def _make_conv1_kernel(nhw, tr, need_mask):
    """o = relu(x*s+t) @ w + b  (1x1 conv), plus fused BN2 partial stats."""
    def kernel(x_ref, s_ref, t_ref, w_ref, b_ref, o_ref, stat_ref):
        c = w_ref.shape[1]
        h = jnp.maximum(x_ref[...].astype(jnp.float32) * s_ref[...] + t_ref[...], 0.0)
        a = (jnp.dot(h.astype(w_ref.dtype), w_ref[...],
                     preferred_element_type=jnp.float32) + b_ref[...])
        if need_mask:   # partial edge tile: keep padded rows out of the stats
            row = pl.program_id(0) * tr + lax.broadcasted_iota(jnp.int32, (tr, 1), 0)
            am = jnp.where(row < nhw, a, 0.0)
        else:
            am = a
        ps = jnp.sum(am, axis=0, keepdims=True)          # (1, c)
        pss = jnp.sum(am * am, axis=0, keepdims=True)
        stat_ref[0] = _pack_stats(ps, pss, c)
        o_ref[...] = a.astype(o_ref.dtype)
    return kernel


def _make_conv2_kernel(H, W):
    """Per image: h = relu(a1*s+t); o = conv3x3(h)+b; plus fused BN3 stats.

    ky shifts: slices of an (H+2, W, C) scratch whose two halo rows only are
    zeroed.  kx shifts: pltpu.roll along W (XLU) + hoisted border masks.  The
    3 kx taps of each ky accumulate in a live value -> 3 accumulator RMWs."""
    def kernel(a1_ref, s_ref, t_ref, w_ref, b_ref, o_ref, stat_ref,
               hpad_ref, acc_ref):
        C = a1_ref.shape[-1]
        cdt = hpad_ref.dtype
        s = s_ref[...].reshape(1, 1, C)
        t = t_ref[...].reshape(1, 1, C)
        h = jnp.maximum(a1_ref[0].astype(jnp.float32) * s + t, 0.0)

        # Halo rows re-zeroed every step on purpose (per-core scratch under
        # "parallel" megacore sharding; a program_id==0 gate would be unsafe).
        hpad_ref[0] = jnp.zeros((W, C), cdt)
        hpad_ref[H + 1] = jnp.zeros((W, C), cdt)
        hpad_ref[pl.ds(1, H)] = h.astype(cdt)

        # Hoisted kx = -1 / +1 border masks (reused by all 3 ky taps).
        col = lax.broadcasted_iota(jnp.int32, (1, W, 1), 1)
        valid_m = col >= 1           # left neighbour exists  (dx = -1)
        valid_p = col < (W - 1)      # right neighbour exists (dx = +1)

        for ky in range(3):
            slab = hpad_ref[pl.ds(ky, H)]                       # (H, W, C)
            sh_m = jnp.where(valid_m, pltpu.roll(slab, shift=1, axis=1), 0.0)
            sh_p = jnp.where(valid_p, pltpu.roll(slab, shift=W - 1, axis=1), 0.0)
            ky_acc = jnp.dot(sh_m.reshape(H * W, C), w_ref[ky * 3 + 0],
                             preferred_element_type=jnp.float32)
            ky_acc = ky_acc + jnp.dot(slab.reshape(H * W, C), w_ref[ky * 3 + 1],
                                      preferred_element_type=jnp.float32)
            ky_acc = ky_acc + jnp.dot(sh_p.reshape(H * W, C), w_ref[ky * 3 + 2],
                                      preferred_element_type=jnp.float32)
            if ky == 0:
                acc_ref[...] = ky_acc        # first ky: plain assignment
            else:
                acc_ref[...] += ky_acc       # 3 accumulator RMWs total

        out = acc_ref[...] + b_ref[...]      # (H*W, C) f32
        ps = jnp.sum(out, axis=0, keepdims=True)
        pss = jnp.sum(out * out, axis=0, keepdims=True)
        stat_ref[0] = _pack_stats(ps, pss, C)
        o_ref[0] = out.reshape(H, W, C).astype(o_ref.dtype)
    return kernel


def _head_kernel_fused(a2_ref, x_ref, s_ref, t_ref, w_ref, b_ref, o_ref, hx_ref):
    """o = [relu(a2*s+t) | x] @ [w3;w4] + b : conv3 + residual conv4 as one
    K=(Cmid+Cin) matmul (better K-fill on the 256-wide v6e/v7x MXUs)."""
    cm = a2_ref.shape[-1]
    ci = x_ref.shape[-1]
    h = jnp.maximum(a2_ref[...].astype(jnp.float32) * s_ref[...] + t_ref[...], 0.0)
    hx_ref[:, 0:cm] = h.astype(hx_ref.dtype)
    hx_ref[:, cm:cm + ci] = x_ref[...].astype(hx_ref.dtype)
    o_ref[...] = (jnp.dot(hx_ref[...], w_ref[...],
                          preferred_element_type=jnp.float32) + b_ref[...])


def _head_kernel_split(a2_ref, x_ref, s_ref, t_ref, w3_ref, w4_ref, b_ref, o_ref):
    """v5e variant (128-wide MXU): two dots; residual first so x dies early."""
    res = jnp.dot(x_ref[...].astype(w4_ref.dtype), w4_ref[...],
                  preferred_element_type=jnp.float32)
    h = jnp.maximum(a2_ref[...].astype(jnp.float32) * s_ref[...] + t_ref[...], 0.0)
    o_ref[...] = (jnp.dot(h.astype(w3_ref.dtype), w3_ref[...],
                          preferred_element_type=jnp.float32) + res + b_ref[...])


# --------------------------------------------------------------------------
# wrapper
# --------------------------------------------------------------------------
def residual_block_pallas(x_nchw, params, *, matmul_dtype=jnp.float32):
    """x_nchw: (N, Cin, H, W) f32.  Returns (N, Cout, H, W) f32.

    matmul_dtype=bf16 is the MXU fast path on ALL generations (v5e included);
    BN/ReLU math stays f32 in-kernel, and with bf16 the inter-stage
    activations (x2d, a1, a2) are also stored bf16 in HBM."""
    N, Cin, H, W = x_nchw.shape
    Cmid = params["w1"].shape[0]          # PyTorch conv weight layout (O, I, kh, kw)
    Cout = params["w3"].shape[0]
    Cinp, Cmidp, Coutp = (_round_up(c, LANES) for c in (Cin, Cmid, Cout))
    NHW = N * H * W
    mm = matmul_dtype

    vmem_cap = _tpu_vmem_capacity()
    vmem_limit = min(vmem_cap * 3 // 4, 100 * 1024 * 1024)
    max_tile = 2048 if vmem_cap >= (128 << 20) else 1024
    fuse_k = not _is_v5x()

    # TODO(synk): accept/return NHWC at the model level to drop this transpose
    # + channel pad (one extra HBM pass each way around a memory-bound block).
    x_nhwc = jnp.transpose(x_nchw, (0, 2, 3, 1)).astype(jnp.float32)
    s1, t1 = _bn1_scale_shift(x_nhwc, params["g1"], params["b1"], Cinp)
    x2d = (jnp.pad(x_nhwc, ((0, 0), (0, 0), (0, 0), (0, Cinp - Cin)))
           .reshape(NHW, Cinp).astype(mm))

    # Conv weights: (O, I, 1, 1) -> (I, O) ; (O, I, 3, 3) -> (9, I, O); padded.
    w1 = _pad2(jnp.transpose(params["w1"][:, :, 0, 0], (1, 0)), Cinp, Cmidp).astype(mm)
    w3 = _pad2(jnp.transpose(params["w3"][:, :, 0, 0], (1, 0)), Cmidp, Coutp).astype(mm)
    w4 = _pad2(jnp.transpose(params["w4"][:, :, 0, 0], (1, 0)), Cinp, Coutp).astype(mm)
    w2 = jnp.transpose(params["w2"], (2, 3, 1, 0))                  # (3,3,I,O)
    w2 = jnp.pad(w2, ((0, 0), (0, 0), (0, Cmidp - Cmid), (0, Cmidp - Cmid)))
    w2 = w2.reshape(9, Cmidp, Cmidp).astype(mm)

    b1 = _vec(params["c1b"], Cmidp)
    b2 = _vec(params["c2b"], Cmidp)
    b34 = _vec(params["c3b"], Coutp) + _vec(params["c4b"], Coutp)

    cparams = pltpu.CompilerParams(dimension_semantics=("parallel",),
                                   vmem_limit_bytes=vmem_limit)
    tr = _pick_row_tile(NHW, max_tile=max_tile)
    steps = pl.cdiv(NHW, tr)
    need_mask = (NHW % tr) != 0
    grid_rows = (steps,)
    row_spec = lambda c: pl.BlockSpec((tr, c), lambda i: (i, 0))
    vec_spec = lambda c: pl.BlockSpec((1, c), lambda i: (0, 0))
    mat_spec = lambda r, c: pl.BlockSpec((r, c), lambda i: (0, 0))
    stat_spec = pl.BlockSpec((1, 8, Cmidp), lambda i: (i, 0, 0))

    # ---- bn1 -> relu -> conv1 (1x1), row-tiled; emits BN2 partial stats -----
    a1, st2 = pl.pallas_call(
        _make_conv1_kernel(NHW, tr, need_mask),
        out_shape=(jax.ShapeDtypeStruct((NHW, Cmidp), mm),
                   jax.ShapeDtypeStruct((steps, 8, Cmidp), jnp.float32)),
        grid=grid_rows,
        in_specs=[row_spec(Cinp), vec_spec(Cinp), vec_spec(Cinp),
                  mat_spec(Cinp, Cmidp), vec_spec(Cmidp)],
        out_specs=(row_spec(Cmidp), stat_spec),
        compiler_params=cparams,
    )(x2d, s1, t1, w1, b1)
    s2, t2 = _bn_scale_shift_from_stats(st2, NHW, params["g2"], params["b2"], Cmidp)

    # ---- bn2 -> relu -> conv2 (3x3, pad 1), per image; emits BN3 stats ------
    # TODO(synk): for large H, tile over H with a 1-row halo (grid=(N, H//th))
    # to bound VMEM residency on v7x (64 MiB) and get >=4 steps per core.
    a2, st3 = pl.pallas_call(
        _make_conv2_kernel(H, W),
        out_shape=(jax.ShapeDtypeStruct((N, H, W, Cmidp), mm),
                   jax.ShapeDtypeStruct((N, 8, Cmidp), jnp.float32)),
        grid=(N,),
        in_specs=[pl.BlockSpec((1, H, W, Cmidp), lambda n: (n, 0, 0, 0)),
                  pl.BlockSpec((1, Cmidp), lambda n: (0, 0)),
                  pl.BlockSpec((1, Cmidp), lambda n: (0, 0)),
                  pl.BlockSpec((9, Cmidp, Cmidp), lambda n: (0, 0, 0)),
                  pl.BlockSpec((1, Cmidp), lambda n: (0, 0))],
        out_specs=(pl.BlockSpec((1, H, W, Cmidp), lambda n: (n, 0, 0, 0)),
                   pl.BlockSpec((1, 8, Cmidp), lambda n: (n, 0, 0))),
        scratch_shapes=[pltpu.VMEM((H + 2, W, Cmidp), mm),
                        pltpu.VMEM((H * W, Cmidp), jnp.float32)],
        compiler_params=cparams,
    )(a1.reshape(N, H, W, Cmidp), s2, t2, w2, b2)
    s3, t3 = _bn_scale_shift_from_stats(st3, NHW, params["g3"], params["b3"], Cmidp)

    # ---- bn3 -> relu -> conv3 (1x1) + fused residual conv4 (1x1) ------------
    a2_2d = a2.reshape(NHW, Cmidp)
    if fuse_k:
        w_head = jnp.concatenate([w3, w4], axis=0)      # (Cmidp+Cinp, Coutp)
        out2d = pl.pallas_call(
            _head_kernel_fused,
            out_shape=jax.ShapeDtypeStruct((NHW, Coutp), jnp.float32),
            grid=grid_rows,
            in_specs=[row_spec(Cmidp), row_spec(Cinp), vec_spec(Cmidp),
                      vec_spec(Cmidp), mat_spec(Cmidp + Cinp, Coutp),
                      vec_spec(Coutp)],
            out_specs=row_spec(Coutp),
            scratch_shapes=[pltpu.VMEM((tr, Cmidp + Cinp), mm)],
            compiler_params=cparams,
        )(a2_2d, x2d, s3, t3, w_head, b34)
    else:
        out2d = pl.pallas_call(
            _head_kernel_split,
            out_shape=jax.ShapeDtypeStruct((NHW, Coutp), jnp.float32),
            grid=grid_rows,
            in_specs=[row_spec(Cmidp), row_spec(Cinp), vec_spec(Cmidp),
                      vec_spec(Cmidp), mat_spec(Cmidp, Coutp),
                      mat_spec(Cinp, Coutp), vec_spec(Coutp)],
            out_specs=row_spec(Coutp),
            compiler_params=cparams,
        )(a2_2d, x2d, s3, t3, w3, w4, b34)

    out = out2d.reshape(N, H, W, Coutp)[..., :Cout]
    return jnp.transpose(out, (0, 3, 1, 2))      # back to NCHW


# --------------------------------------------------------------------------
# pure-JAX reference (mirrors the PyTorch forward, NCHW)
# --------------------------------------------------------------------------
def residual_block_reference(x, p):
    def bn(v, g, b):
        mean = jnp.mean(v, axis=(0, 2, 3), keepdims=True)
        var = jnp.mean((v - mean) ** 2, axis=(0, 2, 3), keepdims=True)
        return ((v - mean) / jnp.sqrt(var + EPS) * g.reshape(1, -1, 1, 1)
                + b.reshape(1, -1, 1, 1))

    def conv(v, w, b, pad):
        y = lax.conv_general_dilated(v, w, (1, 1), [(pad, pad), (pad, pad)],
                                     dimension_numbers=("NCHW", "OIHW", "NCHW"),
                                     precision=lax.Precision.HIGHEST)
        return y + b.reshape(1, -1, 1, 1)

    h = jax.nn.relu(bn(x, p["g1"], p["b1"]))
    h = conv(h, p["w1"], p["c1b"], 0)
    h = jax.nn.relu(bn(h, p["g2"], p["b2"]))
    h = conv(h, p["w2"], p["c2b"], 1)
    h = jax.nn.relu(bn(h, p["g3"], p["b3"]))
    out = conv(h, p["w3"], p["c3b"], 0)
    res = conv(x, p["w4"], p["c4b"], 0)
    return out + res


def make_params(key, num_in, num_out):
    mid = num_out // 2
    ks = jax.random.split(key, 16)
    f32 = jnp.float32
    return {
        "g1": 1.0 + 0.1 * jax.random.normal(ks[0], (num_in,), f32),
        "b1": 0.1 * jax.random.normal(ks[1], (num_in,), f32),
        "g2": 1.0 + 0.1 * jax.random.normal(ks[2], (mid,), f32),
        "b2": 0.1 * jax.random.normal(ks[3], (mid,), f32),
        "g3": 1.0 + 0.1 * jax.random.normal(ks[4], (mid,), f32),
        "b3": 0.1 * jax.random.normal(ks[5], (mid,), f32),
        "w1": 0.1 * jax.random.normal(ks[6], (mid, num_in, 1, 1), f32),
        "c1b": 0.1 * jax.random.normal(ks[7], (mid,), f32),
        "w2": 0.1 * jax.random.normal(ks[8], (mid, mid, 3, 3), f32),
        "c2b": 0.1 * jax.random.normal(ks[9], (mid,), f32),
        "w3": 0.1 * jax.random.normal(ks[10], (num_out, mid, 1, 1), f32),
        "c3b": 0.1 * jax.random.normal(ks[11], (num_out,), f32),
        "w4": 0.1 * jax.random.normal(ks[12], (num_out, num_in, 1, 1), f32),
        "c4b": 0.1 * jax.random.normal(ks[13], (num_out,), f32),
    }


if __name__ == "__main__":
    N, Cin, Cout, H, W = 2, 4, 8, 16, 16
    key = jax.random.PRNGKey(0)
    kx, kp = jax.random.split(key)
    x = jax.random.normal(kx, (N, Cin, H, W), jnp.float32)
    params = make_params(kp, Cin, Cout)

    run = jax.jit(residual_block_pallas, static_argnames=("matmul_dtype",))
    ref = jax.block_until_ready(residual_block_reference(x, params))

    # f32 path: close match with the f32 reference (one-pass fused BN stats).
    out_f32 = jax.block_until_ready(run(x, params, matmul_dtype=jnp.float32))
    np.testing.assert_allclose(np.asarray(out_f32), np.asarray(ref),
                               rtol=5e-4, atol=5e-4)

    # bf16 path: bf16 matmuls AND bf16 inter-stage activations in HBM.
    out_bf16 = jax.block_until_ready(run(x, params, matmul_dtype=jnp.bfloat16))
    np.testing.assert_allclose(np.asarray(out_bf16), np.asarray(ref),
                               rtol=5e-2, atol=5e-2)

    print("KERNEL_OK")
</pallas_src>

<mosaic_0001>
module attributes {stable_mosaic.version = 11 : i64} {
  func.func @kernel(%arg0: i32, %arg1: memref<128x128xf32, #tpu.memory_space<vmem>>, %arg2: memref<1x128xf32, #tpu.memory_space<vmem>>, %arg3: memref<1x128xf32, #tpu.memory_space<vmem>>, %arg4: memref<128x128xf32, #tpu.memory_space<vmem>>, %arg5: memref<1x128xf32, #tpu.memory_space<vmem>>, %arg6: memref<128x128xf32, #tpu.memory_space<vmem>>, %arg7: memref<1x8x128xf32, #tpu.memory_space<vmem>>) attributes {dimension_semantics = [#tpu.dimension_semantics<parallel>], iteration_bounds = array<i64: 4>, scalar_prefetch = 0 : i64, scratch_operands = 0 : i64, tpu.core_type = #tpu.core_type<tc>, window_params = [{transform_indices = @transform_0, window_bounds = array<i64: 128, 128>}, {pipeline_mode = #tpu.pipeline_mode<synchronous>, transform_indices = @transform_1, window_bounds = array<i64: 1, 128>}, {pipeline_mode = #tpu.pipeline_mode<synchronous>, transform_indices = @transform_2, window_bounds = array<i64: 1, 128>}, {pipeline_mode = #tpu.pipeline_mode<synchronous>, transform_indices = @transform_3, window_bounds = array<i64: 128, 128>}, {pipeline_mode = #tpu.pipeline_mode<synchronous>, transform_indices = @transform_4, window_bounds = array<i64: 1, 128>}, {transform_indices = @transform_5, window_bounds = array<i64: 128, 128>}, {transform_indices = @transform_6, window_bounds = array<i64: 1, 8, 128>}]} {
    %c0 = arith.constant 0 : index
    %c0_0 = arith.constant 0 : index
    %0 = vector.load %arg1[%c0, %c0_0] : memref<128x128xf32, #tpu.memory_space<vmem>>, vector<128x128xf32>
    %c0_1 = arith.constant 0 : index
    %c0_2 = arith.constant 0 : index
    %1 = vector.load %arg2[%c0_1, %c0_2] : memref<1x128xf32, #tpu.memory_space<vmem>>, vector<1x128xf32>
    %2 = vector.broadcast %1 : vector<1x128xf32> to vector<128x128xf32>
    %3 = arith.mulf %0, %2 : vector<128x128xf32>
    %c0_3 = arith.constant 0 : index
    %c0_4 = arith.constant 0 : index
    %4 = vector.load %arg3[%c0_3, %c0_4] : memref<1x128xf32, #tpu.memory_space<vmem>>, vector<1x128xf32>
    %5 = vector.broadcast %4 : vector<1x128xf32> to vector<128x128xf32>
    %6 = arith.addf %3, %5 : vector<128x128xf32>
    %cst = arith.constant 0.000000e+00 : f32
    %7 = vector.broadcast %cst : f32 to vector<128x128xf32>
    %8 = arith.maximumf %6, %7 : vector<128x128xf32>
    %c0_5 = arith.constant 0 : index
    %c0_6 = arith.constant 0 : index
    %9 = vector.load %arg4[%c0_5, %c0_6] : memref<128x128xf32, #tpu.memory_space<vmem>>, vector<128x128xf32>
    %cst_7 = arith.constant dense<0.000000e+00> : vector<128x128xf32>
    %10 = tpu.matmul %8, %9, %cst_7 {dimension_numbers = #tpu.dot_dimension_numbers<[1], [0], [0], [1], [0, 0, 1, 1], [], []>} : vector<128x128xf32>, vector<128x128xf32>, vector<128x128xf32> -> vector<128x128xf32>
    %c0_8 = arith.constant 0 : index
    %c0_9 = arith.constant 0 : index
    %11 = vector.load %arg5[%c0_8, %c0_9] : memref<1x128xf32, #tpu.memory_space<vmem>>, vector<1x128xf32>
    %12 = vector.broadcast %11 : vector<1x128xf32> to vector<128x128xf32>
    %13 = arith.addf %10, %12 : vector<128x128xf32>
    %cst_10 = arith.constant dense<0.000000e+00> : vector<128xf32>
    %14 = vector.multi_reduction <add>, %13, %cst_10 [0] : vector<128x128xf32> to vector<128xf32>
    %15 = vector.shape_cast %14 : vector<128xf32> to vector<1x128xf32>
    %16 = arith.mulf %13, %13 : vector<128x128xf32>
    %cst_11 = arith.constant dense<0.000000e+00> : vector<128xf32>
    %17 = vector.multi_reduction <add>, %16, %cst_11 [0] : vector<128x128xf32> to vector<128xf32>
    %18 = vector.shape_cast %17 : vector<128xf32> to vector<1x128xf32>
    %19 = tpu.iota {dimensions = array<i32: 0>} : vector<8x1xi32>
    %c0_i32 = arith.constant 0 : i32
    %20 = vector.broadcast %c0_i32 : i32 to vector<8x1xi32>
    %21 = arith.cmpi eq, %19, %20 : vector<8x1xi32>
    %c1_i32 = arith.constant 1 : i32
    %22 = vector.broadcast %c1_i32 : i32 to vector<8x1xi32>
    %23 = arith.cmpi eq, %19, %22 : vector<8x1xi32>
    %cst_12 = arith.constant 0.000000e+00 : f32
    %24 = vector.shape_cast %23 : vector<8x1xi1> to vector<8x1xi1>
    %25 = vector.broadcast %24 : vector<8x1xi1> to vector<8x128xi1>
    %26 = vector.shape_cast %18 : vector<1x128xf32> to vector<1x128xf32>
    %27 = vector.broadcast %26 : vector<1x128xf32> to vector<8x128xf32>
    %28 = vector.broadcast %cst_12 : f32 to vector<8x128xf32>
    %29 = arith.select %25, %27, %28 : vector<8x128xi1>, vector<8x128xf32>
    %30 = vector.shape_cast %21 : vector<8x1xi1> to vector<8x1xi1>
    %31 = vector.broadcast %30 : vector<8x1xi1> to vector<8x128xi1>
    %32 = vector.shape_cast %15 : vector<1x128xf32> to vector<1x128xf32>
    %33 = vector.broadcast %32 : vector<1x128xf32> to vector<8x128xf32>
    %34 = arith.select %31, %33, %29 : vector<8x128xi1>, vector<8x128xf32>
    %c0_13 = arith.constant 0 : index
    %c0_14 = arith.constant 0 : index
    %c0_15 = arith.constant 0 : index
    %35 = vector.load %arg7[%c0_13, %c0_14, %c0_15] : memref<1x8x128xf32, #tpu.memory_space<vmem>>, vector<1x8x128xf32>
    %36 = vector.shape_cast %35 : vector<1x8x128xf32> to vector<8x128xf32>
    %37 = vector.shape_cast %34 : vector<8x128xf32> to vector<1x8x128xf32>
    tpu.vector_store %arg7[%c0_13, %c0_14, %c0_15], %37 {strides = array<i32>} : memref<1x8x128xf32, #tpu.memory_space<vmem>>, vector<1x8x128xf32>,
    %c0_16 = arith.constant 0 : index
    %c0_17 = arith.constant 0 : index
    %38 = vector.load %arg6[%c0_16, %c0_17] : memref<128x128xf32, #tpu.memory_space<vmem>>, vector<128x128xf32>
    tpu.vector_store %arg6[%c0_16, %c0_17], %13 {strides = array<i32>} : memref<128x128xf32, #tpu.memory_space<vmem>>, vector<128x128xf32>,
    return
  }
  func.func @transform_0(%arg0: i32) -> (i32, i32) {
    %c0_i32 = arith.constant 0 : i32
    %c0_i32_0 = arith.constant 0 : i32
    return %arg0, %c0_i32 : i32, i32
  }
  func.func @transform_1(%arg0: i32) -> (i32, i32) {
    %c0_i32 = arith.constant 0 : i32
    %c0_i32_0 = arith.constant 0 : i32
    %c0_i32_1 = arith.constant 0 : i32
    return %c0_i32, %c0_i32_0 : i32, i32
  }
  func.func @transform_2(%arg0: i32) -> (i32, i32) {
    %c0_i32 = arith.constant 0 : i32
    %c0_i32_0 = arith.constant 0 : i32
    %c0_i32_1 = arith.constant 0 : i32
    return %c0_i32, %c0_i32_0 : i32, i32
  }
  func.func @transform_3(%arg0: i32) -> (i32, i32) {
    %c0_i32 = arith.constant 0 : i32
    %c0_i32_0 = arith.constant 0 : i32
    %c0_i32_1 = arith.constant 0 : i32
    return %c0_i32, %c0_i32_0 : i32, i32
  }
  func.func @transform_4(%arg0: i32) -> (i32, i32) {
    %c0_i32 = arith.constant 0 : i32
    %c0_i32_0 = arith.constant 0 : i32
    %c0_i32_1 = arith.constant 0 : i32
    return %c0_i32, %c0_i32_0 : i32, i32
  }
  func.func @transform_5(%arg0: i32) -> (i32, i32) {
    %c0_i32 = arith.constant 0 : i32
    %c0_i32_0 = arith.constant 0 : i32
    return %arg0, %c0_i32 : i32, i32
  }
  func.func @transform_6(%arg0: i32) -> (i32, i32, i32) {
    %c0_i32 = arith.constant 0 : i32
    %c0_i32_0 = arith.constant 0 : i32
    %c0_i32_1 = arith.constant 0 : i32
    return %arg0, %c0_i32, %c0_i32_0 : i32, i32, i32
  }
}

module attributes {stable_mosaic.version = 11 : i64} {
  func.func @kernel(%arg0: i32, %arg1: memref<1x16x16x128xf32, #tpu.memory_space<vmem>>, %arg2: memref<1x128xf32, #tpu.memory_space<vmem>>, %arg3: memref<1x128xf32, #tpu.memory_space<vmem>>, %arg4: memref<9x128x128xf32, #tpu.memory_space<vmem>>, %arg5: memref<1x128xf32, #tpu.memory_space<vmem>>, %arg6: memref<1x16x16x128xf32, #tpu.memory_space<vmem>>, %arg7: memref<1x8x128xf32, #tpu.memory_space<vmem>>, %arg8: memref<18x16x128xf32, #tpu.memory_space<vmem>>, %arg9: memref<256x128xf32, #tpu.memory_space<vmem>>) attributes {dimension_semantics = [#tpu.dimension_semantics<parallel>], iteration_bounds = array<i64: 2>, scalar_prefetch = 0 : i64, scratch_operands = 2 : i64, tpu.core_type = #tpu.core_type<tc>, window_params = [{transform_indices = @transform_0, window_bounds = array<i64: 1, 16, 16, 128>}, {pipeline_mode = #tpu.pipeline_mode<synchronous>, transform_indices = @transform_1, window_bounds = array<i64: 1, 128>}, {pipeline_mode = #tpu.pipeline_mode<synchronous>, transform_indices = @transform_2, window_bounds = array<i64: 1, 128>}, {pipeline_mode = #tpu.pipeline_mode<synchronous>, transform_indices = @transform_3, window_bounds = array<i64: 9, 128, 128>}, {pipeline_mode = #tpu.pipeline_mode<synchronous>, transform_indices = @transform_4, window_bounds = array<i64: 1, 128>}, {transform_indices = @transform_5, window_bounds = array<i64: 1, 16, 16, 128>}, {transform_indices = @transform_6, window_bounds = array<i64: 1, 8, 128>}]} {
    %c0 = arith.constant 0 : index
    %c0_0 = arith.constant 0 : index
    %0 = vector.load %arg2[%c0, %c0_0] : memref<1x128xf32, #tpu.memory_space<vmem>>, vector<1x128xf32>
    %1 = vector.shape_cast %0 : vector<1x128xf32> to vector<1x1x128xf32>
    %c0_1 = arith.constant 0 : index
    %c0_2 = arith.constant 0 : index
    %2 = vector.load %arg3[%c0_1, %c0_2] : memref<1x128xf32, #tpu.memory_space<vmem>>, vector<1x128xf32>
    %3 = vector.shape_cast %2 : vector<1x128xf32> to vector<1x1x128xf32>
    %c0_3 = arith.constant 0 : index
    %c0_4 = arith.constant 0 : index
    %c0_5 = arith.constant 0 : index
    %c0_6 = arith.constant 0 : index
    %4 = vector.load %arg1[%c0_3, %c0_4, %c0_5, %c0_6] : memref<1x16x16x128xf32, #tpu.memory_space<vmem>>, vector<1x16x16x128xf32>
    %5 = vector.shape_cast %4 : vector<1x16x16x128xf32> to vector<16x16x128xf32>
    %6 = vector.broadcast %1 : vector<1x1x128xf32> to vector<16x16x128xf32>
    %7 = arith.mulf %5, %6 : vector<16x16x128xf32>
    %8 = vector.broadcast %3 : vector<1x1x128xf32> to vector<16x16x128xf32>
    %9 = arith.addf %7, %8 : vector<16x16x128xf32>
    %cst = arith.constant 0.000000e+00 : f32
    %10 = vector.broadcast %cst : f32 to vector<16x16x128xf32>
    %11 = arith.maximumf %9, %10 : vector<16x16x128xf32>
    %cst_7 = arith.constant 0.000000e+00 : f32
    %12 = vector.broadcast %cst_7 : f32 to vector<16x128xf32>
    %c0_8 = arith.constant 0 : index
    %c0_9 = arith.constant 0 : index
    %c0_10 = arith.constant 0 : index
    %13 = vector.load %arg8[%c0_8, %c0_9, %c0_10] : memref<18x16x128xf32, #tpu.memory_space<vmem>>, vector<1x16x128xf32>
    %14 = vector.shape_cast %13 : vector<1x16x128xf32> to vector<16x128xf32>
    %15 = vector.shape_cast %12 : vector<16x128xf32> to vector<1x16x128xf32>
    tpu.vector_store %arg8[%c0_8, %c0_9, %c0_10], %15 {strides = array<i32>} : memref<18x16x128xf32, #tpu.memory_space<vmem>>, vector<1x16x128xf32>,
    %cst_11 = arith.constant 0.000000e+00 : f32
    %16 = vector.broadcast %cst_11 : f32 to vector<16x128xf32>
    %c17 = arith.constant 17 : index
    %c0_12 = arith.constant 0 : index
    %c0_13 = arith.constant 0 : index
    %17 = vector.load %arg8[%c17, %c0_12, %c0_13] : memref<18x16x128xf32, #tpu.memory_space<vmem>>, vector<1x16x128xf32>
    %18 = vector.shape_cast %17 : vector<1x16x128xf32> to vector<16x128xf32>
    %19 = vector.shape_cast %16 : vector<16x128xf32> to vector<1x16x128xf32>
    tpu.vector_store %arg8[%c17, %c0_12, %c0_13], %19 {strides = array<i32>} : memref<18x16x128xf32, #tpu.memory_space<vmem>>, vector<1x16x128xf32>,
    %c1 = arith.constant 1 : index
    %c0_14 = arith.constant 0 : index
    %c0_15 = arith.constant 0 : index
    %20 = vector.load %arg8[%c1, %c0_14, %c0_15] : memref<18x16x128xf32, #tpu.memory_space<vmem>>, vector<16x16x128xf32>
    tpu.vector_store %arg8[%c1, %c0_14, %c0_15], %11 {strides = array<i32>} : memref<18x16x128xf32, #tpu.memory_space<vmem>>, vector<16x16x128xf32>,
    %21 = tpu.iota {dimensions = array<i32: 1>} : vector<1x16x1xi32>
    %c1_i32 = arith.constant 1 : i32
    %22 = vector.broadcast %c1_i32 : i32 to vector<1x16x1xi32>
    %23 = arith.cmpi sge, %21, %22 : vector<1x16x1xi32>
    %c15_i32 = arith.constant 15 : i32
    %24 = vector.broadcast %c15_i32 : i32 to vector<1x16x1xi32>
    %25 = arith.cmpi slt, %21, %24 : vector<1x16x1xi32>
    %c0_16 = arith.constant 0 : index
    %c0_17 = arith.constant 0 : index
    %c0_18 = arith.constant 0 : index
    %26 = vector.load %arg8[%c0_16, %c0_17, %c0_18] : memref<18x16x128xf32, #tpu.memory_space<vmem>>, vector<16x16x128xf32>
    %c1_i32_19 = arith.constant 1 : i32
    %27 = tpu.dynamic_rotate %26 by %c1_i32_19 dim 1 : vector<16x16x128xf32>, i32 -> vector<16x16x128xf32>
    %cst_20 = arith.constant 0.000000e+00 : f32
    %28 = vector.shape_cast %23 : vector<1x16x1xi1> to vector<1x16x1xi1>
    %29 = vector.broadcast %28 : vector<1x16x1xi1> to vector<16x16x128xi1>
    %30 = vector.broadcast %cst_20 : f32 to vector<16x16x128xf32>
    %31 = arith.select %29, %27, %30 : vector<16x16x128xi1>, vector<16x16x128xf32>
    %c15_i32_21 = arith.constant 15 : i32
    %32 = tpu.dynamic_rotate %26 by %c15_i32_21 dim 1 : vector<16x16x128xf32>, i32 -> vector<16x16x128xf32>
    %cst_22 = arith.constant 0.000000e+00 : f32
    %33 = vector.shape_cast %25 : vector<1x16x1xi1> to vector<1x16x1xi1>
    %34 = vector.broadcast %33 : vector<1x16x1xi1> to vector<16x16x128xi1>
    %35 = vector.broadcast %cst_22 : f32 to vector<16x16x128xf32>
    %36 = arith.select %34, %32, %35 : vector<16x16x128xi1>, vector<16x16x128xf32>
    %37 = vector.shape_cast %31 : vector<16x16x128xf32> to vector<256x128xf32>
    %c0_23 = arith.constant 0 : index
    %c0_24 = arith.constant 0 : index
    %c0_25 = arith.constant 0 : index
    %38 = vector.load %arg4[%c0_23, %c0_24, %c0_25] : memref<9x128x128xf32, #tpu.memory_space<vmem>>, vector<1x128x128xf32>
    %39 = vector.shape_cast %38 : vector<1x128x128xf32> to vector<128x128xf32>
    %cst_26 = arith.constant dense<0.000000e+00> : vector<256x128xf32>
    %40 = tpu.matmul %37, %39, %cst_26 {dimension_numbers = #tpu.dot_dimension_numbers<[1], [0], [0], [1], [0, 0, 1, 1], [], []>} : vector<256x128xf32>, vector<128x128xf32>, vector<256x128xf32> -> vector<256x128xf32>
    %41 = vector.shape_cast %26 : vector<16x16x128xf32> to vector<256x128xf32>
    %c1_27 = arith.constant 1 : index
    %c0_28 = arith.constant 0 : index
    %c0_29 = arith.constant 0 : index
    %42 = vector.load %arg4[%c1_27, %c0_28, %c0_29] : memref<9x128x128xf32, #tpu.memory_space<vmem>>, vector<1x128x128xf32>
    %43 = vector.shape_cast %42 : vector<1x128x128xf32> to vector<128x128xf32>
    %cst_30 = arith.constant dense<0.000000e+00> : vector<256x128xf32>
    %44 = tpu.matmul %41, %43, %cst_30 {dimension_numbers = #tpu.dot_dimension_numbers<[1], [0], [0], [1], [0, 0, 1, 1], [], []>} : vector<256x128xf32>, vector<128x128xf32>, vector<256x128xf32> -> vector<256x128xf32>
    %45 = arith.addf %40, %44 : vector<256x128xf32>
    %46 = vector.shape_cast %36 : vector<16x16x128xf32> to vector<256x128xf32>
    %c2 = arith.constant 2 : index
    %c0_31 = arith.constant 0 : index
    %c0_32 = arith.constant 0 : index
    %47 = vector.load %arg4[%c2, %c0_31, %c0_32] : memref<9x128x128xf32, #tpu.memory_space<vmem>>, vector<1x128x128xf32>
    %48 = vector.shape_cast %47 : vector<1x128x128xf32> to vector<128x128xf32>
    %cst_33 = arith.constant dense<0.000000e+00> : vector<256x128xf32>
    %49 = tpu.matmul %46, %48, %cst_33 {dimension_numbers = #tpu.dot_dimension_numbers<[1], [0], [0], [1], [0, 0, 1, 1], [], []>} : vector<256x128xf32>, vector<128x128xf32>, vector<256x128xf32> -> vector<256x128xf32>
    %50 = arith.addf %45, %49 : vector<256x128xf32>
    %c0_34 = arith.constant 0 : index
    %c0_35 = arith.constant 0 : index
    %51 = vector.load %arg9[%c0_34, %c0_35] : memref<256x128xf32, #tpu.memory_space<vmem>>, vector<256x128xf32>
    tpu.vector_store %arg9[%c0_34, %c0_35], %50 {strides = array<i32>} : memref<256x128xf32, #tpu.memory_space<vmem>>, vector<256x128xf32>,
    %c1_36 = arith.constant 1 : index
    %c0_37 = arith.constant 0 : index
    %c0_38 = arith.constant 0 : index
    %52 = vector.load %arg8[%c1_36, %c0_37, %c0_38] : memref<18x16x128xf32, #tpu.memory_space<vmem>>, vector<16x16x128xf32>
    %c1_i32_39 = arith.constant 1 : i32
    %53 = tpu.dynamic_rotate %52 by %c1_i32_39 dim 1 : vector<16x16x128xf32>, i32 -> vector<16x16x128xf32>
    %cst_40 = arith.constant 0.000000e+00 : f32
    %54 = vector.shape_cast %23 : vector<1x16x1xi1> to vector<1x16x1xi1>
    %55 = vector.broadcast %54 : vector<1x16x1xi1> to vector<16x16x128xi1>
    %56 = vector.broadcast %cst_40 : f32 to vector<16x16x128xf32>
    %57 = arith.select %55, %53, %56 : vector<16x16x128xi1>, vector<16x16x128xf32>
    %c15_i32_41 = arith.constant 15 : i32
    %58 = tpu.dynamic_rotate %52 by %c15_i32_41 dim 1 : vector<16x16x128xf32>, i32 -> vector<16x16x128xf32>
    %cst_42 = arith.constant 0.000000e+00 : f32
    %59 = vector.shape_cast %25 : vector<1x16x1xi1> to vector<1x16x1xi1>
    %60 = vector.broadcast %59 : vector<1x16x1xi1> to vector<16x16x128xi1>
    %61 = vector.broadcast %cst_42 : f32 to vector<16x16x128xf32>
    %62 = arith.select %60, %58, %61 : vector<16x16x128xi1>, vector<16x16x128xf32>
    %63 = vector.shape_cast %57 : vector<16x16x128xf32> to vector<256x128xf32>
    %c3 = arith.constant 3 : index
    %c0_43 = arith.constant 0 : index
    %c0_44 = arith.constant 0 : index
    %64 = vector.load %arg4[%c3, %c0_43, %c0_44] : memref<9x128x128xf32, #tpu.memory_space<vmem>>, vector<1x128x128xf32>
    %65 = vector.shape_cast %64 : vector<1x128x128xf32> to vector<128x128xf32>
    %cst_45 = arith.constant dense<0.000000e+00> : vector<256x128xf32>
    %66 = tpu.matmul %63, %65, %cst_45 {dimension_numbers = #tpu.dot_dimension_numbers<[1], [0], [0], [1], [0, 0, 1, 1], [], []>} : vector<256x128xf32>, vector<128x128xf32>, vector<256x128xf32> -> vector<256x128xf32>
    %67 = vector.shape_cast %52 : vector<16x16x128xf32> to vector<256x128xf32>
    %c4 = arith.constant 4 : index
    %c0_46 = arith.constant 0 : index
    %c0_47 = arith.constant 0 : index
    %68 = vector.load %arg4[%c4, %c0_46, %c0_47] : memref<9x128x128xf32, #tpu.memory_space<vmem>>, vector<1x128x128xf32>
    %69 = vector.shape_cast %68 : vector<1x128x128xf32> to vector<128x128xf32>
    %cst_48 = arith.constant dense<0.000000e+00> : vector<256x128xf32>
    %70 = tpu.matmul %67, %69, %cst_48 {dimension_numbers = #tpu.dot_dimension_numbers<[1], [0], [0], [1], [0, 0, 1, 1], [], []>} : vector<256x128xf32>, vector<128x128xf32>, vector<256x128xf32> -> vector<256x128xf32>
    %71 = arith.addf %66, %70 : vector<256x128xf32>
    %72 = vector.shape_cast %62 : vector<16x16x128xf32> to vector<256x128xf32>
    %c5 = arith.constant 5 : index
    %c0_49 = arith.constant 0 : index
    %c0_50 = arith.constant 0 : index
    %73 = vector.load %arg4[%c5, %c0_49, %c0_50] : memref<9x128x128xf32, #tpu.memory_space<vmem>>, vector<1x128x128xf32>
    %74 = vector.shape_cast %73 : vector<1x128x128xf32> to vector<128x128xf32>
    %cst_51 = arith.constant dense<0.000000e+00> : vector<256x128xf32>
    %75 = tpu.matmul %72, %74, %cst_51 {dimension_numbers = #tpu.dot_dimension_numbers<[1], [0], [0], [1], [0, 0, 1, 1], [], []>} : vector<256x128xf32>, vector<128x128xf32>, vector<256x128xf32> -> vector<256x128xf32>
    %76 = arith.addf %71, %75 : vector<256x128xf32>
    %c0_52 = arith.constant 0 : index
    %c0_53 = arith.constant 0 : index
    %77 = vector.load %arg9[%c0_52, %c0_53] : memref<256x128xf32, #tpu.memory_space<vmem>>, vector<256x128xf32>
    %78 = arith.addf %77, %76 : vector<256x128xf32>
    %c0_54 = arith.constant 0 : index
    %c0_55 = arith.constant 0 : index
    %79 = vector.load %arg9[%c0_54, %c0_55] : memref<256x128xf32, #tpu.memory_space<vmem>>, vector<256x128xf32>
    tpu.vector_store %arg9[%c0_54, %c0_55], %78 {strides = array<i32>} : memref<256x128xf32, #tpu.memory_space<vmem>>, vector<256x128xf32>,
    %c2_56 = arith.constant 2 : index
    %c0_57 = arith.constant 0 : index
    %c0_58 = arith.constant 0 : index
    %80 = vector.load %arg8[%c2_56, %c0_57, %c0_58] : memref<18x16x128xf32, #tpu.memory_space<vmem>>, vector<16x16x128xf32>
    %c1_i32_59 = arith.constant 1 : i32
    %81 = tpu.dynamic_rotate %80 by %c1_i32_59 dim 1 : vector<16x16x128xf32>, i32 -> vector<16x16x128xf32>
    %cst_60 = arith.constant 0.000000e+00 : f32
    %82 = vector.shape_cast %23 : vector<1x16x1xi1> to vector<1x16x1xi1>
    %83 = vector.broadcast %82 : vector<1x16x1xi1> to vector<16x16x128xi1>
    %84 = vector.broadcast %cst_60 : f32 to vector<16x16x128xf32>
    %85 = arith.select %83, %81, %84 : vector<16x16x128xi1>, vector<16x16x128xf32>
    %c15_i32_61 = arith.constant 15 : i32
    %86 = tpu.dynamic_rotate %80 by %c15_i32_61 dim 1 : vector<16x16x128xf32>, i32 -> vector<16x16x128xf32>
    %cst_62 = arith.constant 0.000000e+00 : f32
    %87 = vector.shape_cast %25 : vector<1x16x1xi1> to vector<1x16x1xi1>
    %88 = vector.broadcast %87 : vector<1x16x1xi1> to vector<16x16x128xi1>
    %89 = vector.broadcast %cst_62 : f32 to vector<16x16x128xf32>
    %90 = arith.select %88, %86, %89 : vector<16x16x128xi1>, vector<16x16x128xf32>
    %91 = vector.shape_cast %85 : vector<16x16x128xf32> to vector<256x128xf32>
    %c6 = arith.constant 6 : index
    %c0_63 = arith.constant 0 : index
    %c0_64 = arith.constant 0 : index
    %92 = vector.load %arg4[%c6, %c0_63, %c0_64] : memref<9x128x128xf32, #tpu.memory_space<vmem>>, vector<1x128x128xf32>
    %93 = vector.shape_cast %92 : vector<1x128x128xf32> to vector<128x128xf32>
    %cst_65 = arith.constant dense<0.000000e+00> : vector<256x128xf32>
    %94 = tpu.matmul %91, %93, %cst_65 {dimension_numbers = #tpu.dot_dimension_numbers<[1], [0], [0], [1], [0, 0, 1, 1], [], []>} : vector<256x128xf32>, vector<128x128xf32>, vector<256x128xf32> -> vector<256x128xf32>
    %95 = vector.shape_cast %80 : vector<16x16x128xf32> to vector<256x128xf32>
    %c7 = arith.constant 7 : index
    %c0_66 = arith.constant 0 : index
    %c0_67 = arith.constant 0 : index
    %96 = vector.load %arg4[%c7, %c0_66, %c0_67] : memref<9x128x128xf32, #tpu.memory_space<vmem>>, vector<1x128x128xf32>
    %97 = vector.shape_cast %96 : vector<1x128x128xf32> to vector<128x128xf32>
    %cst_68 = arith.constant dense<0.000000e+00> : vector<256x128xf32>
    %98 = tpu.matmul %95, %97, %cst_68 {dimension_numbers = #tpu.dot_dimension_numbers<[1], [0], [0], [1], [0, 0, 1, 1], [], []>} : vector<256x128xf32>, vector<128x128xf32>, vector<256x128xf32> -> vector<256x128xf32>
    %99 = arith.addf %94, %98 : vector<256x128xf32>
    %100 = vector.shape_cast %90 : vector<16x16x128xf32> to vector<256x128xf32>
    %c8 = arith.constant 8 : index
    %c0_69 = arith.constant 0 : index
    %c0_70 = arith.constant 0 : index
    %101 = vector.load %arg4[%c8, %c0_69, %c0_70] : memref<9x128x128xf32, #tpu.memory_space<vmem>>, vector<1x128x128xf32>
    %102 = vector.shape_cast %101 : vector<1x128x128xf32> to vector<128x128xf32>
    %cst_71 = arith.constant dense<0.000000e+00> : vector<256x128xf32>
    %103 = tpu.matmul %100, %102, %cst_71 {dimension_numbers = #tpu.dot_dimension_numbers<[1], [0], [0], [1], [0, 0, 1, 1], [], []>} : vector<256x128xf32>, vector<128x128xf32>, vector<256x128xf32> -> vector<256x128xf32>
    %104 = arith.addf %99, %103 : vector<256x128xf32>
    %c0_72 = arith.constant 0 : index
    %c0_73 = arith.constant 0 : index
    %105 = vector.load %arg9[%c0_72, %c0_73] : memref<256x128xf32, #tpu.memory_space<vmem>>, vector<256x128xf32>
    %106 = arith.addf %105, %104 : vector<256x128xf32>
    %c0_74 = arith.constant 0 : index
    %c0_75 = arith.constant 0 : index
    %107 = vector.load %arg9[%c0_74, %c0_75] : memref<256x128xf32, #tpu.memory_space<vmem>>, vector<256x128xf32>
    tpu.vector_store %arg9[%c0_74, %c0_75], %106 {strides = array<i32>} : memref<256x128xf32, #tpu.memory_space<vmem>>, vector<256x128xf32>,
    %c0_76 = arith.constant 0 : index
    %c0_77 = arith.constant 0 : index
    %108 = vector.load %arg9[%c0_76, %c0_77] : memref<256x128xf32, #tpu.memory_space<vmem>>, vector<256x128xf32>
    %c0_78 = arith.constant 0 : index
    %c0_79 = arith.constant 0 : index
    %109 = vector.load %arg5[%c0_78, %c0_79] : memref<1x128xf32, #tpu.memory_space<vmem>>, vector<1x128xf32>
    %110 = vector.broadcast %109 : vector<1x128xf32> to vector<256x128xf32>
    %111 = arith.addf %108, %110 : vector<256x128xf32>
    %cst_80 = arith.constant dense<0.000000e+00> : vector<128xf32>
    %112 = vector.multi_reduction <add>, %111, %cst_80 [0] : vector<256x128xf32> to vector<128xf32>
    %113 = vector.shape_cast %112 : vector<128xf32> to vector<1x128xf32>
    %114 = arith.mulf %111, %111 : vector<256x128xf32>
    %cst_81 = arith.constant dense<0.000000e+00> : vector<128xf32>
    %115 = vector.multi_reduction <add>, %114, %cst_81 [0] : vector<256x128xf32> to vector<128xf32>
    %116 = vector.shape_cast %115 : vector<128xf32> to vector<1x128xf32>
    %117 = tpu.iota {dimensions = array<i32: 0>} : vector<8x1xi32>
    %c0_i32 = arith.constant 0 : i32
    %118 = vector.broadcast %c0_i32 : i32 to vector<8x1xi32>
    %119 = arith.cmpi eq, %117, %118 : vector<8x1xi32>
    %c1_i32_82 = arith.constant 1 : i32
    %120 = vector.broadcast %c1_i32_82 : i32 to vector<8x1xi32>
    %121 = arith.cmpi eq, %117, %120 : vector<8x1xi32>
    %cst_83 = arith.constant 0.000000e+00 : f32
    %122 = vector.shape_cast %121 : vector<8x1xi1> to vector<8x1xi1>
    %123 = vector.broadcast %122 : vector<8x1xi1> to vector<8x128xi1>
    %124 = vector.shape_cast %116 : vector<1x128xf32> to vector<1x128xf32>
    %125 = vector.broadcast %124 : vector<1x128xf32> to vector<8x128xf32>
    %126 = vector.broadcast %cst_83 : f32 to vector<8x128xf32>
    %127 = arith.select %123, %125, %126 : vector<8x128xi1>, vector<8x128xf32>
    %128 = vector.shape_cast %119 : vector<8x1xi1> to vector<8x1xi1>
    %129 = vector.broadcast %128 : vector<8x1xi1> to vector<8x128xi1>
    %130 = vector.shape_cast %113 : vector<1x128xf32> to vector<1x128xf32>
    %131 = vector.broadcast %130 : vector<1x128xf32> to vector<8x128xf32>
    %132 = arith.select %129, %131, %127 : vector<8x128xi1>, vector<8x128xf32>
    %c0_84 = arith.constant 0 : index
    %c0_85 = arith.constant 0 : index
    %c0_86 = arith.constant 0 : index
    %133 = vector.load %arg7[%c0_84, %c0_85, %c0_86] : memref<1x8x128xf32, #tpu.memory_space<vmem>>, vector<1x8x128xf32>
    %134 = vector.shape_cast %133 : vector<1x8x128xf32> to vector<8x128xf32>
    %135 = vector.shape_cast %132 : vector<8x128xf32> to vector<1x8x128xf32>
    tpu.vector_store %arg7[%c0_84, %c0_85, %c0_86], %135 {strides = array<i32>} : memref<1x8x128xf32, #tpu.memory_space<vmem>>, vector<1x8x128xf32>,
    %136 = vector.shape_cast %111 : vector<256x128xf32> to vector<16x16x128xf32>
    %c0_87 = arith.constant 0 : index
    %c0_88 = arith.constant 0 : index
    %c0_89 = arith.constant 0 : index
    %c0_90 = arith.constant 0 : index
    %137 = vector.load %arg6[%c0_87, %c0_88, %c0_89, %c0_90] : memref<1x16x16x128xf32, #tpu.memory_space<vmem>>, vector<1x16x16x128xf32>
    %138 = vector.shape_cast %137 : vector<1x16x16x128xf32> to vector<16x16x128xf32>
    %139 = vector.shape_cast %136 : vector<16x16x128xf32> to vector<1x16x16x128xf32>
    tpu.vector_store %arg6[%c0_87, %c0_88, %c0_89, %c0_90], %139 {strides = array<i32>} : memref<1x16x16x128xf32, #tpu.memory_space<vmem>>, vector<1x16x16x128xf32>,
    return
  }
  func.func @transform_0(%arg0: i32) -> (i32, i32, i32, i32) {
    %c0_i32 = arith.constant 0 : i32
    %c0_i32_0 = arith.constant 0 : i32
    %c0_i32_1 = arith.constant 0 : i32
    %c0_i32_2 = arith.constant 0 : i32
    return %arg0, %c0_i32, %c0_i32_0, %c0_i32_1 : i32, i32, i32, i32
  }
  func.func @transform_1(%arg0: i32) -> (i32, i32) {
    %c0_i32 = arith.constant 0 : i32
    %c0_i32_0 = arith.constant 0 : i32
    %c0_i32_1 = arith.constant 0 : i32
    return %c0_i32, %c0_i32_0 : i32, i32
  }
  func.func @transform_2(%arg0: i32) -> (i32, i32) {
    %c0_i32 = arith.constant 0 : i32
    %c0_i32_0 = arith.constant 0 : i32
    %c0_i32_1 = arith.constant 0 : i32
    return %c0_i32, %c0_i32_0 : i32, i32
  }
  func.func @transform_3(%arg0: i32) -> (i32, i32, i32) {
    %c0_i32 = arith.constant 0 : i32
    %c0_i32_0 = arith.constant 0 : i32
    %c0_i32_1 = arith.constant 0 : i32
    %c0_i32_2 = arith.constant 0 : i32
    return %c0_i32, %c0_i32_0, %c0_i32_1 : i32, i32, i32
  }
  func.func @transform_4(%arg0: i32) -> (i32, i32) {
    %c0_i32 = arith.constant 0 : i32
    %c0_i32_0 = arith.constant 0 : i32
    %c0_i32_1 = arith.constant 0 : i32
    return %c0_i32, %c0_i32_0 : i32, i32
  }
  func.func @transform_5(%arg0: i32) -> (i32, i32, i32, i32) {
    %c0_i32 = arith.constant 0 : i32
    %c0_i32_0 = arith.constant 0 : i32
    %c0_i32_1 = arith.constant 0 : i32
    %c0_i32_2 = arith.constant 0 : i32
    return %arg0, %c0_i32, %c0_i32_0, %c0_i32_1 : i32, i32, i32, i32
  }
  func.func @transform_6(%arg0: i32) -> (i32, i32, i32) {
    %c0_i32 = arith.constant 0 : i32
    %c0_i32_0 = arith.constant 0 : i32
    %c0_i32_1 = arith.constant 0 : i32
    return %arg0, %c0_i32, %c0_i32_0 : i32, i32, i32
  }
}

module attributes {stable_mosaic.version = 11 : i64} {
  func.func @_head_kernel_fused(%arg0: i32, %arg1: memref<128x128xf32, #tpu.memory_space<vmem>>, %arg2: memref<128x128xf32, #tpu.memory_space<vmem>>, %arg3: memref<1x128xf32, #tpu.memory_space<vmem>>, %arg4: memref<1x128xf32, #tpu.memory_space<vmem>>, %arg5: memref<256x128xf32, #tpu.memory_space<vmem>>, %arg6: memref<1x128xf32, #tpu.memory_space<vmem>>, %arg7: memref<128x128xf32, #tpu.memory_space<vmem>>, %arg8: memref<128x256xf32, #tpu.memory_space<vmem>>) attributes {dimension_semantics = [#tpu.dimension_semantics<parallel>], iteration_bounds = array<i64: 4>, scalar_prefetch = 0 : i64, scratch_operands = 1 : i64, tpu.core_type = #tpu.core_type<tc>, window_params = [{transform_indices = @transform_0, window_bounds = array<i64: 128, 128>}, {transform_indices = @transform_1, window_bounds = array<i64: 128, 128>}, {pipeline_mode = #tpu.pipeline_mode<synchronous>, transform_indices = @transform_2, window_bounds = array<i64: 1, 128>}, {pipeline_mode = #tpu.pipeline_mode<synchronous>, transform_indices = @transform_3, window_bounds = array<i64: 1, 128>}, {pipeline_mode = #tpu.pipeline_mode<synchronous>, transform_indices = @transform_4, window_bounds = array<i64: 256, 128>}, {pipeline_mode = #tpu.pipeline_mode<synchronous>, transform_indices = @transform_5, window_bounds = array<i64: 1, 128>}, {transform_indices = @transform_6, window_bounds = array<i64: 128, 128>}]} {
    %c0 = arith.constant 0 : index
    %c0_0 = arith.constant 0 : index
    %0 = vector.load %arg1[%c0, %c0_0] : memref<128x128xf32, #tpu.memory_space<vmem>>, vector<128x128xf32>
    %c0_1 = arith.constant 0 : index
    %c0_2 = arith.constant 0 : index
    %1 = vector.load %arg3[%c0_1, %c0_2] : memref<1x128xf32, #tpu.memory_space<vmem>>, vector<1x128xf32>
    %2 = vector.broadcast %1 : vector<1x128xf32> to vector<128x128xf32>
    %3 = arith.mulf %0, %2 : vector<128x128xf32>
    %c0_3 = arith.constant 0 : index
    %c0_4 = arith.constant 0 : index
    %4 = vector.load %arg4[%c0_3, %c0_4] : memref<1x128xf32, #tpu.memory_space<vmem>>, vector<1x128xf32>
    %5 = vector.broadcast %4 : vector<1x128xf32> to vector<128x128xf32>
    %6 = arith.addf %3, %5 : vector<128x128xf32>
    %cst = arith.constant 0.000000e+00 : f32
    %7 = vector.broadcast %cst : f32 to vector<128x128xf32>
    %8 = arith.maximumf %6, %7 : vector<128x128xf32>
    %c0_5 = arith.constant 0 : index
    %c0_6 = arith.constant 0 : index
    %9 = vector.load %arg8[%c0_5, %c0_6] : memref<128x256xf32, #tpu.memory_space<vmem>>, vector<128x128xf32>
    tpu.vector_store %arg8[%c0_5, %c0_6], %8 {strides = array<i32>} : memref<128x256xf32, #tpu.memory_space<vmem>>, vector<128x128xf32>,
    %c0_7 = arith.constant 0 : index
    %c0_8 = arith.constant 0 : index
    %10 = vector.load %arg2[%c0_7, %c0_8] : memref<128x128xf32, #tpu.memory_space<vmem>>, vector<128x128xf32>
    %c0_9 = arith.constant 0 : index
    %c128 = arith.constant 128 : index
    %11 = vector.load %arg8[%c0_9, %c128] : memref<128x256xf32, #tpu.memory_space<vmem>>, vector<128x128xf32>
    tpu.vector_store %arg8[%c0_9, %c128], %10 {strides = array<i32>} : memref<128x256xf32, #tpu.memory_space<vmem>>, vector<128x128xf32>,
    %c0_10 = arith.constant 0 : index
    %c0_11 = arith.constant 0 : index
    %12 = vector.load %arg8[%c0_10, %c0_11] : memref<128x256xf32, #tpu.memory_space<vmem>>, vector<128x256xf32>
    %c0_12 = arith.constant 0 : index
    %c0_13 = arith.constant 0 : index
    %13 = vector.load %arg5[%c0_12, %c0_13] : memref<256x128xf32, #tpu.memory_space<vmem>>, vector<256x128xf32>
    %cst_14 = arith.constant dense<0.000000e+00> : vector<128x128xf32>
    %14 = tpu.matmul %12, %13, %cst_14 {dimension_numbers = #tpu.dot_dimension_numbers<[1], [0], [0], [1], [0, 0, 1, 1], [], []>} : vector<128x256xf32>, vector<256x128xf32>, vector<128x128xf32> -> vector<128x128xf32>
    %c0_15 = arith.constant 0 : index
    %c0_16 = arith.constant 0 : index
    %15 = vector.load %arg6[%c0_15, %c0_16] : memref<1x128xf32, #tpu.memory_space<vmem>>, vector<1x128xf32>
    %16 = vector.broadcast %15 : vector<1x128xf32> to vector<128x128xf32>
    %17 = arith.addf %14, %16 : vector<128x128xf32>
    %c0_17 = arith.constant 0 : index
    %c0_18 = arith.constant 0 : index
    %18 = vector.load %arg7[%c0_17, %c0_18] : memref<128x128xf32, #tpu.memory_space<vmem>>, vector<128x128xf32>
    tpu.vector_store %arg7[%c0_17, %c0_18], %17 {strides = array<i32>} : memref<128x128xf32, #tpu.memory_space<vmem>>, vector<128x128xf32>,
    return
  }
  func.func @transform_0(%arg0: i32) -> (i32, i32) {
    %c0_i32 = arith.constant 0 : i32
    %c0_i32_0 = arith.constant 0 : i32
    return %arg0, %c0_i32 : i32, i32
  }
  func.func @transform_1(%arg0: i32) -> (i32, i32) {
    %c0_i32 = arith.constant 0 : i32
    %c0_i32_0 = arith.constant 0 : i32
    return %arg0, %c0_i32 : i32, i32
  }
  func.func @transform_2(%arg0: i32) -> (i32, i32) {
    %c0_i32 = arith.constant 0 : i32
    %c0_i32_0 = arith.constant 0 : i32
    %c0_i32_1 = arith.constant 0 : i32
    return %c0_i32, %c0_i32_0 : i32, i32
  }
  func.func @transform_3(%arg0: i32) -> (i32, i32) {
    %c0_i32 = arith.constant 0 : i32
    %c0_i32_0 = arith.constant 0 : i32
    %c0_i32_1 = arith.constant 0 : i32
    return %c0_i32, %c0_i32_0 : i32, i32
  }
  func.func @transform_4(%arg0: i32) -> (i32, i32) {
    %c0_i32 = arith.constant 0 : i32
    %c0_i32_0 = arith.constant 0 : i32
    %c0_i32_1 = arith.constant 0 : i32
    return %c0_i32, %c0_i32_0 : i32, i32
  }
  func.func @transform_5(%arg0: i32) -> (i32, i32) {
    %c0_i32 = arith.constant 0 : i32
    %c0_i32_0 = arith.constant 0 : i32
    %c0_i32_1 = arith.constant 0 : i32
    return %c0_i32, %c0_i32_0 : i32, i32
  }
  func.func @transform_6(%arg0: i32) -> (i32, i32) {
    %c0_i32 = arith.constant 0 : i32
    %c0_i32_0 = arith.constant 0 : i32
    return %arg0, %c0_i32 : i32, i32
  }
}

</mosaic_0001>

<bundles_post_ra>
// kernel: residual_block_pallas.3
= control target key start
LH: loop header
LB: loop body
LE: loop exit
PB: predicated region body
PF: predicated region fallthrough
CT: control target
= control target key end

     0   :  { %s870_s21 = smov 0   ;;  %s1055_s0 = inlined_call_operand.vmem [shape: f32[512,128], index: 0, kind: input, shape index: {}]   ;;  %s1056_s1 = inlined_call_operand.vmem [shape: f32[1,128], index: 1, kind: input, shape index: {}]   ;;  %s1057_s2 = inlined_call_operand.vmem [shape: f32[1,128], index: 2, kind: input, shape index: {}]   ;;  %s1058_s3 = inlined_call_operand.vmem [shape: f32[128,128], index: 3, kind: input, shape index: {}]   ;;  %s1059_s4 = inlined_call_operand.vmem [shape: f32[1,128], index: 4, kind: input, shape index: {}]   ;;  %s1060_s5 = inlined_call_operand.vmem [shape: f32[512,128], index: 5, kind: output, shape index: {0}]   ;;  %s1061_s6 = inlined_call_operand.vmem [shape: f32[4,8,128], index: 6, kind: output, shape index: {1}]  }
   0x1 LB: > { %s876_s22 = sadd.s32 4294967295, %s833_s21   ;;  %p688_p0 = scmp.ge.s32.totalorder %s833_s21, 1  ;;  %s833_s21 = sphi %s870_s21, %s17_s21  }
   0x2   : > { %p216_p1 = scmp.lt.s32.totalorder %s833_s21, 5 }
   0x4   : > { %p217_p2 = pnand %p688_p0, %p216_p1 }
   0x5   : > { %s689_s27 = sshll.u32 (!%p217_p2), %s876_s22, 4  ;;  %p262_p4 = scmp.lt.s32.totalorder (!%p217_p2), %s876_s22, 3 }
   0x6   : > { %220 = sbr.rel (%p217_p2) target bundleno = 290 (0x122), region = 40  ;;  %p251_p3 = scmp.lt.s32.totalorder (!%p217_p2), %s689_s27, 63 }
   0xb   : > { %v359_v0 = vld [vmem:[%s1058_s3 + $0x78] sm:$0xff]  ;;  %v358_v1 = vld [vmem:[%s1058_s3 + $0x70] sm:$0xff]  ;;  %v357_v2 = vld [vmem:[%s1058_s3 + $0x68] sm:$0xff]  ;;  %s1063_s27 = smov (!%p251_p3, %s689_s27), 63  ;;  %s1065_s22 = smov (!%p262_p4, %s876_s22), 3 }
   0xc   : > { %731 = vmatprep.subr.mxu0 %v359_v0  ;;  %787 = vmatprep.subr.mxu1 %v359_v0  ;;  %v356_v3 = vld [vmem:[%s1058_s3 + $0x60] sm:$0xff]  ;;  %s690_s8 = sshll.u32 %s1063_s27, 3  ;;  %v355_v5 = vld [vmem:[%s1058_s3 + $0x58] sm:$0xff]  ;;  %v354_v7 = vld [vmem:[%s1058_s3 + $0x50] sm:$0xff]  ;;  %s693_s27 = sshll.u32 %s1065_s22, 3 }
   0xd   : > { %732 = vmatpush3.msra.mxu0 %v359_v0  ;;  %803 = vmatpush3.msra.mxu1 %v359_v0  ;;  %v899_v4 = vld [vmem:[%s1056_s1] ss:$0 sm:$0xff]  ;;  %s909_s15 = scalar_lea.vmem %s1055_s0, %s690_s8  ;;  %v353_v10 = vld [vmem:[%s1058_s3 + $0x48] sm:$0xff]  ;;  %v351_v13 = vld [vmem:[%s1058_s3 + $0x38] sm:$0xff]  ;;  %s1007_s26 = scalar_lea.vmem %s1060_s5, %s690_s8 }
   0xe   : > { %733 = vmatprep.subr.mxu0 %v358_v1  ;;  %788 = vmatprep.subr.mxu1 %v358_v1  ;;  %v266_v6 = vld [vmem:[%s909_s15] sm:$0xff]  ;;  %v350_v15 = vld [vmem:[%s1058_s3 + $0x30] sm:$0xff]  ;;  %v349_v16 = vld [vmem:[%s1058_s3 + $0x28] sm:$0xff]  ;;  %s265_s29 = scalar_lea.vmem %s1061_s6, %s693_s27 }
   0xf   : > { %734 = vmatpush3.msra.mxu0 %v358_v1  ;;  %804 = vmatpush3.msra.mxu1 %v358_v1  ;;  %v289_v8 = vmul.f32 %v899_v4, %v266_v6  ;;  %v919_v9 = vld [vmem:[%s1057_s2] ss:$0 sm:$0xff]  ;;  %v267_v17 = vld [vmem:[%s909_s15 + $0x8] sm:$0xff]  ;;  %v268_v18 = vld [vmem:[%s909_s15 + $0x10] sm:$0xff] }
  0x10   : > { %735 = vmatprep.subr.mxu0 %v357_v2  ;;  %789 = vmatprep.subr.mxu1 %v357_v2  ;;  %v352_v12 = vld [vmem:[%s1058_s3 + $0x40] sm:$0xff]  ;;  %v275_v21 = vld [vmem:[%s909_s15 + $0x48] sm:$0xff]  ;;  %v290_v22 = vmul.f32 %v899_v4, %v267_v17  ;;  %v276_v23 = vld [vmem:[%s909_s15 + $0x50] sm:$0xff]  ;;  %v291_v25 = vmul.f32 %v899_v4, %v268_v18 }
  0x11   : > { %736 = vmatpush3.msra.mxu0 %v357_v2  ;;  %805 = vmatpush3.msra.mxu1 %v357_v2  ;;  %v312_v11 = vadd.f32 %v919_v9, %v289_v8  ;;  %v274_v19 = vld [vmem:[%s909_s15 + $0x40] sm:$0xff]  ;;  %v347_v24 = vld [vmem:[%s1058_s3 + $0x18] sm:$0xff]  ;;  %v298_v29 = vmul.f32 %v899_v4, %v275_v21  ;;  %v346_v30 = vld [vmem:[%s1058_s3 + $0x10] sm:$0xff]  ;;  %v299_v31 = vmul.f32 %v899_v4, %v276_v23 }
  0x12   : > { %737 = vmatprep.subr.mxu0 %v356_v3  ;;  %790 = vmatprep.subr.mxu1 %v356_v3  ;;  %v348_v20 = vld [vmem:[%s1058_s3 + $0x20] sm:$0xff]  ;;  %v269_v26 = vld [vmem:[%s909_s15 + $0x18] sm:$0xff]  ;;  %v297_v27 = vmul.f32 %v899_v4, %v274_v19  ;;  %v313_v33 = vadd.f32 %v919_v9, %v290_v22  ;;  %v345_v36 = vld [vmem:[%s1058_s3 + $0x8] sm:$0xff]  ;;  %v314_v37 = vadd.f32 %v919_v9, %v291_v25 }
  0x13   : > { %738 = vmatpush3.msra.mxu0 %v356_v3  ;;  %806 = vmatpush3.msra.mxu1 %v356_v3  ;;  %v328_v14 = vmax.f32 %v312_v11, 0.0  ;;  %v270_v28 = vld [vmem:[%s909_s15 + $0x20] sm:$0xff]  ;;  %v277_v32 = vld [vmem:[%s909_s15 + $0x58] sm:$0xff]  ;;  %v292_v34 = vmul.f32 %v899_v4, %v269_v26  ;;  %v271_v39 = vld [vmem:[%s909_s15 + $0x28] sm:$0xff]  ;;  %v321_v42 = vadd.f32 %v919_v9, %v298_v29  ;;  %v322_v45 = vadd.f32 %v919_v9, %v299_v31 }
  0x14   : > { %739 = vmatprep.subr.mxu0 %v355_v5  ;;  %791 = vmatprep.subr.mxu1 %v355_v5  ;;  %v278_v35 = vld [vmem:[%s909_s15 + $0x60] sm:$0xff]  ;;  %v293_v38 = vmul.f32 %v899_v4, %v270_v28  ;;  %v320_v40 = vadd.f32 %v919_v9, %v297_v27  ;;  %v272_v41 = vld [vmem:[%s909_s15 + $0x30] sm:$0xff]  ;;  %v300_v43 = vmul.f32 %v899_v4, %v277_v32  ;;  %v279_v47 = vld [vmem:[%s909_s15 + $0x68] sm:$0xff]  ;;  %v329_v48 = vmax.f32 %v313_v33, 0.0 }
  0x15   : > { %740 = vmatpush3.msra.mxu0 %v355_v5  ;;  %807 = vmatpush3.msra.mxu1 %v355_v5  ;;  %v344_v44 = vld [vmem:[%s1058_s3] sm:$0xff]  ;;  %v301_v46 = vmul.f32 %v899_v4, %v278_v35  ;;  %v315_v49 = vadd.f32 %v919_v9, %v292_v34  ;;  %v294_v50 = vmul.f32 %v899_v4, %v271_v39  ;;  %v280_v51 = vld [vmem:[%s909_s15 + $0x70] sm:$0xff]  ;;  %v330_v52 = vmax.f32 %v314_v37, 0.0  ;;  %v273_v55 = vld [vmem:[%s909_s15 + $0x38] sm:$0xff] }
  0x16   : > { %741 = vmatprep.subr.mxu0 %v354_v7  ;;  %792 = vmatprep.subr.mxu1 %v354_v7  ;;  %v316_v53 = vadd.f32 %v919_v9, %v293_v38  ;;  %v295_v54 = vmul.f32 %v899_v4, %v272_v41  ;;  %v336_v56 = vmax.f32 %v320_v40, 0.0  ;;  %v337_v57 = vmax.f32 %v321_v42, 0.0  ;;  %v281_v63 = vld [vmem:[%s909_s15 + $0x78] sm:$0xff]  ;;  %v1000_v19 = vld [vmem:[%s1059_s4] ss:$0 sm:$0xff] }
  0x17   : > { %742 = vmatpush3.msra.mxu0 %v354_v7  ;;  %808 = vmatpush3.msra.mxu1 %v354_v7  ;;  %v323_v58 = vadd.f32 %v919_v9, %v300_v43  ;;  %v302_v59 = vmul.f32 %v899_v4, %v279_v47  ;;  %v338_v60 = vmax.f32 %v322_v45, 0.0  ;;  %v324_v61 = vadd.f32 %v919_v9, %v301_v46 }
  0x18   : > { %743 = vmatprep.subr.mxu0 %v353_v10  ;;  %793 = vmatprep.subr.mxu1 %v353_v10  ;;  %v303_v62 = vmul.f32 %v899_v4, %v280_v51  ;;  %v331_v0 = vmax.f32 %v315_v49, 0.0  ;;  %v317_v1 = vadd.f32 %v919_v9, %v294_v50  ;;  %v296_v2 = vmul.f32 %v899_v4, %v273_v55 }
  0x19   : > { %744 = vmatpush3.msra.mxu0 %v353_v10  ;;  %809 = vmatpush3.msra.mxu1 %v353_v10  ;;  %v332_v3 = vmax.f32 %v316_v53, 0.0  ;;  %v318_v5 = vadd.f32 %v919_v9, %v295_v54  ;;  %v339_v6 = vmax.f32 %v323_v58, 0.0  ;;  %v325_v7 = vadd.f32 %v919_v9, %v302_v59 }
  0x1a   : > { %745 = vmatprep.subr.mxu0 %v352_v12  ;;  %794 = vmatprep.subr.mxu1 %v352_v12  ;;  %v304_v8 = vmul.f32 %v899_v4, %v281_v63  ;;  %v340_v10 = vmax.f32 %v324_v61, 0.0  ;;  %v326_v11 = vadd.f32 %v919_v9, %v303_v62 }
  0x1b   : > { %746 = vmatpush3.msra.mxu0 %v352_v12  ;;  %810 = vmatpush3.msra.mxu1 %v352_v12  ;;  %v333_v12 = vmax.f32 %v317_v1, 0.0 }
  0x1c   : > { %747 = vmatprep.subr.mxu0 %v351_v13  ;;  %795 = vmatprep.subr.mxu1 %v351_v13  ;;  %v342_v17 = vmax.f32 %v326_v11, 0.0 }
  0x1d   : > { %748 = vmatpush3.msra.mxu0 %v351_v13  ;;  %811 = vmatpush3.msra.mxu1 %v351_v13  ;;  %v319_v13 = vadd.f32 %v919_v9, %v296_v2 }
  0x1e   : > { %749 = vmatprep.subr.mxu0 %v350_v15  ;;  %763 = vmatprep.mubr.f32.mxu0 %v328_v14  ;;  %v334_v14 = vmax.f32 %v318_v5, 0.0 }
  0x1f   : > { %750 = vmatpush3.msra.mxu0 %v350_v15  ;;  %796 = vmatprep.subr.mxu1 %v350_v15  ;;  %v335_v18 = vmax.f32 %v319_v13, 0.0 }
  0x20   : > { %751 = vmatprep.subr.mxu0 %v349_v16  ;;  %812 = vmatpush3.msra.mxu1 %v350_v15  ;;  %v341_v15 = vmax.f32 %v325_v7, 0.0 }
  0x21   : > { %752 = vmatpush3.msra.mxu0 %v349_v16  ;;  %797 = vmatprep.subr.mxu1 %v349_v16 }
  0x22   : > { %753 = vmatprep.subr.mxu0 %v348_v20  ;;  %813 = vmatpush3.msra.mxu1 %v349_v16  ;;  %v327_v16 = vadd.f32 %v919_v9, %v304_v8 }
  0x23   : > { %754 = vmatpush3.msra.mxu0 %v348_v20  ;;  %798 = vmatprep.subr.mxu1 %v348_v20 }
  0x24   : > { %755 = vmatprep.subr.mxu0 %v347_v24  ;;  %814 = vmatpush3.msra.mxu1 %v348_v20  ;;  %v343_v4 = vmax.f32 %v327_v16, 0.0 }
  0x25   : > { %756 = vmatpush3.msra.mxu0 %v347_v24  ;;  %799 = vmatprep.subr.mxu1 %v347_v24 }
  0x26   : > { %757 = vmatprep.subr.mxu0 %v346_v30  ;;  %815 = vmatpush3.msra.mxu1 %v347_v24 }
  0x27   : > { %758 = vmatpush3.msra.mxu0 %v346_v30  ;;  %800 = vmatprep.subr.mxu1 %v346_v30 }
  0x28   : > { %759 = vmatprep.subr.mxu0 %v345_v36  ;;  %816 = vmatpush3.msra.mxu1 %v346_v30 }
  0x29   : > { %760 = vmatpush3.msra.mxu0 %v345_v36  ;;  %801 = vmatprep.subr.mxu1 %v345_v36 }
  0x2a   : > { %761 = vmatprep.subr.mxu0 %v344_v44  ;;  %817 = vmatpush3.msra.mxu1 %v345_v36 }
  0x2b   : > { %762 = vmatpush3.msra.mxu0 %v344_v44  ;;  %802 = vmatprep.subr.mxu1 %v344_v44 }
  0x2c   : > { %764 = vmatmul.mubr.f32.vlgmr.msra.gmra.mxu0 %v329_v48  ;;  %818 = vmatpush3.msra.mxu1 %v344_v44 }
  0x2d   : > { %766 = vmatprep.mubr.f32.mxu0 %v330_v52  ;;  %775 = vmatprep.mubr.f32.mxu1 %v336_v56 }
  0x2e   : > { %776 = vmatmul.mubr.f32.vlgmr.msra.gmra.mxu1 %v337_v57 }
  0x2f   : > { %778 = vmatprep.mubr.f32.mxu1 %v338_v60 }
  0x30   : > { %767 = vmatmul.mubr.f32.gmra.mxu0 %v331_v0 }
  0x31   : > { %769 = vmatprep.mubr.f32.mxu0 %v332_v3 }
  0x32   : > { %779 = vmatmul.mubr.f32.gmra.mxu1 %v339_v6 }
  0x33   : > { %781 = vmatprep.mubr.f32.mxu1 %v340_v10 }
  0x34   : > { %770 = vmatmul.mubr.f32.gmra.mxu0 %v333_v12 }
  0x35   : > { %772 = vmatprep.mubr.f32.mxu0 %v334_v14 }
  0x36   : > { %782 = vmatmul.mubr.f32.gmra.mxu1 %v341_v15 }
  0x37   : > { %784 = vmatprep.mubr.f32.mxu1 %v342_v17 }
  0x38   : > { %773 = vmatmul.mubr.f32.gmra.mxu0 %v335_v18 }
  0x3a   : > { %785 = vmatmul.mubr.f32.gmra.mxu1 %v343_v4 }
  0xec   : > { %v765_v9 = vpop.f32.mrf.mxu0 }
  0xed   : > { %v439_v20 = vadd.f32 %v765_v9, %v1000_v19 }
  0xee   : > { %v433_v21 = vpop.f32.mrf.mxu0  ;;  %v777_v22 = vpop.f32.mrf.mxu1 }
  0xef   : > { %582 = vst [vmem:[%s1007_s26 + $0x8] sm:$0xff] %v439_v20  ;;  %v434_v23 = vadd.f32 %v1000_v19, %v433_v21  ;;  %v1013_v24 = vadd.f32 %v777_v22, %v1000_v19  ;;  %v534_v32 = vmul.f32 %v439_v20, %v439_v20 }
  0xf0   : > { %v768_v25 = vpop.f32.mrf.mxu0  ;;  %v473_v26 = vpop.f32.mrf.mxu1 }
  0xf1   : > { %v533_v27 = vmul.f32 %v434_v23, %v434_v23  ;;  %581 = vst [vmem:[%s1007_s26] sm:$0xff] %v434_v23  ;;  %v449_v28 = vadd.f32 %v768_v25, %v1000_v19  ;;  %590 = vst [vmem:[%s1007_s26 + $0x48] sm:$0xff] %v1013_v24  ;;  %v474_v30 = vadd.f32 %v1000_v19, %v473_v26 }
  0xf2   : > { %v443_v29 = vpop.f32.mrf.mxu0  ;;  %v780_v31 = vpop.f32.mrf.mxu1  ;;  %v512_v33 = vadd.f32 %v439_v20, %v434_v23  ;;  %v542_v13 = vmul.f32 %v1013_v24, %v1013_v24 }
  0xf3   : > { %584 = vst [vmem:[%s1007_s26 + $0x18] sm:$0xff] %v449_v28  ;;  %v444_v34 = vadd.f32 %v1000_v19, %v443_v29  ;;  %v489_v35 = vadd.f32 %v780_v31, %v1000_v19  ;;  %589 = vst [vmem:[%s1007_s26 + $0x40] sm:$0xff] %v474_v30  ;;  %v549_v38 = vadd.f32 %v534_v32, %v533_v27 }
  0xf4   : > { %v771_v36 = vpop.f32.mrf.mxu0  ;;  %v483_v37 = vpop.f32.mrf.mxu1  ;;  %v536_v45 = vmul.f32 %v449_v28, %v449_v28  ;;  %v541_v11 = vmul.f32 %v474_v30, %v474_v30 }
  0xf5   : > { %v513_v39 = vadd.f32 %v512_v33, %v444_v34  ;;  %v535_v40 = vmul.f32 %v444_v34, %v444_v34  ;;  %583 = vst [vmem:[%s1007_s26 + $0x10] sm:$0xff] %v444_v34  ;;  %v459_v41 = vadd.f32 %v771_v36, %v1000_v19  ;;  %592 = vst [vmem:[%s1007_s26 + $0x58] sm:$0xff] %v489_v35 }
  0xf6   : > { %v453_v42 = vpop.f32.mrf.mxu0  ;;  %v484_v43 = vadd.f32 %v1000_v19, %v483_v37  ;;  %v783_v44 = vpop.f32.mrf.mxu1  ;;  %v544_v4 = vmul.f32 %v489_v35, %v489_v35  ;;  %v570_v37 = vlaneseq }
  0xf7   : > { %v550_v46 = vadd.f32 %v549_v38, %v535_v40  ;;  %586 = vst [vmem:[%s1007_s26 + $0x28] sm:$0xff] %v459_v41  ;;  %v454_v47 = vadd.f32 %v1000_v19, %v453_v42  ;;  %v514_v48 = vadd.f32 %v513_v39, %v449_v28  ;;  %v499_v50 = vadd.f32 %v783_v44, %v1000_v19 }
  0xf8   : > { %v774_v49 = vpop.f32.mrf.mxu0  ;;  %591 = vst [vmem:[%s1007_s26 + $0x50] sm:$0xff] %v484_v43  ;;  %v493_v51 = vpop.f32.mrf.mxu1  ;;  %v538_v59 = vmul.f32 %v459_v41, %v459_v41  ;;  %v543_v17 = vmul.f32 %v484_v43, %v484_v43 }
  0xf9   : > { %v515_v52 = vadd.f32 %v514_v48, %v454_v47  ;;  %v537_v53 = vmul.f32 %v454_v47, %v454_v47  ;;  %v551_v54 = vadd.f32 %v550_v46, %v536_v45  ;;  %585 = vst [vmem:[%s1007_s26 + $0x20] sm:$0xff] %v454_v47  ;;  %v469_v55 = vadd.f32 %v774_v49, %v1000_v19 }
  0xfa   : > { %v463_v56 = vpop.f32.mrf.mxu0  ;;  %594 = vst [vmem:[%s1007_s26 + $0x68] sm:$0xff] %v499_v50  ;;  %v494_v57 = vadd.f32 %v1000_v19, %v493_v51  ;;  %v786_v58 = vpop.f32.mrf.mxu1  ;;  %v546_v23 = vmul.f32 %v499_v50, %v499_v50 }
  0xfb   : > { %v552_v60 = vadd.f32 %v551_v54, %v537_v53  ;;  %588 = vst [vmem:[%s1007_s26 + $0x38] sm:$0xff] %v469_v55  ;;  %v464_v61 = vadd.f32 %v1000_v19, %v463_v56  ;;  %v516_v62 = vadd.f32 %v515_v52, %v459_v41  ;;  %v509_v63 = vadd.f32 %v786_v58, %v1000_v19 }
  0xfc   : > { %593 = vst [vmem:[%s1007_s26 + $0x60] sm:$0xff] %v494_v57  ;;  %v503_v0 = vpop.f32.mrf.mxu1  ;;  %v540_v6 = vmul.f32 %v469_v55, %v469_v55  ;;  %v545_v21 = vmul.f32 %v494_v57, %v494_v57  ;;  %v571_v41 = vshrl.u32 %v570_v37, 7 }
  0xfd   : > { %v517_v1 = vadd.f32 %v516_v62, %v464_v61  ;;  %v539_v2 = vmul.f32 %v464_v61, %v464_v61  ;;  %v553_v3 = vadd.f32 %v552_v60, %v538_v59  ;;  %587 = vst [vmem:[%s1007_s26 + $0x30] sm:$0xff] %v464_v61  ;;  %v504_v5 = vadd.f32 %v1000_v19, %v503_v0 }
  0xfe   : > { %596 = vst [vmem:[%s1007_s26 + $0x78] sm:$0xff] %v509_v63  ;;  %vm573_vm0 = vcmp.eq.s32.totalorder %v571_v41, 1  ;;  %vm572_vm1 = vcmp.eq.s32.totalorder %v571_v41, 0 }
  0xff   : > { %v554_v7 = vadd.f32 %v553_v3, %v539_v2  ;;  %v518_v8 = vadd.f32 %v517_v1, %v469_v55  ;;  %595 = vst [vmem:[%s1007_s26 + $0x70] sm:$0xff] %v504_v5  ;;  %v547_v28 = vmul.f32 %v504_v5, %v504_v5 }
 0x101   : > { %v519_v10 = vadd.f32 %v518_v8, %v474_v30  ;;  %v555_v12 = vadd.f32 %v554_v7, %v540_v6  ;;  %v548_v30 = vmul.f32 %v509_v63, %v509_v63 }
 0x103   : > { %v556_v14 = vadd.f32 %v555_v12, %v541_v11  ;;  %v520_v15 = vadd.f32 %v519_v10, %v1013_v24 }
 0x105   : > { %v521_v16 = vadd.f32 %v520_v15, %v484_v43  ;;  %v557_v18 = vadd.f32 %v556_v14, %v542_v13 }
 0x107   : > { %v558_v9 = vadd.f32 %v557_v18, %v543_v17  ;;  %v522_v19 = vadd.f32 %v521_v16, %v489_v35 }
 0x109   : > { %v523_v20 = vadd.f32 %v522_v19, %v494_v57  ;;  %v559_v22 = vadd.f32 %v558_v9, %v544_v4 }
 0x10b   : > { %v560_v25 = vadd.f32 %v559_v22, %v545_v21  ;;  %v524_v26 = vadd.f32 %v523_v20, %v499_v50 }
 0x10d   : > { %v525_v27 = vadd.f32 %v524_v26, %v504_v5  ;;  %v561_v29 = vadd.f32 %v560_v25, %v546_v23 }
 0x10f   : > { %v526_v31 = vadd.f32 %v525_v27, %v509_v63  ;;  %v562_v24 = vadd.f32 %v561_v29, %v547_v28 }
 0x111   : > { %v527_v32 = vrot.slane %v526_v31, 4  ;;  %v563_v33 = vadd.f32 %v562_v24, %v548_v30 }
 0x113   : > { %v528_v34 = vadd.f32 %v527_v32, %v526_v31  ;;  %v564_v36 = vrot.slane %v563_v33, 4 }
 0x115   : > { %v529_v35 = vrot.slane %v528_v34, 2  ;;  %v565_v38 = vadd.f32 %v564_v36, %v563_v33 }
 0x117   : > { %v530_v39 = vadd.f32 %v529_v35, %v528_v34  ;;  %v566_v40 = vrot.slane %v565_v38, 2 }
 0x119   : > { %v567_v42 = vadd.f32 %v566_v40, %v565_v38  ;;  %v531_v43 = vrot.slane %v530_v39, 1 }
 0x11b   : > { %v568_v44 = vrot.slane %v567_v42, 1  ;;  %v532_v46 = vadd.f32 %v531_v43, %v530_v39 }
 0x11d   : > { %v569_v45 = vadd.f32 %v568_v44, %v567_v42 }
 0x11f   : > { %v576_v47 = vsel %vm573_vm0, %v569_v45, 0.0 }
 0x120   : > { %v579_v48 = vsel %vm572_vm1, %v532_v46, %v576_v47 }
 0x121   : > { %580 = vst [vmem:[%s265_s29] sm:$0xff] %v579_v48 }
 0x122 PF: > { %s17_s21 = sadd.s32 1, %s833_s21  }
 0x123   : > { %p14_p5 = scmp.ge.s32.totalorder %s17_s21, 6  }
 0x125   :  { %16 = sbr.rel (!%p14_p5) target bundleno = 1 (0x1), region = 82 }

// kernel: residual_block_pallas.5
= control target key start
LH: loop header
LB: loop body
LE: loop exit
PB: predicated region body
PF: predicated region fallthrough
CT: control target
= control target key end

     0   :  { %s882_s21 = smov 0   ;;  %s1120_s0 = inlined_call_operand.vmem [shape: f32[512,128], index: 0, kind: input, shape index: {}]   ;;  %s1121_s1 = inlined_call_operand.vmem [shape: f32[512,128], index: 1, kind: input, shape index: {}]   ;;  %s1122_s2 = inlined_call_operand.vmem [shape: f32[1,128], index: 2, kind: input, shape index: {}]   ;;  %s1123_s3 = inlined_call_operand.vmem [shape: f32[1,128], index: 3, kind: input, shape index: {}]   ;;  %s1124_s4 = inlined_call_operand.vmem [shape: f32[256,128], index: 4, kind: input, shape index: {}]   ;;  %s1125_s5 = inlined_call_operand.vmem [shape: f32[1,128], index: 5, kind: input, shape index: {}]   ;;  %s1126_s6 = inlined_call_operand.vmem [shape: f32[512,128], index: 6, kind: output, shape index: {}]  }
   0x1 LB: > { %s703_s22 = sadd.s32 4294967295, %s845_s21   ;;  %p707_p0 = scmp.ge.s32.totalorder %s845_s21, 1  ;;  %s845_s21 = sphi %s882_s21, %s16_s21  }
   0x2   : > { %p224_p1 = scmp.lt.s32.totalorder %s845_s21, 5 }
   0x4   : > { %p225_p2 = pnand %p707_p0, %p224_p1 }
   0x5   : > { %s708_s7 = sshll.u32 (!%p225_p2), %s703_s22, 4 }
   0x6   : > { %228 = sbr.rel (%p225_p2) target bundleno = 273 (0x111), region = 44  ;;  %p260_p3 = scmp.lt.s32.totalorder (!%p225_p2), %s708_s7, 63 }
   0xb   : > { %v466_v0 = vld [vmem:[%s1124_s4 + $0xf8] sm:$0xff]  ;;  %v465_v2 = vld [vmem:[%s1124_s4 + $0xf0] sm:$0xff]  ;;  %v464_v4 = vld [vmem:[%s1124_s4 + $0xe8] sm:$0xff]  ;;  %s1128_s7 = smov (!%p260_p3, %s708_s7), 63 }
   0xc   : > { %v450_v1 = vld [vmem:[%s1124_s4 + $0x78] sm:$0xff]  ;;  %719 = vmatprep.subr.mxu0 %v466_v0  ;;  %799 = vmatprep.subr.mxu1 %v466_v0  ;;  %v449_v3 = vld [vmem:[%s1124_s4 + $0x70] sm:$0xff]  ;;  %v448_v5 = vld [vmem:[%s1124_s4 + $0x68] sm:$0xff]  ;;  %s935_s8 = sshll.u32 %s1128_s7, 3 }
   0xd   : > { %720 = vmatpush3.msra.mxu0 %v450_v1  ;;  %815 = vmatpush3.msra.mxu1 %v450_v1  ;;  %v463_v6 = vld [vmem:[%s1124_s4 + $0xe0] sm:$0xff]  ;;  %v462_v8 = vld [vmem:[%s1124_s4 + $0xd8] sm:$0xff]  ;;  %v461_v10 = vld [vmem:[%s1124_s4 + $0xd0] sm:$0xff]  ;;  %s950_s16 = scalar_lea.vmem %s1120_s0, %s935_s8  ;;  %s1013_s27 = scalar_lea.vmem %s1121_s1, %s935_s8 }
   0xe   : > { %721 = vmatprep.subr.mxu0 %v465_v2  ;;  %800 = vmatprep.subr.mxu1 %v465_v2  ;;  %v447_v7 = vld [vmem:[%s1124_s4 + $0x60] sm:$0xff]  ;;  %v446_v9 = vld [vmem:[%s1124_s4 + $0x58] sm:$0xff]  ;;  %v445_v11 = vld [vmem:[%s1124_s4 + $0x50] sm:$0xff]  ;;  %s1083_s13 = scalar_lea.vmem %s1126_s6, %s935_s8 }
   0xf   : > { %722 = vmatpush3.msra.mxu0 %v449_v3  ;;  %816 = vmatpush3.msra.mxu1 %v449_v3  ;;  %v460_v12 = vld [vmem:[%s1124_s4 + $0xc8] sm:$0xff]  ;;  %v459_v14 = vld [vmem:[%s1124_s4 + $0xc0] sm:$0xff]  ;;  %v458_v16 = vld [vmem:[%s1124_s4 + $0xb8] sm:$0xff] }
  0x10   : > { %723 = vmatprep.subr.mxu0 %v464_v4  ;;  %801 = vmatprep.subr.mxu1 %v464_v4  ;;  %v444_v13 = vld [vmem:[%s1124_s4 + $0x48] sm:$0xff]  ;;  %v443_v15 = vld [vmem:[%s1124_s4 + $0x40] sm:$0xff]  ;;  %v442_v17 = vld [vmem:[%s1124_s4 + $0x38] sm:$0xff] }
  0x11   : > { %724 = vmatpush3.msra.mxu0 %v448_v5  ;;  %817 = vmatpush3.msra.mxu1 %v448_v5  ;;  %v457_v18 = vld [vmem:[%s1124_s4 + $0xb0] sm:$0xff]  ;;  %v456_v20 = vld [vmem:[%s1124_s4 + $0xa8] sm:$0xff]  ;;  %v277_v21 = vld [vmem:[%s950_s16] sm:$0xff] }
  0x12   : > { %725 = vmatprep.subr.mxu0 %v463_v6  ;;  %802 = vmatprep.subr.mxu1 %v463_v6  ;;  %v441_v19 = vld [vmem:[%s1124_s4 + $0x30] sm:$0xff]  ;;  %v965_v22 = vld [vmem:[%s1122_s2] ss:$0 sm:$0xff]  ;;  %v440_v23 = vld [vmem:[%s1124_s4 + $0x28] sm:$0xff] }
  0x13   : > { %726 = vmatpush3.msra.mxu0 %v447_v7  ;;  %818 = vmatpush3.msra.mxu1 %v447_v7  ;;  %v285_v24 = vld [vmem:[%s950_s16 + $0x40] sm:$0xff]  ;;  %v300_v27 = vmul.f32 %v965_v22, %v277_v21  ;;  %v454_v28 = vld [vmem:[%s1124_s4 + $0x98] sm:$0xff]  ;;  %v278_v32 = vld [vmem:[%s950_s16 + $0x8] sm:$0xff] }
  0x14   : > { %727 = vmatprep.subr.mxu0 %v462_v8  ;;  %803 = vmatprep.subr.mxu1 %v462_v8  ;;  %v455_v25 = vld [vmem:[%s1124_s4 + $0xa0] sm:$0xff]  ;;  %v308_v30 = vmul.f32 %v965_v22, %v285_v24  ;;  %v438_v31 = vld [vmem:[%s1124_s4 + $0x18] sm:$0xff]  ;;  %v286_v33 = vld [vmem:[%s950_s16 + $0x48] sm:$0xff]  ;;  %v301_v39 = vmul.f32 %v965_v22, %v278_v32 }
  0x15   : > { %728 = vmatpush3.msra.mxu0 %v446_v9  ;;  %819 = vmatpush3.msra.mxu1 %v446_v9  ;;  %v439_v26 = vld [vmem:[%s1124_s4 + $0x20] sm:$0xff]  ;;  %v453_v34 = vld [vmem:[%s1124_s4 + $0x90] sm:$0xff]  ;;  %v452_v37 = vld [vmem:[%s1124_s4 + $0x88] sm:$0xff]  ;;  %v309_v40 = vmul.f32 %v965_v22, %v286_v33 }
  0x16   : > { %729 = vmatprep.subr.mxu0 %v461_v10  ;;  %804 = vmatprep.subr.mxu1 %v461_v10  ;;  %v984_v29 = vld [vmem:[%s1123_s3] ss:$0 sm:$0xff]  ;;  %v437_v35 = vld [vmem:[%s1124_s4 + $0x10] sm:$0xff]  ;;  %v436_v42 = vld [vmem:[%s1124_s4 + $0x8] sm:$0xff] }
  0x17   : > { %730 = vmatpush3.msra.mxu0 %v445_v11  ;;  %820 = vmatpush3.msra.mxu1 %v445_v11  ;;  %v323_v36 = vadd.f32 %v984_v29, %v300_v27  ;;  %v331_v38 = vadd.f32 %v984_v29, %v308_v30  ;;  %v279_v41 = vld [vmem:[%s950_s16 + $0x10] sm:$0xff]  ;;  %v451_v44 = vld [vmem:[%s1124_s4 + $0x80] sm:$0xff]  ;;  %v324_v51 = vadd.f32 %v984_v29, %v301_v39  ;;  %v280_v54 = vld [vmem:[%s950_s16 + $0x18] sm:$0xff] }
  0x18   : > { %731 = vmatprep.subr.mxu0 %v460_v12  ;;  %805 = vmatprep.subr.mxu1 %v460_v12  ;;  %v287_v43 = vld [vmem:[%s950_s16 + $0x50] sm:$0xff]  ;;  %v435_v45 = vld [vmem:[%s1124_s4] sm:$0xff]  ;;  %v302_v47 = vmul.f32 %v965_v22, %v279_v41  ;;  %v332_v52 = vadd.f32 %v984_v29, %v309_v40  ;;  %v288_v55 = vld [vmem:[%s950_s16 + $0x58] sm:$0xff]  ;;  %v303_v59 = vmul.f32 %v965_v22, %v280_v54 }
  0x19   : > { %732 = vmatpush3.msra.mxu0 %v444_v13  ;;  %821 = vmatpush3.msra.mxu1 %v444_v13  ;;  %v339_v46 = vmax.f32 %v323_v36, 0.0  ;;  %v371_v48 = vld [vmem:[%s1013_s27] sm:$0xff]  ;;  %v347_v50 = vmax.f32 %v331_v38, 0.0  ;;  %v310_v53 = vmul.f32 %v965_v22, %v287_v43  ;;  %v372_v56 = vld [vmem:[%s1013_s27 + $0x8] sm:$0xff]  ;;  %v340_v60 = vmax.f32 %v324_v51, 0.0  ;;  %v373_v2 = vld [vmem:[%s1013_s27 + $0x10] sm:$0xff] }
  0x1a   : > { %733 = vmatprep.subr.mxu0 %v459_v14  ;;  %806 = vmatprep.subr.mxu1 %v459_v14  ;;  %v379_v49 = vld [vmem:[%s1013_s27 + $0x40] sm:$0xff]  ;;  %v380_v57 = vld [vmem:[%s1013_s27 + $0x48] sm:$0xff]  ;;  %v325_v58 = vadd.f32 %v984_v29, %v302_v47  ;;  %v348_v61 = vmax.f32 %v332_v52, 0.0  ;;  %v311_v63 = vmul.f32 %v965_v22, %v288_v55  ;;  %v381_v3 = vld [vmem:[%s1013_s27 + $0x50] sm:$0xff]  ;;  %v326_v7 = vadd.f32 %v984_v29, %v303_v59 }
  0x1b   : > { %734 = vmatpush3.msra.mxu0 %v443_v15  ;;  %822 = vmatpush3.msra.mxu1 %v443_v15  ;;  %v333_v62 = vadd.f32 %v984_v29, %v310_v53  ;;  %v281_v0 = vld [vmem:[%s950_s16 + $0x20] sm:$0xff]  ;;  %v282_v10 = vld [vmem:[%s950_s16 + $0x28] sm:$0xff]  ;;  %v374_v12 = vld [vmem:[%s1013_s27 + $0x18] sm:$0xff] }
  0x1c   : > { %735 = vmatprep.subr.mxu0 %v458_v16  ;;  %807 = vmatprep.subr.mxu1 %v458_v16  ;;  %v289_v1 = vld [vmem:[%s950_s16 + $0x60] sm:$0xff]  ;;  %v341_v4 = vmax.f32 %v325_v58, 0.0  ;;  %v304_v5 = vmul.f32 %v965_v22, %v281_v0  ;;  %v334_v8 = vadd.f32 %v984_v29, %v311_v63  ;;  %v290_v11 = vld [vmem:[%s950_s16 + $0x68] sm:$0xff]  ;;  %v382_v13 = vld [vmem:[%s1013_s27 + $0x58] sm:$0xff]  ;;  %v305_v15 = vmul.f32 %v965_v22, %v282_v10 }
  0x1d   : > { %736 = vmatpush3.msra.mxu0 %v442_v17  ;;  %823 = vmatpush3.msra.mxu1 %v442_v17  ;;  %v349_v6 = vmax.f32 %v333_v62, 0.0  ;;  %v312_v9 = vmul.f32 %v965_v22, %v289_v1  ;;  %v342_v16 = vmax.f32 %v326_v7, 0.0  ;;  %v291_v21 = vld [vmem:[%s950_s16 + $0x70] sm:$0xff]  ;;  %v383_v24 = vld [vmem:[%s1013_s27 + $0x60] sm:$0xff]  ;;  %v284_v32 = vld [vmem:[%s950_s16 + $0x38] sm:$0xff] }
  0x1e   : > { %737 = vmatprep.subr.mxu0 %v457_v18  ;;  %808 = vmatprep.subr.mxu1 %v457_v18  ;;  %v327_v14 = vadd.f32 %v984_v29, %v304_v5  ;;  %v350_v17 = vmax.f32 %v334_v8, 0.0  ;;  %v292_v33 = vld [vmem:[%s950_s16 + $0x78] sm:$0xff]  ;;  %v385_v43 = vld [vmem:[%s1013_s27 + $0x70] sm:$0xff]  ;;  %v1077_v53 = vld [vmem:[%s1125_s5] ss:$0 sm:$0xff] }
  0x1f   : > { %738 = vmatpush3.msra.mxu0 %v441_v19  ;;  %824 = vmatpush3.msra.mxu1 %v441_v19  ;;  %v335_v18 = vadd.f32 %v984_v29, %v312_v9  ;;  %v313_v19 = vmul.f32 %v965_v22, %v290_v11  ;;  %v315_v41 = vmul.f32 %v965_v22, %v292_v33 }
  0x20   : > { %739 = vmatprep.subr.mxu0 %v456_v20  ;;  %809 = vmatprep.subr.mxu1 %v456_v20  ;;  %v283_v20 = vld [vmem:[%s950_s16 + $0x30] sm:$0xff] }
  0x21   : > { %740 = vmatpush3.msra.mxu0 %v440_v23  ;;  %825 = vmatpush3.msra.mxu1 %v440_v23  ;;  %v375_v23 = vld [vmem:[%s1013_s27 + $0x20] sm:$0xff]  ;;  %v351_v27 = vmax.f32 %v335_v18, 0.0  ;;  %v336_v30 = vadd.f32 %v984_v29, %v313_v19  ;;  %v338_v47 = vadd.f32 %v984_v29, %v315_v41 }
  0x22   : > { %741 = vmatprep.subr.mxu0 %v455_v25  ;;  %810 = vmatprep.subr.mxu1 %v455_v25  ;;  %v343_v25 = vmax.f32 %v327_v14, 0.0 }
  0x23   : > { %742 = vmatpush3.msra.mxu0 %v439_v26  ;;  %826 = vmatpush3.msra.mxu1 %v439_v26  ;;  %v306_v26 = vmul.f32 %v965_v22, %v283_v20  ;;  %v352_v39 = vmax.f32 %v336_v30, 0.0 }
  0x24   : > { %743 = vmatprep.subr.mxu0 %v454_v28  ;;  %811 = vmatprep.subr.mxu1 %v454_v28  ;;  %v328_v28 = vadd.f32 %v984_v29, %v305_v15 }
  0x25   : > { %744 = vmatpush3.msra.mxu0 %v438_v31  ;;  %827 = vmatpush3.msra.mxu1 %v438_v31  ;;  %v314_v31 = vmul.f32 %v965_v22, %v291_v21  ;;  %v329_v36 = vadd.f32 %v984_v29, %v306_v26 }
  0x26   : > { %745 = vmatprep.subr.mxu0 %v453_v34  ;;  %812 = vmatprep.subr.mxu1 %v453_v34  ;;  %v376_v34 = vld [vmem:[%s1013_s27 + $0x28] sm:$0xff]  ;;  %v344_v38 = vmax.f32 %v328_v28, 0.0 }
  0x27   : > { %746 = vmatpush3.msra.mxu0 %v437_v35  ;;  %828 = vmatpush3.msra.mxu1 %v437_v35  ;;  %v384_v35 = vld [vmem:[%s1013_s27 + $0x68] sm:$0xff]  ;;  %v337_v40 = vadd.f32 %v984_v29, %v314_v31 }
  0x28   : > { %747 = vmatprep.subr.mxu0 %v452_v37  ;;  %813 = vmatprep.subr.mxu1 %v452_v37  ;;  %v307_v37 = vmul.f32 %v965_v22, %v284_v32 }
  0x29   : > { %748 = vmatpush3.msra.mxu0 %v436_v42  ;;  %829 = vmatpush3.msra.mxu1 %v436_v42  ;;  %v377_v42 = vld [vmem:[%s1013_s27 + $0x30] sm:$0xff] }
  0x2a   : > { %749 = vmatprep.subr.mxu0 %v451_v44  ;;  %814 = vmatprep.subr.mxu1 %v451_v44  ;;  %v345_v44 = vmax.f32 %v329_v36, 0.0 }
  0x2b   : > { %750 = vmatpush3.msra.mxu0 %v435_v45  ;;  %830 = vmatpush3.msra.mxu1 %v435_v45  ;;  %v353_v45 = vmax.f32 %v337_v40, 0.0 }
  0x2c   : > { %538 = vmatprep.mubr.f32.mxu0 %v371_v48  ;;  %578 = vmatprep.mubr.f32.mxu1 %v379_v49  ;;  %v378_v48 = vld [vmem:[%s1013_s27 + $0x38] sm:$0xff] }
  0x2d   : > { %539 = vmatmul.mubr.f32.vlgmr.msra.gmra.mxu0 %v339_v46  ;;  %579 = vmatmul.mubr.f32.vlgmr.msra.gmra.mxu1 %v347_v50  ;;  %v330_v46 = vadd.f32 %v984_v29, %v307_v37  ;;  %v386_v49 = vld [vmem:[%s1013_s27 + $0x78] sm:$0xff]  ;;  %v354_v50 = vmax.f32 %v338_v47, 0.0 }
  0x2e   : > { %543 = vmatprep.mubr.f32.mxu0 %v372_v56  ;;  %583 = vmatprep.mubr.f32.mxu1 %v380_v57 }
  0x2f   : > { %v346_v22 = vmax.f32 %v330_v46, 0.0 }
  0x31   : > { %544 = vmatmul.mubr.f32.gmra.mxu0 %v340_v60  ;;  %584 = vmatmul.mubr.f32.gmra.mxu1 %v348_v61 }
  0x32   : > { %548 = vmatprep.mubr.f32.mxu0 %v373_v2  ;;  %588 = vmatprep.mubr.f32.mxu1 %v381_v3 }
  0x35   : > { %549 = vmatmul.mubr.f32.gmra.mxu0 %v341_v4  ;;  %589 = vmatmul.mubr.f32.gmra.mxu1 %v349_v6 }
  0x36   : > { %553 = vmatprep.mubr.f32.mxu0 %v374_v12  ;;  %593 = vmatprep.mubr.f32.mxu1 %v382_v13 }
  0x39   : > { %554 = vmatmul.mubr.f32.gmra.mxu0 %v342_v16  ;;  %594 = vmatmul.mubr.f32.gmra.mxu1 %v350_v17 }
  0x3a   : > { %558 = vmatprep.mubr.f32.mxu0 %v375_v23  ;;  %598 = vmatprep.mubr.f32.mxu1 %v383_v24 }
  0x3d   : > { %559 = vmatmul.mubr.f32.gmra.mxu0 %v343_v25  ;;  %599 = vmatmul.mubr.f32.gmra.mxu1 %v351_v27 }
  0x3e   : > { %563 = vmatprep.mubr.f32.mxu0 %v376_v34  ;;  %603 = vmatprep.mubr.f32.mxu1 %v384_v35 }
  0x41   : > { %564 = vmatmul.mubr.f32.gmra.mxu0 %v344_v38  ;;  %604 = vmatmul.mubr.f32.gmra.mxu1 %v352_v39 }
  0x42   : > { %568 = vmatprep.mubr.f32.mxu0 %v377_v42  ;;  %608 = vmatprep.mubr.f32.mxu1 %v385_v43 }
  0x45   : > { %569 = vmatmul.mubr.f32.gmra.mxu0 %v345_v44  ;;  %609 = vmatmul.mubr.f32.gmra.mxu1 %v353_v45 }
  0x46   : > { %573 = vmatprep.mubr.f32.mxu0 %v378_v48  ;;  %613 = vmatprep.mubr.f32.mxu1 %v386_v49 }
  0x49   : > { %574 = vmatmul.mubr.f32.gmra.mxu0 %v346_v22  ;;  %614 = vmatmul.mubr.f32.gmra.mxu1 %v354_v50 }
  0xed   : > { %v751_v51 = vpop.f32.mrf.mxu0  ;;  %v775_v52 = vpop.f32.mrf.mxu1 }
  0xef   : > { %v752_v29 = vpop.f32.mrf.mxu0  ;;  %v776_v54 = vpop.f32.mrf.mxu1 }
  0xf0   : > { %v753_v55 = vadd.f32 %v752_v29, %v751_v51  ;;  %v777_v56 = vadd.f32 %v776_v54, %v775_v52 }
  0xf1   : > { %v754_v57 = vpop.f32.mrf.mxu0  ;;  %v778_v58 = vpop.f32.mrf.mxu1 }
  0xf2   : > { %v541_v59 = vadd.f32 %v753_v55, %v1077_v53  ;;  %v581_v60 = vadd.f32 %v777_v56, %v1077_v53 }
  0xf3   : > { %v755_v61 = vpop.f32.mrf.mxu0  ;;  %v779_v62 = vpop.f32.mrf.mxu1 }
  0xf4   : > { %619 = vst [vmem:[%s1083_s13] sm:$0xff] %v541_v59  ;;  %627 = vst [vmem:[%s1083_s13 + $0x40] sm:$0xff] %v581_v60  ;;  %v756_v63 = vadd.f32 %v755_v61, %v754_v57  ;;  %v780_v0 = vadd.f32 %v779_v62, %v778_v58 }
  0xf5   : > { %v757_v1 = vpop.f32.mrf.mxu0  ;;  %v781_v2 = vpop.f32.mrf.mxu1 }
  0xf6   : > { %v546_v3 = vadd.f32 %v756_v63, %v1077_v53  ;;  %v586_v4 = vadd.f32 %v780_v0, %v1077_v53 }
  0xf7   : > { %v758_v5 = vpop.f32.mrf.mxu0  ;;  %v782_v6 = vpop.f32.mrf.mxu1 }
  0xf8   : > { %620 = vst [vmem:[%s1083_s13 + $0x8] sm:$0xff] %v546_v3  ;;  %628 = vst [vmem:[%s1083_s13 + $0x48] sm:$0xff] %v586_v4  ;;  %v759_v7 = vadd.f32 %v758_v5, %v757_v1  ;;  %v783_v8 = vadd.f32 %v782_v6, %v781_v2 }
  0xf9   : > { %v760_v9 = vpop.f32.mrf.mxu0  ;;  %v784_v10 = vpop.f32.mrf.mxu1 }
  0xfa   : > { %v551_v11 = vadd.f32 %v759_v7, %v1077_v53  ;;  %v591_v12 = vadd.f32 %v783_v8, %v1077_v53 }
  0xfb   : > { %v761_v13 = vpop.f32.mrf.mxu0  ;;  %v785_v14 = vpop.f32.mrf.mxu1 }
  0xfc   : > { %621 = vst [vmem:[%s1083_s13 + $0x10] sm:$0xff] %v551_v11  ;;  %629 = vst [vmem:[%s1083_s13 + $0x50] sm:$0xff] %v591_v12  ;;  %v762_v15 = vadd.f32 %v761_v13, %v760_v9  ;;  %v786_v16 = vadd.f32 %v785_v14, %v784_v10 }
  0xfd   : > { %v763_v17 = vpop.f32.mrf.mxu0  ;;  %v787_v18 = vpop.f32.mrf.mxu1 }
  0xfe   : > { %v556_v19 = vadd.f32 %v762_v15, %v1077_v53  ;;  %v596_v20 = vadd.f32 %v786_v16, %v1077_v53 }
  0xff   : > { %v764_v21 = vpop.f32.mrf.mxu0  ;;  %v788_v23 = vpop.f32.mrf.mxu1 }
 0x100   : > { %622 = vst [vmem:[%s1083_s13 + $0x18] sm:$0xff] %v556_v19  ;;  %630 = vst [vmem:[%s1083_s13 + $0x58] sm:$0xff] %v596_v20  ;;  %v765_v24 = vadd.f32 %v764_v21, %v763_v17  ;;  %v789_v25 = vadd.f32 %v788_v23, %v787_v18 }
 0x101   : > { %v766_v26 = vpop.f32.mrf.mxu0  ;;  %v790_v27 = vpop.f32.mrf.mxu1 }
 0x102   : > { %v561_v28 = vadd.f32 %v765_v24, %v1077_v53  ;;  %v601_v30 = vadd.f32 %v789_v25, %v1077_v53 }
 0x103   : > { %v767_v31 = vpop.f32.mrf.mxu0  ;;  %v791_v32 = vpop.f32.mrf.mxu1 }
 0x104   : > { %623 = vst [vmem:[%s1083_s13 + $0x20] sm:$0xff] %v561_v28  ;;  %631 = vst [vmem:[%s1083_s13 + $0x60] sm:$0xff] %v601_v30  ;;  %v768_v33 = vadd.f32 %v767_v31, %v766_v26  ;;  %v792_v34 = vadd.f32 %v791_v32, %v790_v27 }
 0x105   : > { %v769_v35 = vpop.f32.mrf.mxu0  ;;  %v793_v36 = vpop.f32.mrf.mxu1 }
 0x106   : > { %v566_v37 = vadd.f32 %v768_v33, %v1077_v53  ;;  %v606_v38 = vadd.f32 %v792_v34, %v1077_v53 }
 0x107   : > { %v770_v39 = vpop.f32.mrf.mxu0  ;;  %v794_v40 = vpop.f32.mrf.mxu1 }
 0x108   : > { %624 = vst [vmem:[%s1083_s13 + $0x28] sm:$0xff] %v566_v37  ;;  %632 = vst [vmem:[%s1083_s13 + $0x68] sm:$0xff] %v606_v38  ;;  %v771_v41 = vadd.f32 %v770_v39, %v769_v35  ;;  %v795_v42 = vadd.f32 %v794_v40, %v793_v36 }
 0x109   : > { %v772_v43 = vpop.f32.mrf.mxu0  ;;  %v796_v44 = vpop.f32.mrf.mxu1 }
 0x10a   : > { %v571_v45 = vadd.f32 %v771_v41, %v1077_v53  ;;  %v611_v46 = vadd.f32 %v795_v42, %v1077_v53 }
 0x10b   : > { %v773_v47 = vpop.f32.mrf.mxu0  ;;  %v797_v48 = vpop.f32.mrf.mxu1 }
 0x10c   : > { %625 = vst [vmem:[%s1083_s13 + $0x30] sm:$0xff] %v571_v45  ;;  %633 = vst [vmem:[%s1083_s13 + $0x70] sm:$0xff] %v611_v46  ;;  %v774_v49 = vadd.f32 %v773_v47, %v772_v43  ;;  %v798_v22 = vadd.f32 %v797_v48, %v796_v44 }
 0x10e   : > { %v576_v50 = vadd.f32 %v774_v49, %v1077_v53  ;;  %v616_v51 = vadd.f32 %v798_v22, %v1077_v53 }
 0x110   : > { %626 = vst [vmem:[%s1083_s13 + $0x38] sm:$0xff] %v576_v50  ;;  %634 = vst [vmem:[%s1083_s13 + $0x78] sm:$0xff] %v616_v51 }
 0x111 PF: > { %s16_s21 = sadd.s32 1, %s845_s21  }
 0x112   : > { %p13_p4 = scmp.ge.s32.totalorder %s16_s21, 6  }
 0x114   :  { %15 = sbr.rel (!%p13_p4) target bundleno = 1 (0x1), region = 77 }

// kernel: residual_block_pallas.4
= control target key start
LH: loop header
LB: loop body
LE: loop exit
PB: predicated region body
PF: predicated region fallthrough
CT: control target
= control target key end

     0   :  { %s5412_s21 = smov 0   ;;  %s7412_s0 = inlined_call_operand.vmem [shape: f32[2,16,16,128], index: 0, kind: input, shape index: {}]   ;;  %s7413_s1 = inlined_call_operand.vmem [shape: f32[1,128], index: 1, kind: input, shape index: {}]   ;;  %s7414_s2 = inlined_call_operand.vmem [shape: f32[1,128], index: 2, kind: input, shape index: {}]   ;;  %s7415_s3 = inlined_call_operand.vmem [shape: f32[9,128,128], index: 3, kind: input, shape index: {}]   ;;  %s7416_s4 = inlined_call_operand.vmem [shape: f32[1,128], index: 4, kind: input, shape index: {}]   ;;  %s7417_s5 = inlined_call_operand.vmem [shape: f32[2,16,16,128], index: 5, kind: output, shape index: {0}]   ;;  %s7418_s6 = inlined_call_operand.vmem [shape: f32[2,8,128], index: 6, kind: output, shape index: {1}]  }
   0x1 LB: > { %s3934_s22 = sadd.s32 4294967295, %s5374_s21   ;;  %p3938_p0 = scmp.ge.s32.totalorder %s5374_s21, 1  ;;  %s5374_s21 = sphi %s5412_s21, %s17_s21  }
   0x2   : > { %p215_p1 = scmp.lt.s32.totalorder %s5374_s21, 3 }
   0x4   : > { %p216_p2 = pnand %p3938_p0, %p215_p1 }
   0x6   : > { %219 = sbr.rel (%p216_p2) target bundleno = 570 (0x23a), region = 40 }
   0xb   : > { %v3961_v0 = vld [vmem:[%s7415_s3 + $0xf8] sm:$0xff]  ;;  %v3960_v1 = vld [vmem:[%s7415_s3 + $0xf0] sm:$0xff]  ;;  %v3959_v2 = vld [vmem:[%s7415_s3 + $0xe8] sm:$0xff]  ;;  %p249_p3 = scmp.lt.s32.totalorder %s3934_s22, 1  ;;  %v7419_v46 = vmov 0.0  }
   0xc   : > { %4607 = vmatprep.subr.mxu0 %v3961_v0  ;;  %5327 = vmatprep.subr.mxu1 %v3961_v0  ;;  %v3958_v3 = vld [vmem:[%s7415_s3 + $0xe0] sm:$0xff]  ;;  %v3957_v4 = vld [vmem:[%s7415_s3 + $0xd8] sm:$0xff]  ;;  %v3956_v5 = vld [vmem:[%s7415_s3 + $0xd0] sm:$0xff] }
   0xd   : > { %4608 = vmatpush3.msra.mxu0 %v3961_v0  ;;  %5343 = vmatpush3.msra.mxu1 %v3961_v0  ;;  %s7726_s22 = smov (!%p249_p3, %s3934_s22), 1  ;;  %v3955_v6 = vld [vmem:[%s7415_s3 + $0xc8] sm:$0xff]  ;;  %v3954_v7 = vld [vmem:[%s7415_s3 + $0xc0] sm:$0xff]  ;;  %v3953_v8 = vld [vmem:[%s7415_s3 + $0xb8] sm:$0xff] }
   0xe   : > { %4609 = vmatprep.subr.mxu0 %v3960_v1  ;;  %5328 = vmatprep.subr.mxu1 %v3960_v1  ;;  %s4173_s15 = sshll.u32 %s7726_s22, 8  ;;  %v3952_v9 = vld [vmem:[%s7415_s3 + $0xb0] sm:$0xff]  ;;  %v3951_v10 = vld [vmem:[%s7415_s3 + $0xa8] sm:$0xff]  ;;  %v5466_v11 = vld [vmem:[%s7413_s1] ss:$0 sm:$0xff] }
   0xf   : > { %4610 = vmatpush3.msra.mxu0 %v3960_v1  ;;  %5344 = vmatpush3.msra.mxu1 %v3960_v1  ;;  %s5455_s20 = scalar_lea.vmem %s7412_s0, %s4173_s15  ;;  %v3950_v14 = vld [vmem:[%s7415_s3 + $0xa0] sm:$0xff]  ;;  %v3949_v16 = vld [vmem:[%s7415_s3 + $0x98] sm:$0xff]  ;;  %v3948_v21 = vld [vmem:[%s7415_s3 + $0x90] sm:$0xff]  ;;  %s7277_s7 = scalar_lea.vmem %s7417_s5, %s4173_s15 }
  0x10   : > { %4611 = vmatprep.subr.mxu0 %v3959_v2  ;;  %5329 = vmatprep.subr.mxu1 %v3959_v2  ;;  %v279_v12 = vld [vmem:[%s5455_s20 + $0x70] sm:$0xff]  ;;  %v280_v13 = vld [vmem:[%s5455_s20 + $0x78] sm:$0xff]  ;;  %v5480_v17 = vld [vmem:[%s7414_s2] ss:$0 sm:$0xff]  ;;  %s3943_s15 = sshll.u32 %s7726_s22, 3 }
  0x11   : > { %4612 = vmatpush3.msra.mxu0 %v3959_v2  ;;  %5345 = vmatpush3.msra.mxu1 %v3959_v2  ;;  %v317_v15 = vmul.f32 %v5466_v11, %v279_v12  ;;  %v318_v18 = vmul.f32 %v5466_v11, %v280_v13  ;;  %v265_v19 = vld [vmem:[%s5455_s20] sm:$0xff]  ;;  %v266_v23 = vld [vmem:[%s5455_s20 + $0x8] sm:$0xff]  ;;  %v267_v32 = vld [vmem:[%s5455_s20 + $0x10] sm:$0xff]  ;;  %s262_s9 = scalar_lea.vmem %s7418_s6, %s3943_s15 }
  0x12   : > { %4613 = vmatprep.subr.mxu0 %v3958_v3  ;;  %5330 = vmatprep.subr.mxu1 %v3958_v3  ;;  %v281_v20 = vld [vmem:[%s5455_s20 + $0x80] sm:$0xff]  ;;  %v282_v24 = vld [vmem:[%s5455_s20 + $0x88] sm:$0xff]  ;;  %v303_v27 = vmul.f32 %v5466_v11, %v265_v19  ;;  %v304_v30 = vmul.f32 %v5466_v11, %v266_v23  ;;  %v283_v34 = vld [vmem:[%s5455_s20 + $0x90] sm:$0xff]  ;;  %v305_v39 = vmul.f32 %v5466_v11, %v267_v32 }
  0x13   : > { %4614 = vmatpush3.msra.mxu0 %v3958_v3  ;;  %5346 = vmatpush3.msra.mxu1 %v3958_v3  ;;  %v355_v22 = vadd.f32 %v5480_v17, %v317_v15  ;;  %v3947_v25 = vld [vmem:[%s7415_s3 + $0x88] sm:$0xff]  ;;  %v356_v26 = vadd.f32 %v5480_v17, %v318_v18  ;;  %v319_v28 = vmul.f32 %v5466_v11, %v281_v20  ;;  %v3946_v29 = vld [vmem:[%s7415_s3 + $0x80] sm:$0xff]  ;;  %v268_v38 = vld [vmem:[%s5455_s20 + $0x18] sm:$0xff] }
  0x14   : > { %4615 = vmatprep.subr.mxu0 %v3957_v4  ;;  %5331 = vmatprep.subr.mxu1 %v3957_v4  ;;  %v320_v31 = vmul.f32 %v5466_v11, %v282_v24  ;;  %v341_v36 = vadd.f32 %v5480_v17, %v303_v27  ;;  %v284_v40 = vld [vmem:[%s5455_s20 + $0x98] sm:$0xff]  ;;  %v342_v43 = vadd.f32 %v5480_v17, %v304_v30  ;;  %v698_v48 = vld [vmem:[%s7415_s3 + $0x70] sm:$0xff]  ;;  %v269_v53 = vld [vmem:[%s5455_s20 + $0x20] sm:$0xff] }
  0x15   : > { %4616 = vmatpush3.msra.mxu0 %v3957_v4  ;;  %5347 = vmatpush3.msra.mxu1 %v3957_v4  ;;  %v5503_v33 = vmax.f32 %v355_v22, 0.0  ;;  %v5506_v35 = vmax.f32 %v356_v26, 0.0  ;;  %v357_v37 = vadd.f32 %v5480_v17, %v319_v28  ;;  %v699_v41 = vld [vmem:[%s7415_s3 + $0x78] sm:$0xff]  ;;  %v321_v45 = vmul.f32 %v5466_v11, %v283_v34  ;;  %v3992_v49 = vld [vmem:[%s7415_s3 + $0x170] sm:$0xff]  ;;  %v285_v54 = vld [vmem:[%s5455_s20 + $0xa0] sm:$0xff] }
  0x16   : > { %4617 = vmatprep.subr.mxu0 %v3956_v5  ;;  %5332 = vmatprep.subr.mxu1 %v3956_v5  ;;  %v3993_v42 = vld [vmem:[%s7415_s3 + $0x178] sm:$0xff]  ;;  %v358_v44 = vadd.f32 %v5480_v17, %v320_v31  ;;  %v306_v47 = vmul.f32 %v5466_v11, %v268_v38  ;;  %v5533_v50 = vmax.f32 %v341_v36, 0.0  ;;  %v322_v52 = vmul.f32 %v5466_v11, %v284_v40  ;;  %v270_v59 = vld [vmem:[%s5455_s20 + $0x28] sm:$0xff]  ;;  %v696_v4 = vld [vmem:[%s7415_s3 + $0x60] sm:$0xff] }
  0x17   : > { %4618 = vmatpush3.msra.mxu0 %v3956_v5  ;;  %5348 = vmatpush3.msra.mxu1 %v3956_v5  ;;  %v5535_v51 = vmax.f32 %v357_v37, 0.0  ;;  %v5540_v55 = vmax.f32 %v342_v43, 0.0  ;;  %v343_v57 = vadd.f32 %v5480_v17, %v305_v39  ;;  %v359_v58 = vadd.f32 %v5480_v17, %v321_v45  ;;  %v286_v61 = vld [vmem:[%s5455_s20 + $0xa8] sm:$0xff]  ;;  %v3990_v5 = vld [vmem:[%s7415_s3 + $0x160] sm:$0xff]  ;;  %v288_v19 = vld [vmem:[%s5455_s20 + $0xb8] sm:$0xff] }
  0x18   : > { %4619 = vmatprep.subr.mxu0 %v3955_v6  ;;  %5333 = vmatprep.subr.mxu1 %v3955_v6  ;;  %v5542_v56 = vmax.f32 %v358_v44, 0.0  ;;  %v344_v60 = vadd.f32 %v5480_v17, %v306_v47  ;;  %v697_v62 = vld [vmem:[%s7415_s3 + $0x68] sm:$0xff]  ;;  %v360_v0 = vadd.f32 %v5480_v17, %v322_v52  ;;  %v307_v1 = vmul.f32 %v5466_v11, %v269_v53  ;;  %v695_v20 = vld [vmem:[%s7415_s3 + $0x58] sm:$0xff]  ;;  %v694_v26 = vld [vmem:[%s7415_s3 + $0x50] sm:$0xff] }
  0x19   : > { %4620 = vmatpush3.msra.mxu0 %v3955_v6  ;;  %5349 = vmatpush3.msra.mxu1 %v3955_v6  ;;  %v3991_v63 = vld [vmem:[%s7415_s3 + $0x168] sm:$0xff]  ;;  %v323_v2 = vmul.f32 %v5466_v11, %v285_v54  ;;  %v308_v3 = vmul.f32 %v5466_v11, %v270_v59  ;;  %v5569_v6 = vmax.f32 %v343_v57, 0.0  ;;  %v3988_v27 = vld [vmem:[%s7415_s3 + $0x150] sm:$0xff]  ;;  %v326_v30 = vmul.f32 %v5466_v11, %v288_v19  ;;  %v273_v31 = vld [vmem:[%s5455_s20 + $0x40] sm:$0xff] }
  0x1a   : > { %4621 = vmatprep.subr.mxu0 %v3954_v7  ;;  %5334 = vmatprep.subr.mxu1 %v3954_v7  ;;  %v5576_v12 = vmax.f32 %v344_v60, 0.0  ;;  %v5578_v13 = vmax.f32 %v360_v0, 0.0  ;;  %v289_v32 = vld [vmem:[%s5455_s20 + $0xc0] sm:$0xff]  ;;  %v274_v39 = vld [vmem:[%s5455_s20 + $0x48] sm:$0xff]  ;;  %v311_v45 = vmul.f32 %v5466_v11, %v273_v31  ;;  %v291_v59 = vld [vmem:[%s5455_s20 + $0xd0] sm:$0xff] }
  0x1b   : > { %4622 = vmatpush3.msra.mxu0 %v3954_v7  ;;  %5350 = vmatpush3.msra.mxu1 %v3954_v7  ;;  %v5571_v7 = vmax.f32 %v359_v58, 0.0  ;;  %v361_v15 = vadd.f32 %v5480_v17, %v323_v2  ;;  %v346_v18 = vadd.f32 %v5480_v17, %v308_v3  ;;  %v3987_v43 = vld [vmem:[%s7415_s3 + $0x148] sm:$0xff]  ;;  %v364_v44 = vadd.f32 %v5480_v17, %v326_v30  ;;  %v3986_v52 = vld [vmem:[%s7415_s3 + $0x140] sm:$0xff]  ;;  %v275_v58 = vld [vmem:[%s5455_s20 + $0x50] sm:$0xff] }
  0x1c   : > { %4623 = vmatprep.subr.mxu0 %v3953_v8  ;;  %5335 = vmatprep.subr.mxu1 %v3953_v8  ;;  %7517 = vst [vmem:[#allocation4_spill] sm:$0xff] %v5578_v13  ;;  %v327_v47 = vmul.f32 %v5466_v11, %v289_v32  ;;  %v276_v0 = vld [vmem:[%s5455_s20 + $0x58] sm:$0xff]  ;;  %v294_v30 = vld [vmem:[%s5455_s20 + $0xe8] sm:$0xff] }
  0x1d   : > { %4624 = vmatpush3.msra.mxu0 %v3953_v8  ;;  %5351 = vmatpush3.msra.mxu1 %v3953_v8  ;;  %v324_v8 = vmul.f32 %v5466_v11, %v286_v61  ;;  %v5612_v34 = vmax.f32 %v346_v18, 0.0  ;;  %v5650_v61 = vmax.f32 %v364_v44, 0.0  ;;  %v292_v2 = vld [vmem:[%s5455_s20 + $0xd8] sm:$0xff]  ;;  %v689_v31 = vld [vmem:[%s7415_s3 + $0x28] sm:$0xff] }
  0x1e   : > { %4625 = vmatprep.subr.mxu0 %v3952_v9  ;;  %5336 = vmatprep.subr.mxu1 %v3952_v9  ;;  %v691_v3 = vld [vmem:[%s7415_s3 + $0x38] sm:$0xff]  ;;  %v330_v19 = vmul.f32 %v5466_v11, %v292_v2  ;;  %v3983_v32 = vld [vmem:[%s7415_s3 + $0x128] sm:$0xff] }
  0x1f   : > { %4626 = vmatpush3.msra.mxu0 %v3952_v9  ;;  %5352 = vmatpush3.msra.mxu1 %v3952_v9  ;;  %v271_v9 = vld [vmem:[%s5455_s20 + $0x30] sm:$0xff]  ;;  %v362_v22 = vadd.f32 %v5480_v17, %v324_v8  ;;  %7521 = vst [vmem:[#allocation8_spill] sm:$0xff] %v5650_v61  ;;  %v313_v8 = vmul.f32 %v5466_v11, %v275_v58  ;;  %v443_v58 = vlaneseq }
  0x20   : > { %4627 = vmatprep.subr.mxu0 %v3951_v10  ;;  %5337 = vmatprep.subr.mxu1 %v3951_v10  ;;  %v309_v23 = vmul.f32 %v5466_v11, %v271_v9  ;;  %v329_v9 = vmul.f32 %v5466_v11, %v291_v59  ;;  %v295_v59 = vld [vmem:[%s5455_s20 + $0xf0] sm:$0xff] }
  0x21   : > { %4628 = vmatpush3.msra.mxu0 %v3951_v10  ;;  %5353 = vmatpush3.msra.mxu1 %v3951_v10  ;;  %v287_v10 = vld [vmem:[%s5455_s20 + $0xb0] sm:$0xff]  ;;  %v5614_v36 = vmax.f32 %v362_v22, 0.0  ;;  %v333_v2 = vmul.f32 %v5466_v11, %v295_v59  ;;  %v500_v59 = vrot.slane %v5576_v12, 7 }
  0x22   : > { %4629 = vmatprep.subr.mxu0 %v3950_v14  ;;  %5338 = vmatprep.subr.mxu1 %v3950_v14  ;;  %v325_v24 = vmul.f32 %v5466_v11, %v287_v10  ;;  %v347_v37 = vadd.f32 %v5480_v17, %v309_v23  ;;  %v314_v10 = vmul.f32 %v5466_v11, %v276_v0  ;;  %v3981_v0 = vld [vmem:[%s7415_s3 + $0x118] sm:$0xff] }
  0x23   : > { %4630 = vmatpush3.msra.mxu0 %v3950_v14  ;;  %5354 = vmatpush3.msra.mxu1 %v3950_v14  ;;  %v345_v14 = vadd.f32 %v5480_v17, %v307_v1  ;;  %7519 = vst [vmem:[#allocation6_spill] sm:$0xff] %v5614_v36 }
  0x24   : > { %4631 = vmatprep.subr.mxu0 %v3949_v16  ;;  %5339 = vmatprep.subr.mxu1 %v3949_v16  ;;  %v363_v38 = vadd.f32 %v5480_v17, %v325_v24  ;;  %v5641_v53 = vmax.f32 %v347_v37, 0.0  ;;  %v351_v24 = vadd.f32 %v5480_v17, %v313_v8  ;;  %v368_v37 = vadd.f32 %v5480_v17, %v330_v19 }
  0x25   : > { %4632 = vmatpush3.msra.mxu0 %v3949_v16  ;;  %5355 = vmatpush3.msra.mxu1 %v3949_v16  ;;  %v272_v16 = vld [vmem:[%s5455_s20 + $0x38] sm:$0xff]  ;;  %v5605_v28 = vmax.f32 %v345_v14, 0.0  ;;  %v690_v14 = vld [vmem:[%s7415_s3 + $0x30] sm:$0xff] }
  0x26   : > { %4633 = vmatprep.subr.mxu0 %v3948_v21  ;;  %5340 = vmatprep.subr.mxu1 %v3948_v21  ;;  %v5643_v54 = vmax.f32 %v363_v38, 0.0 }
  0x27   : > { %4634 = vmatpush3.msra.mxu0 %v3948_v21  ;;  %5356 = vmatpush3.msra.mxu1 %v3948_v21  ;;  %v3989_v21 = vld [vmem:[%s7415_s3 + $0x158] sm:$0xff] }
  0x28   : > { %4635 = vmatprep.subr.mxu0 %v3947_v25  ;;  %5341 = vmatprep.subr.mxu1 %v3947_v25  ;;  %7520 = vst [vmem:[#allocation7_spill] sm:$0xff] %v5643_v54 }
  0x29   : > { %4636 = vmatpush3.msra.mxu0 %v3947_v25  ;;  %5357 = vmatpush3.msra.mxu1 %v3947_v25  ;;  %v310_v25 = vmul.f32 %v5466_v11, %v272_v16 }
  0x2a   : > { %4637 = vmatprep.subr.mxu0 %v3946_v29  ;;  %5342 = vmatprep.subr.mxu1 %v3946_v29 }
  0x2b   : > { %4638 = vmatpush3.msra.mxu0 %v3946_v29  ;;  %5358 = vmatpush3.msra.mxu1 %v3946_v29  ;;  %v5607_v29 = vmax.f32 %v361_v15, 0.0  ;;  %v348_v40 = vadd.f32 %v5480_v17, %v310_v25  ;;  %v3984_v15 = vld [vmem:[%s7415_s3 + $0x130] sm:$0xff]  ;;  %v367_v25 = vadd.f32 %v5480_v17, %v329_v9 }
  0x2c   : > { %4639 = vmatprep.mubr.f32.mxu0 %v7419_v46  ;;  %4663 = vmatprep.mubr.f32.mxu1 %v5503_v33 }
  0x2d   : > { %4640 = vmatmul.mubr.f32.vlgmr.msra.gmra.mxu0 %v7419_v46  ;;  %4664 = vmatmul.mubr.f32.vlgmr.msra.gmra.mxu1 %v5506_v35  ;;  %7518 = vst [vmem:[#allocation5_spill] sm:$0xff] %v5607_v29  ;;  %v5648_v60 = vmax.f32 %v348_v40, 0.0  ;;  %v5715_v44 = vmax.f32 %v367_v25, 0.0 }
  0x2e   : > { %4687 = vmatprep.subr.mxu1 %v699_v41  ;;  %4767 = vmatprep.subr.mxu0 %v3993_v42 }
  0x2f   : > { %4688 = vmatpush3.msra.mxu1 %v699_v41  ;;  %4768 = vmatpush3.msra.mxu0 %v3993_v42  ;;  %v290_v41 = vld [vmem:[%s5455_s20 + $0xc8] sm:$0xff]  ;;  %7524 = vst [vmem:[#allocation11_spill] sm:$0xff] %v5715_v44 }
  0x30   : > { %4689 = vmatprep.subr.mxu1 %v698_v48  ;;  %4769 = vmatprep.subr.mxu0 %v3992_v49  ;;  %v693_v42 = vld [vmem:[%s7415_s3 + $0x48] sm:$0xff]  ;;  %v328_v57 = vmul.f32 %v5466_v11, %v290_v41  ;;  %v688_v41 = vld [vmem:[%s7415_s3 + $0x20] sm:$0xff] }
  0x31   : > { %4642 = vmatprep.mubr.f32.mxu0 %v5533_v50  ;;  %4666 = vmatprep.mubr.f32.mxu1 %v5535_v51 }
  0x32   : > { %4690 = vmatpush3.msra.mxu1 %v698_v48  ;;  %4770 = vmatpush3.msra.mxu0 %v3992_v49  ;;  %v312_v48 = vmul.f32 %v5466_v11, %v274_v39  ;;  %v692_v49 = vld [vmem:[%s7415_s3 + $0x40] sm:$0xff] }
  0x33   : > { %4643 = vmatmul.mubr.f32.gmra.mxu0 %v5540_v55  ;;  %4667 = vmatmul.mubr.f32.gmra.mxu1 %v5542_v56 }
  0x34   : > { %4691 = vmatprep.subr.mxu1 %v697_v62  ;;  %4771 = vmatprep.subr.mxu0 %v3991_v63  ;;  %v350_v1 = vadd.f32 %v5480_v17, %v312_v48  ;;  %v5720_v48 = vmax.f32 %v368_v37, 0.0  ;;  %v5788_v37 = vrot.slane %v7419_v46, 1 }
  0x35   : > { %4692 = vmatpush3.msra.mxu1 %v697_v62  ;;  %4772 = vmatpush3.msra.mxu0 %v3991_v63  ;;  %v349_v62 = vadd.f32 %v5480_v17, %v311_v45  ;;  %v365_v63 = vadd.f32 %v5480_v17, %v327_v47  ;;  %v332_v45 = vmul.f32 %v5466_v11, %v294_v30  ;;  %v684_v30 = vld [vmem:[%s7415_s3] sm:$0xff] }
  0x36   : > { %4693 = vmatprep.subr.mxu1 %v696_v4  ;;  %4773 = vmatprep.subr.mxu0 %v3990_v5  ;;  %v5684_v22 = vmax.f32 %v350_v1, 0.0  ;;  %7525 = vst [vmem:[#allocation12_spill] sm:$0xff] %v5720_v48  ;;  %7531 = vst [vmem:[#allocation18_spill] sm:$0xff] %v5788_v37 }
  0x37   : > { %4645 = vmatprep.mubr.f32.mxu0 %v5569_v6  ;;  %4669 = vmatprep.mubr.f32.mxu1 %v5571_v7  ;;  %v5677_v16 = vmax.f32 %v349_v62, 0.0  ;;  %v5679_v18 = vmax.f32 %v365_v63, 0.0  ;;  %v296_v62 = vld [vmem:[%s5455_s20 + $0xf8] sm:$0xff]  ;;  %v370_v1 = vadd.f32 %v5480_v17, %v332_v45  ;;  %v600_v45 = vrot.slane %v5540_v55, 1 }
  0x38   : > { %4694 = vmatpush3.msra.mxu1 %v696_v4  ;;  %4774 = vmatpush3.msra.mxu0 %v3990_v5  ;;  %v3985_v4 = vld [vmem:[%s7415_s3 + $0x138] sm:$0xff]  ;;  %v366_v5 = vadd.f32 %v5480_v17, %v328_v57 }
  0x39   : > { %4646 = vmatmul.mubr.f32.gmra.mxu0 %v5576_v12  ;;  %4670 = vmatmul.mubr.f32.gmra.mxu1 %v5578_v13  ;;  %7522 = vst [vmem:[#allocation9_spill] sm:$0xff] %v5679_v18  ;;  %v687_v63 = vld [vmem:[%s7415_s3 + $0x18] sm:$0xff]  ;;  %v5756_v19 = vmax.f32 %v370_v1, 0.0 }
  0x3a   : > { %4695 = vmatprep.subr.mxu1 %v695_v20  ;;  %4775 = vmatprep.subr.mxu0 %v3989_v21  ;;  %v5686_v23 = vmax.f32 %v366_v5, 0.0  ;;  %v3980_v5 = vld [vmem:[%s7415_s3 + $0x110] sm:$0xff] }
  0x3b   : > { %4696 = vmatpush3.msra.mxu1 %v695_v20  ;;  %4776 = vmatpush3.msra.mxu0 %v3989_v21  ;;  %v277_v20 = vld [vmem:[%s5455_s20 + $0x60] sm:$0xff]  ;;  %7527 = vst [vmem:[#allocation14_spill] sm:$0xff] %v5756_v19 }
  0x3c   : > { %4697 = vmatprep.subr.mxu1 %v694_v26  ;;  %4777 = vmatprep.subr.mxu0 %v3988_v27  ;;  %v293_v21 = vld [vmem:[%s5455_s20 + $0xe0] sm:$0xff]  ;;  %7523 = vst [vmem:[#allocation10_spill] sm:$0xff] %v5686_v23  ;;  %v315_v38 = vmul.f32 %v5466_v11, %v277_v20 }
  0x3d   : > { %4648 = vmatprep.mubr.f32.mxu0 %v5605_v28  ;;  %4672 = vmatprep.mubr.f32.mxu1 %v5607_v29  ;;  %v331_v39 = vmul.f32 %v5466_v11, %v293_v21 }
  0x3e   : > { %4698 = vmatpush3.msra.mxu1 %v694_v26  ;;  %4778 = vmatpush3.msra.mxu0 %v3988_v27  ;;  %v278_v26 = vld [vmem:[%s5455_s20 + $0x68] sm:$0xff]  ;;  %v352_v27 = vadd.f32 %v5480_v17, %v314_v10 }
  0x3f   : > { %4649 = vmatmul.mubr.f32.gmra.mxu0 %v5612_v34  ;;  %4673 = vmatmul.mubr.f32.gmra.mxu1 %v5614_v36  ;;  %v316_v40 = vmul.f32 %v5466_v11, %v278_v26 }
  0x40   : > { %4699 = vmatprep.subr.mxu1 %v693_v42  ;;  %4779 = vmatprep.subr.mxu0 %v3987_v43  ;;  %v5718_v47 = vmax.f32 %v352_v27, 0.0 }
  0x41   : > { %4700 = vmatpush3.msra.mxu1 %v693_v42  ;;  %4780 = vmatpush3.msra.mxu0 %v3987_v43  ;;  %v3982_v42 = vld [vmem:[%s7415_s3 + $0x120] sm:$0xff]  ;;  %v5713_v43 = vmax.f32 %v351_v24, 0.0  ;;  %v354_v57 = vadd.f32 %v5480_v17, %v316_v40  ;;  %v3979_v24 = vld [vmem:[%s7415_s3 + $0x108] sm:$0xff]  ;;  %v499_v40 = vrot.slane %v5540_v55, 7 }
  0x42   : > { %4701 = vmatprep.subr.mxu1 %v692_v49  ;;  %4781 = vmatprep.subr.mxu0 %v3986_v52 }
  0x43   : > { %4651 = vmatprep.mubr.f32.mxu0 %v5641_v53  ;;  %4675 = vmatprep.mubr.f32.mxu1 %v5643_v54 }
  0x44   : > { %4702 = vmatpush3.msra.mxu1 %v692_v49  ;;  %4782 = vmatpush3.msra.mxu0 %v3986_v52  ;;  %v353_v49 = vadd.f32 %v5480_v17, %v315_v38  ;;  %v369_v52 = vadd.f32 %v5480_v17, %v331_v39  ;;  %v483_v39 = vrot.slane %v5533_v50, 7 }
  0x45   : > { %4652 = vmatmul.mubr.f32.gmra.mxu0 %v5648_v60  ;;  %4676 = vmatmul.mubr.f32.gmra.mxu1 %v5650_v61 }
  0x46   : > { %4703 = vmatprep.subr.mxu1 %v691_v3  ;;  %4783 = vmatprep.subr.mxu0 %v3985_v4  ;;  %v5746_v8 = vmax.f32 %v353_v49, 0.0  ;;  %v5748_v9 = vmax.f32 %v369_v52, 0.0  ;;  %v4041_v49 = vld [vmem:[%s7415_s3 + $0x278] sm:$0xff] }
  0x47   : > { %4704 = vmatpush3.msra.mxu1 %v691_v3  ;;  %4784 = vmatpush3.msra.mxu0 %v3985_v4  ;;  %v334_v3 = vmul.f32 %v5466_v11, %v296_v62  ;;  %v686_v4 = vld [vmem:[%s7415_s3 + $0x10] sm:$0xff]  ;;  %v371_v11 = vadd.f32 %v5480_v17, %v333_v2  ;;  %v4025_v52 = vld [vmem:[%s7415_s3 + $0x1f8] sm:$0xff] }
  0x48   : > { %4705 = vmatprep.subr.mxu1 %v690_v14  ;;  %4785 = vmatprep.subr.mxu0 %v3984_v15 }
  0x49   : > { %4654 = vmatprep.mubr.f32.mxu0 %v5677_v16  ;;  %4678 = vmatprep.mubr.f32.mxu1 %v5679_v18  ;;  %v372_v10 = vadd.f32 %v5480_v17, %v334_v3  ;;  %v5758_v20 = vmax.f32 %v371_v11, 0.0  ;;  %v685_v17 = vld [vmem:[%s7415_s3 + $0x8] sm:$0xff]  ;;  %v4040_v3 = vld [vmem:[%s7415_s3 + $0x270] sm:$0xff]  ;;  %v485_v11 = vrot.slane %v5605_v28, 7 }
  0x4a   : > { %4706 = vmatpush3.msra.mxu1 %v690_v14  ;;  %4786 = vmatpush3.msra.mxu0 %v3984_v15  ;;  %v5752_v14 = vshrl.u32 %v443_v58, 7  ;;  %v5754_v15 = vmax.f32 %v354_v57, 0.0  ;;  %v484_v58 = vrot.slane %v5569_v6, 7 }
  0x4b   : > { %4655 = vmatmul.mubr.f32.gmra.mxu0 %v5684_v22  ;;  %4679 = vmatmul.mubr.f32.gmra.mxu1 %v5686_v23  ;;  %7528 = vst [vmem:[#allocation15_spill] sm:$0xff] %v5758_v20  ;;  %v5760_v21 = vmax.f32 %v372_v10, 0.0  ;;  %v1520_v25 = vrot.slane %v5758_v20, 7  ;;  %v501_v10 = vrot.slane %v5612_v34, 7  ;;  %v4016_v20 = vld [vmem:[%s7415_s3 + $0x1b0] sm:$0xff] }
  0x4c   : > { %4707 = vmatprep.subr.mxu1 %v689_v31  ;;  %4787 = vmatprep.subr.mxu0 %v3983_v32  ;;  %7526 = vst [vmem:[#allocation13_spill] sm:$0xff] %v5752_v14  ;;  %v5773_v27 = vadd.s32 8, %v5752_v14  ;;  %vm514_vm0 = vcmp.lt.s32.totalorder %v5752_v14, 1  ;;  %vm446_vm1 = vcmp.ge.s32.totalorder %v5752_v14, 1  ;;  %vm615_vm3 = vcmp.lt.s32.totalorder %v5752_v14, 7 }
  0x4d   : > { %4708 = vmatpush3.msra.mxu1 %v689_v31  ;;  %4788 = vmatpush3.msra.mxu0 %v3983_v32  ;;  %7529 = vst [vmem:[#allocation16_spill] sm:$0xff] %v5760_v21  ;;  %v1536_v26 = vrot.slane %v5760_v21, 7  ;;  %v3978_v31 = vld [vmem:[%s7415_s3 + $0x100] sm:$0xff]  ;;  %v5785_v32 = vrot.slane %v7419_v46, 7  ;;  %v5817_v57 = vsel %vm514_vm0, %v499_v40, %v483_v39  ;;  %v5833_v1 = vsel %vm514_vm0, %v483_v39, %v499_v40  ;;  %v4023_v39 = vld [vmem:[%s7415_s3 + $0x1e8] sm:$0xff]  ;;  %v4017_v21 = vld [vmem:[%s7415_s3 + $0x1b8] sm:$0xff] }
  0x4e   : > { %4709 = vmatprep.subr.mxu1 %v688_v41  ;;  %4789 = vmatprep.subr.mxu0 %v3982_v42  ;;  %vm449_vm2 = vcmp.lt.s32.totalorder %v5773_v27, 15  ;;  %v5885_v40 = vsel %vm514_vm0, %v501_v10, %v485_v11 }
  0x4f   : > { %4657 = vmatprep.mubr.f32.mxu0 %v5713_v43  ;;  %4681 = vmatprep.mubr.f32.mxu1 %v5715_v44  ;;  %7530 = vst [vmem:[#allocation17_spill] sm:$0xff] %v5785_v32  ;;  %v5792_v38 = vsel %vm514_vm0, %v1536_v26, %v1520_v25 }
  0x50   : > { %4710 = vmatpush3.msra.mxu1 %v688_v41  ;;  %4790 = vmatpush3.msra.mxu0 %v3982_v42  ;;  %7532 = vst [vmem:[#allocation19_spill] sm:$0xff] %v5792_v38  ;;  %v5799_v41 = vsel %vm514_vm0, %v1520_v25, %v1536_v26  ;;  %v584_v42 = vrot.slane %v5533_v50, 1  ;;  %v602_v25 = vrot.slane %v5612_v34, 1  ;;  %v5867_v26 = vsel %vm514_vm0, %v484_v58, %v500_v59 }
  0x51   : > { %4658 = vmatmul.mubr.f32.gmra.mxu0 %v5718_v47  ;;  %4682 = vmatmul.mubr.f32.gmra.mxu1 %v5720_v48  ;;  %7533 = vst [vmem:[#allocation20_spill] sm:$0xff] %v5799_v41 }
  0x52   : > { %4711 = vmatprep.subr.mxu1 %v687_v63  ;;  %4791 = vmatprep.subr.mxu0 %v3981_v0  ;;  %v5827_v62 = vsel %vm615_vm3, %v584_v42, %v600_v45  ;;  %v5837_v2 = vsel %vm615_vm3, %v600_v45, %v584_v42  ;;  %v486_v42 = vrot.slane %v5641_v53, 7  ;;  %v502_v45 = vrot.slane %v5648_v60, 7 }
  0x53   : > { %4712 = vmatpush3.msra.mxu1 %v687_v63  ;;  %4792 = vmatpush3.msra.mxu0 %v3981_v0  ;;  %7534 = vst [vmem:[#allocation21_spill] sm:$0xff] %v5827_v62  ;;  %v585_v63 = vrot.slane %v5569_v6, 1  ;;  %v601_v0 = vrot.slane %v5576_v12, 1  ;;  %7535 = vst [vmem:[#allocation22_spill] sm:$0xff] %v5837_v2 }
  0x54   : > { %4713 = vmatprep.subr.mxu1 %v686_v4  ;;  %4793 = vmatprep.subr.mxu0 %v3980_v5 }
  0x55   : > { %4660 = vmatprep.mubr.f32.mxu0 %v5746_v8  ;;  %4684 = vmatprep.mubr.f32.mxu1 %v5748_v9 }
  0x56   : > { %4714 = vmatpush3.msra.mxu1 %v686_v4  ;;  %4794 = vmatpush3.msra.mxu0 %v3980_v5  ;;  %v4024_v4 = vld [vmem:[%s7415_s3 + $0x1f0] sm:$0xff]  ;;  %v5851_v5 = vsel %vm514_vm0, %v500_v59, %v484_v58  ;;  %v603_v58 = vrot.slane %v5648_v60, 1  ;;  %v5901_v59 = vsel %vm514_vm0, %v485_v11, %v501_v10  ;;  %v487_v11 = vrot.slane %v5677_v16, 7 }
  0x57   : > { %4661 = vmatmul.mubr.f32.gmra.mxu0 %v5754_v15  ;;  %4685 = vmatmul.mubr.f32.gmra.mxu1 %v5756_v19  ;;  %v503_v10 = vrot.slane %v5684_v22, 7 }
  0x58   : > { %4715 = vmatprep.subr.mxu1 %v685_v17  ;;  %4795 = vmatprep.subr.mxu0 %v3979_v24 }
  0x59   : > { %4716 = vmatpush3.msra.mxu1 %v685_v17  ;;  %4796 = vmatpush3.msra.mxu0 %v3979_v24  ;;  %v5861_v17 = vsel %vm615_vm3, %v585_v63, %v601_v0  ;;  %v586_v24 = vrot.slane %v5605_v28, 1 }
  0x5a   : > { %4717 = vmatprep.subr.mxu1 %v684_v30  ;;  %4797 = vmatprep.subr.mxu0 %v3978_v31  ;;  %7536 = vst [vmem:[#allocation23_spill] sm:$0xff] %v5861_v17 }
  0x5b   : > { %4718 = vmatpush3.msra.mxu1 %v684_v30  ;;  %4719 = vmatprep.mubr.msk.f32.mxu1 %vm446_vm1, %v5785_v32  ;;  %v5871_v30 = vsel %vm615_vm3, %v601_v0, %v585_v63  ;;  %v5905_v63 = vsel %vm615_vm3, %v602_v25, %v586_v24  ;;  %v4038_v0 = vld [vmem:[%s7415_s3 + $0x260] sm:$0xff] }
  0x5c   : > { %4798 = vmatpush3.msra.mxu0 %v3978_v31  ;;  %4799 = vmatprep.mubr.f32.mxu0 %v5788_v37  ;;  %7537 = vst [vmem:[#allocation24_spill] sm:$0xff] %v5871_v30  ;;  %v4039_v31 = vld [vmem:[%s7415_s3 + $0x268] sm:$0xff]  ;;  %7539 = vst [vmem:[#allocation26_spill] sm:$0xff] %v5905_v63 }
  0x5d   : > { %4720 = vmatmul.mubr.f32.vlgmr.msra.gmra.mxu1 %v5785_v32  ;;  %4800 = vmatmul.mubr.msk.f32.vlgmr.msra.gmra.mxu0 %vm449_vm2, %v5788_v37  ;;  %v4037_v37 = vld [vmem:[%s7415_s3 + $0x258] sm:$0xff] }
  0x5e   : > { %4847 = vmatprep.subr.mxu1 %v4041_v49  ;;  %4927 = vmatprep.subr.mxu0 %v4025_v52  ;;  %v4021_v32 = vld [vmem:[%s7415_s3 + $0x1d8] sm:$0xff] }
  0x5f   : > { %4848 = vmatpush3.msra.mxu1 %v4041_v49  ;;  %4722 = vmatprep.mubr.msk.f32.mxu1 %vm446_vm1, %v5817_v57  ;;  %v5895_v49 = vsel %vm615_vm3, %v586_v24, %v602_v25  ;;  %v588_v25 = vrot.slane %v5677_v16, 1 }
  0x60   : > { %4802 = vmatprep.mubr.f32.mxu0 %v5827_v62  ;;  %4928 = vmatpush3.msra.mxu0 %v4025_v52  ;;  %7538 = vst [vmem:[#allocation25_spill] sm:$0xff] %v5895_v49  ;;  %v587_v52 = vrot.slane %v5641_v53, 1  ;;  %v4018_v62 = vld [vmem:[%s7415_s3 + $0x1c0] sm:$0xff] }
  0x61   : > { %4723 = vmatmul.mubr.f32.gmra.mxu1 %v5833_v1  ;;  %4803 = vmatmul.mubr.msk.f32.gmra.mxu0 %vm449_vm2, %v5837_v2 }
  0x62   : > { %4849 = vmatprep.subr.mxu1 %v4040_v3  ;;  %4929 = vmatprep.subr.mxu0 %v4024_v4  ;;  %v5929_v24 = vsel %vm615_vm3, %v587_v52, %v603_v58  ;;  %v5939_v46 = vsel %vm615_vm3, %v603_v58, %v587_v52  ;;  %v504_v52 = vrot.slane %v5718_v47, 7 }
  0x63   : > { %4850 = vmatpush3.msra.mxu1 %v4040_v3  ;;  %4725 = vmatprep.mubr.msk.f32.mxu1 %vm446_vm1, %v5851_v5  ;;  %v4022_v3 = vld [vmem:[%s7415_s3 + $0x1e0] sm:$0xff]  ;;  %7540 = vst [vmem:[#allocation27_spill] sm:$0xff] %v5929_v24  ;;  %7541 = vst [vmem:[#allocation28_spill] sm:$0xff] %v5939_v46 }
  0x64   : > { %4805 = vmatprep.mubr.f32.mxu0 %v5861_v17  ;;  %4930 = vmatpush3.msra.mxu0 %v4024_v4  ;;  %v5919_v4 = vsel %vm514_vm0, %v502_v45, %v486_v42  ;;  %v4019_v17 = vld [vmem:[%s7415_s3 + $0x1c8] sm:$0xff] }
  0x65   : > { %4726 = vmatmul.mubr.f32.gmra.mxu1 %v5867_v26  ;;  %4806 = vmatmul.mubr.msk.f32.gmra.mxu0 %vm449_vm2, %v5871_v30 }
  0x66   : > { %4851 = vmatprep.subr.mxu1 %v4039_v31  ;;  %4931 = vmatprep.subr.mxu0 %v4023_v39 }
  0x67   : > { %4852 = vmatpush3.msra.mxu1 %v4039_v31  ;;  %4728 = vmatprep.mubr.msk.f32.mxu1 %vm446_vm1, %v5885_v40  ;;  %v604_v31 = vrot.slane %v5684_v22, 1 }
  0x68   : > { %4808 = vmatprep.mubr.f32.mxu0 %v5895_v49  ;;  %4932 = vmatpush3.msra.mxu0 %v4023_v39  ;;  %v5935_v39 = vsel %vm514_vm0, %v486_v42, %v502_v45  ;;  %v5953_v42 = vsel %vm514_vm0, %v503_v10, %v487_v11  ;;  %v488_v45 = vrot.slane %v5713_v43, 7  ;;  %v4020_v49 = vld [vmem:[%s7415_s3 + $0x1d0] sm:$0xff] }
  0x69   : > { %4729 = vmatmul.mubr.f32.gmra.mxu1 %v5901_v59  ;;  %4809 = vmatmul.mubr.msk.f32.gmra.mxu0 %vm449_vm2, %v5905_v63  ;;  %v5963_v58 = vsel %vm615_vm3, %v588_v25, %v604_v31  ;;  %v5973_v63 = vsel %vm615_vm3, %v604_v31, %v588_v25  ;;  %v606_v31 = vrot.slane %v5754_v15, 1 }
  0x6a   : > { %4853 = vmatprep.subr.mxu1 %v4038_v0  ;;  %4933 = vmatprep.subr.mxu0 %v4022_v3  ;;  %7542 = vst [vmem:[#allocation29_spill] sm:$0xff] %v5963_v58  ;;  %7543 = vst [vmem:[#allocation30_spill] sm:$0xff] %v5973_v63 }
  0x6b   : > { %4854 = vmatpush3.msra.mxu1 %v4038_v0  ;;  %4731 = vmatprep.mubr.msk.f32.mxu1 %vm446_vm1, %v5919_v4  ;;  %v589_v0 = vrot.slane %v5713_v43, 1 }
  0x6c   : > { %4811 = vmatprep.mubr.f32.mxu0 %v5929_v24  ;;  %4934 = vmatpush3.msra.mxu0 %v4022_v3  ;;  %v605_v3 = vrot.slane %v5718_v47, 1  ;;  %v5969_v24 = vsel %vm514_vm0, %v487_v11, %v503_v10  ;;  %v5987_v11 = vsel %vm514_vm0, %v504_v52, %v488_v45  ;;  %v505_v10 = vrot.slane %v5754_v15, 7 }
  0x6d   : > { %4732 = vmatmul.mubr.f32.gmra.mxu1 %v5935_v39  ;;  %4812 = vmatmul.mubr.msk.f32.gmra.mxu0 %vm449_vm2, %v5939_v46  ;;  %v4036_v46 = vld [vmem:[%s7415_s3 + $0x250] sm:$0xff] }
  0x6e   : > { %4855 = vmatprep.subr.mxu1 %v4037_v37  ;;  %4935 = vmatprep.subr.mxu0 %v4021_v32  ;;  %v5997_v25 = vsel %vm615_vm3, %v589_v0, %v605_v3  ;;  %v6007_v30 = vsel %vm615_vm3, %v605_v3, %v589_v0  ;;  %v607_v3 = vrot.slane %v5506_v35, 1 }
  0x6f   : > { %4856 = vmatpush3.msra.mxu1 %v4037_v37  ;;  %4734 = vmatprep.mubr.msk.f32.mxu1 %vm446_vm1, %v5953_v42  ;;  %v489_v37 = vrot.slane %v5746_v8, 7  ;;  %7544 = vst [vmem:[#allocation31_spill] sm:$0xff] %v5997_v25  ;;  %7545 = vst [vmem:[#allocation32_spill] sm:$0xff] %v6007_v30 }
  0x70   : > { %4814 = vmatprep.mubr.f32.mxu0 %v5963_v58  ;;  %4936 = vmatpush3.msra.mxu0 %v4021_v32  ;;  %v590_v32 = vrot.slane %v5746_v8, 1  ;;  %v6003_v58 = vsel %vm514_vm0, %v488_v45, %v504_v52  ;;  %v506_v52 = vrot.slane %v5506_v35, 7 }
  0x71   : > { %4735 = vmatmul.mubr.f32.gmra.mxu1 %v5969_v24  ;;  %4815 = vmatmul.mubr.msk.f32.gmra.mxu0 %vm449_vm2, %v5973_v63  ;;  %v4035_v63 = vld [vmem:[%s7415_s3 + $0x248] sm:$0xff]  ;;  %v6021_v45 = vsel %vm514_vm0, %v505_v10, %v489_v37 }
  0x72   : > { %4857 = vmatprep.subr.mxu1 %v4036_v46  ;;  %4937 = vmatprep.subr.mxu0 %v4020_v49  ;;  %v6031_v0 = vsel %vm615_vm3, %v590_v32, %v606_v31  ;;  %v6041_v2 = vsel %vm615_vm3, %v606_v31, %v590_v32  ;;  %v608_v31 = vrot.slane %v5542_v56, 1 }
  0x73   : > { %4858 = vmatpush3.msra.mxu1 %v4036_v46  ;;  %4737 = vmatprep.mubr.msk.f32.mxu1 %vm446_vm1, %v5987_v11  ;;  %v490_v46 = vrot.slane %v5503_v33, 7  ;;  %7546 = vst [vmem:[#allocation33_spill] sm:$0xff] %v6031_v0  ;;  %7547 = vst [vmem:[#allocation34_spill] sm:$0xff] %v6041_v2 }
  0x74   : > { %4817 = vmatprep.mubr.f32.mxu0 %v5997_v25  ;;  %4938 = vmatpush3.msra.mxu0 %v4020_v49  ;;  %v591_v49 = vrot.slane %v5503_v33, 1  ;;  %v6037_v25 = vsel %vm514_vm0, %v489_v37, %v505_v10  ;;  %v507_v10 = vrot.slane %v5542_v56, 7 }
  0x75   : > { %4738 = vmatmul.mubr.f32.gmra.mxu1 %v6003_v58  ;;  %4818 = vmatmul.mubr.msk.f32.gmra.mxu0 %vm449_vm2, %v6007_v30  ;;  %v4034_v30 = vld [vmem:[%s7415_s3 + $0x240] sm:$0xff]  ;;  %v6055_v37 = vsel %vm514_vm0, %v506_v52, %v490_v46 }
  0x76   : > { %4859 = vmatprep.subr.mxu1 %v4035_v63  ;;  %4939 = vmatprep.subr.mxu0 %v4019_v17  ;;  %v6065_v32 = vsel %vm615_vm3, %v591_v49, %v607_v3  ;;  %v6075_v41 = vsel %vm615_vm3, %v607_v3, %v591_v49  ;;  %v609_v3 = vrot.slane %v5578_v13, 1 }
  0x77   : > { %4860 = vmatpush3.msra.mxu1 %v4035_v63  ;;  %4740 = vmatprep.mubr.msk.f32.mxu1 %vm446_vm1, %v6021_v45  ;;  %v491_v63 = vrot.slane %v5535_v51, 7  ;;  %7548 = vst [vmem:[#allocation35_spill] sm:$0xff] %v6065_v32  ;;  %7549 = vst [vmem:[#allocation36_spill] sm:$0xff] %v6075_v41 }
  0x78   : > { %4820 = vmatprep.mubr.f32.mxu0 %v6031_v0  ;;  %4940 = vmatpush3.msra.mxu0 %v4019_v17  ;;  %v592_v17 = vrot.slane %v5535_v51, 1  ;;  %v6071_v0 = vsel %vm514_vm0, %v490_v46, %v506_v52  ;;  %v508_v52 = vrot.slane %v5578_v13, 7 }
  0x79   : > { %4741 = vmatmul.mubr.f32.gmra.mxu1 %v6037_v25  ;;  %4821 = vmatmul.mubr.msk.f32.gmra.mxu0 %vm449_vm2, %v6041_v2  ;;  %v4033_v2 = vld [vmem:[%s7415_s3 + $0x238] sm:$0xff]  ;;  %v6089_v46 = vsel %vm514_vm0, %v507_v10, %v491_v63 }
  0x7a   : > { %4861 = vmatprep.subr.mxu1 %v4034_v30  ;;  %4941 = vmatprep.subr.mxu0 %v4018_v62  ;;  %v6099_v49 = vsel %vm615_vm3, %v592_v17, %v608_v31  ;;  %v6109_v38 = vsel %vm615_vm3, %v608_v31, %v592_v17  ;;  %v610_v31 = vrot.slane %v5614_v36, 1 }
  0x7b   : > { %4862 = vmatpush3.msra.mxu1 %v4034_v30  ;;  %4743 = vmatprep.mubr.msk.f32.mxu1 %vm446_vm1, %v6055_v37  ;;  %v492_v30 = vrot.slane %v5571_v7, 7  ;;  %7550 = vst [vmem:[#allocation37_spill] sm:$0xff] %v6099_v49  ;;  %7551 = vst [vmem:[#allocation38_spill] sm:$0xff] %v6109_v38 }
  0x7c   : > { %4823 = vmatprep.mubr.f32.mxu0 %v6065_v32  ;;  %4942 = vmatpush3.msra.mxu0 %v4018_v62  ;;  %v593_v62 = vrot.slane %v5571_v7, 1  ;;  %v6105_v32 = vsel %vm514_vm0, %v491_v63, %v507_v10  ;;  %v509_v10 = vrot.slane %v5614_v36, 7  ;;  %v4015_v36 = vld [vmem:[%s7415_s3 + $0x1a8] sm:$0xff] }
  0x7d   : > { %4744 = vmatmul.mubr.f32.gmra.mxu1 %v6071_v0  ;;  %4824 = vmatmul.mubr.msk.f32.gmra.mxu0 %vm449_vm2, %v6075_v41  ;;  %v4032_v41 = vld [vmem:[%s7415_s3 + $0x230] sm:$0xff]  ;;  %v6123_v63 = vsel %vm514_vm0, %v508_v52, %v492_v30 }
  0x7e   : > { %4863 = vmatprep.subr.mxu1 %v4033_v2  ;;  %4943 = vmatprep.subr.mxu0 %v4017_v21  ;;  %7552 = vst [vmem:[#allocation39_spill] sm:$0xff] %v6123_v63  ;;  %v6133_v17 = vsel %vm615_vm3, %v593_v62, %v609_v3  ;;  %v6143_v13 = vsel %vm615_vm3, %v609_v3, %v593_v62  ;;  %v611_v3 = vrot.slane %v5650_v61, 1 }
  0x7f   : > { %4864 = vmatpush3.msra.mxu1 %v4033_v2  ;;  %4746 = vmatprep.mubr.msk.f32.mxu1 %vm446_vm1, %v6089_v46  ;;  %v493_v2 = vrot.slane %v5607_v29, 7  ;;  %7553 = vst [vmem:[#allocation40_spill] sm:$0xff] %v6133_v17  ;;  %7555 = vst [vmem:[#allocation42_spill] sm:$0xff] %v6143_v13 }
  0x80   : > { %4826 = vmatprep.mubr.f32.mxu0 %v6099_v49  ;;  %4944 = vmatpush3.msra.mxu0 %v4017_v21  ;;  %v594_v21 = vrot.slane %v5607_v29, 1  ;;  %v6139_v49 = vsel %vm514_vm0, %v492_v30, %v508_v52  ;;  %v510_v52 = vrot.slane %v5650_v61, 7  ;;  %v4014_v61 = vld [vmem:[%s7415_s3 + $0x1a0] sm:$0xff] }
  0x81   : > { %4747 = vmatmul.mubr.f32.gmra.mxu1 %v6105_v32  ;;  %4827 = vmatmul.mubr.msk.f32.gmra.mxu0 %vm449_vm2, %v6109_v38  ;;  %7554 = vst [vmem:[#allocation41_spill] sm:$0xff] %v6139_v49  ;;  %v4031_v38 = vld [vmem:[%s7415_s3 + $0x228] sm:$0xff]  ;;  %v6157_v30 = vsel %vm514_vm0, %v509_v10, %v493_v2 }
  0x82   : > { %4865 = vmatprep.subr.mxu1 %v4032_v41  ;;  %4945 = vmatprep.subr.mxu0 %v4016_v20  ;;  %7556 = vst [vmem:[#allocation43_spill] sm:$0xff] %v6157_v30  ;;  %v6167_v62 = vsel %vm615_vm3, %v594_v21, %v610_v31  ;;  %v6177_v29 = vsel %vm615_vm3, %v610_v31, %v594_v21  ;;  %v612_v31 = vrot.slane %v5686_v23, 1 }
  0x83   : > { %4866 = vmatpush3.msra.mxu1 %v4032_v41  ;;  %4749 = vmatprep.mubr.msk.f32.mxu1 %vm446_vm1, %v6123_v63  ;;  %v494_v41 = vrot.slane %v5643_v54, 7  ;;  %7557 = vst [vmem:[#allocation44_spill] sm:$0xff] %v6167_v62  ;;  %7559 = vst [vmem:[#allocation46_spill] sm:$0xff] %v6177_v29 }
  0x84   : > { %4829 = vmatprep.mubr.f32.mxu0 %v6133_v17  ;;  %4946 = vmatpush3.msra.mxu0 %v4016_v20  ;;  %v595_v20 = vrot.slane %v5643_v54, 1  ;;  %v6173_v17 = vsel %vm514_vm0, %v493_v2, %v509_v10  ;;  %v511_v10 = vrot.slane %v5686_v23, 7  ;;  %v4013_v23 = vld [vmem:[%s7415_s3 + $0x198] sm:$0xff] }
  0x85   : > { %4750 = vmatmul.mubr.f32.gmra.mxu1 %v6139_v49  ;;  %4830 = vmatmul.mubr.msk.f32.gmra.mxu0 %vm449_vm2, %v6143_v13  ;;  %7558 = vst [vmem:[#allocation45_spill] sm:$0xff] %v6173_v17  ;;  %v4030_v13 = vld [vmem:[%s7415_s3 + $0x220] sm:$0xff]  ;;  %v6191_v2 = vsel %vm514_vm0, %v510_v52, %v494_v41 }
  0x86   : > { %4867 = vmatprep.subr.mxu1 %v4031_v38  ;;  %4947 = vmatprep.subr.mxu0 %v4015_v36  ;;  %7560 = vst [vmem:[#allocation47_spill] sm:$0xff] %v6191_v2  ;;  %v6201_v21 = vsel %vm615_vm3, %v595_v20, %v611_v3  ;;  %v6211_v54 = vsel %vm615_vm3, %v611_v3, %v595_v20  ;;  %v613_v3 = vrot.slane %v5720_v48, 1 }
  0x87   : > { %4868 = vmatpush3.msra.mxu1 %v4031_v38  ;;  %4752 = vmatprep.mubr.msk.f32.mxu1 %vm446_vm1, %v6157_v30  ;;  %v495_v38 = vrot.slane %v5679_v18, 7  ;;  %7561 = vst [vmem:[#allocation48_spill] sm:$0xff] %v6201_v21  ;;  %7563 = vst [vmem:[#allocation50_spill] sm:$0xff] %v6211_v54 }
  0x88   : > { %4832 = vmatprep.mubr.f32.mxu0 %v6167_v62  ;;  %4948 = vmatpush3.msra.mxu0 %v4015_v36  ;;  %v596_v36 = vrot.slane %v5679_v18, 1  ;;  %v6207_v62 = vsel %vm514_vm0, %v494_v41, %v510_v52  ;;  %v512_v52 = vrot.slane %v5720_v48, 7  ;;  %v4012_v48 = vld [vmem:[%s7415_s3 + $0x190] sm:$0xff] }
  0x89   : > { %4753 = vmatmul.mubr.f32.gmra.mxu1 %v6173_v17  ;;  %4833 = vmatmul.mubr.msk.f32.gmra.mxu0 %vm449_vm2, %v6177_v29  ;;  %7562 = vst [vmem:[#allocation49_spill] sm:$0xff] %v6207_v62  ;;  %v4029_v29 = vld [vmem:[%s7415_s3 + $0x218] sm:$0xff]  ;;  %v6225_v41 = vsel %vm514_vm0, %v511_v10, %v495_v38 }
  0x8a   : > { %4869 = vmatprep.subr.mxu1 %v4030_v13  ;;  %4949 = vmatprep.subr.mxu0 %v4014_v61  ;;  %7564 = vst [vmem:[#allocation51_spill] sm:$0xff] %v6225_v41  ;;  %v6235_v20 = vsel %vm615_vm3, %v596_v36, %v612_v31  ;;  %v6245_v18 = vsel %vm615_vm3, %v612_v31, %v596_v36  ;;  %v614_v31 = vrot.slane %v5756_v19, 1 }
  0x8b   : > { %4870 = vmatpush3.msra.mxu1 %v4030_v13  ;;  %4755 = vmatprep.mubr.msk.f32.mxu1 %vm446_vm1, %v6191_v2  ;;  %v496_v13 = vrot.slane %v5715_v44, 7  ;;  %7565 = vst [vmem:[#allocation52_spill] sm:$0xff] %v6235_v20  ;;  %7567 = vst [vmem:[#allocation54_spill] sm:$0xff] %v6245_v18 }
  0x8c   : > { %4835 = vmatprep.mubr.f32.mxu0 %v6201_v21  ;;  %4950 = vmatpush3.msra.mxu0 %v4014_v61  ;;  %v597_v61 = vrot.slane %v5715_v44, 1  ;;  %v6241_v21 = vsel %vm514_vm0, %v495_v38, %v511_v10  ;;  %v513_v10 = vrot.slane %v5756_v19, 7  ;;  %v4011_v19 = vld [vmem:[%s7415_s3 + $0x188] sm:$0xff] }
  0x8d   : > { %4756 = vmatmul.mubr.f32.gmra.mxu1 %v6207_v62  ;;  %4836 = vmatmul.mubr.msk.f32.gmra.mxu0 %vm449_vm2, %v6211_v54  ;;  %7566 = vst [vmem:[#allocation53_spill] sm:$0xff] %v6241_v21  ;;  %v4028_v54 = vld [vmem:[%s7415_s3 + $0x210] sm:$0xff]  ;;  %v6259_v38 = vsel %vm514_vm0, %v512_v52, %v496_v13 }
  0x8e   : > { %4871 = vmatprep.subr.mxu1 %v4029_v29  ;;  %4951 = vmatprep.subr.mxu0 %v4013_v23  ;;  %7568 = vst [vmem:[#allocation55_spill] sm:$0xff] %v6259_v38  ;;  %v6269_v36 = vsel %vm615_vm3, %v597_v61, %v613_v3  ;;  %v6279_v44 = vsel %vm615_vm3, %v613_v3, %v597_v61  ;;  %v4026_v61 = vld [vmem:[%s7415_s3 + $0x200] sm:$0xff] }
  0x8f   : > { %4872 = vmatpush3.msra.mxu1 %v4029_v29  ;;  %4758 = vmatprep.mubr.msk.f32.mxu1 %vm446_vm1, %v6225_v41  ;;  %v497_v29 = vrot.slane %v5748_v9, 7  ;;  %7569 = vst [vmem:[#allocation56_spill] sm:$0xff] %v6269_v36  ;;  %v4010_v3 = vld [vmem:[%s7415_s3 + $0x180] sm:$0xff] }
  0x90   : > { %4838 = vmatprep.mubr.f32.mxu0 %v6235_v20  ;;  %4952 = vmatpush3.msra.mxu0 %v4013_v23  ;;  %v598_v23 = vrot.slane %v5748_v9, 1  ;;  %v6275_v20 = vsel %vm514_vm0, %v496_v13, %v512_v52 }
  0x91   : > { %4759 = vmatmul.mubr.f32.gmra.mxu1 %v6241_v21  ;;  %4839 = vmatmul.mubr.msk.f32.gmra.mxu0 %vm449_vm2, %v6245_v18  ;;  %7570 = vst [vmem:[#allocation57_spill] sm:$0xff] %v6275_v20  ;;  %v4027_v18 = vld [vmem:[%s7415_s3 + $0x208] sm:$0xff]  ;;  %v6293_v13 = vsel %vm514_vm0, %v513_v10, %v497_v29  ;;  %v6305_v52 = vsel %vm514_vm0, %v497_v29, %v513_v10  ;;  %v4121_v29 = vld [vmem:[%s7415_s3 + $0x3f8] sm:$0xff]  ;;  %v4118_v10 = vld [vmem:[%s7415_s3 + $0x3e0] sm:$0xff] }
  0x92   : > { %4873 = vmatprep.subr.mxu1 %v4028_v54  ;;  %4953 = vmatprep.subr.mxu0 %v4012_v48  ;;  %7571 = vst [vmem:[#allocation58_spill] sm:$0xff] %v6293_v13  ;;  %7572 = vst [vmem:[#allocation59_spill] sm:$0xff] %v6305_v52 }
  0x93   : > { %4874 = vmatpush3.msra.mxu1 %v4028_v54  ;;  %4761 = vmatprep.mubr.msk.f32.mxu1 %vm446_vm1, %v6259_v38  ;;  %v6301_v54 = vsel %vm615_vm3, %v598_v23, %v614_v31 }
  0x94   : > { %4841 = vmatprep.mubr.f32.mxu0 %v6269_v36  ;;  %4954 = vmatpush3.msra.mxu0 %v4012_v48  ;;  %v6309_v48 = vsel %vm615_vm3, %v614_v31, %v598_v23  ;;  %v4069_v23 = vld [vmem:[%s7415_s3 + $0x2d8] sm:$0xff] }
  0x95   : > { %4762 = vmatmul.mubr.f32.gmra.mxu1 %v6275_v20  ;;  %4842 = vmatmul.mubr.msk.f32.gmra.mxu0 %vm449_vm2, %v6279_v44  ;;  %7573 = vst [vmem:[#allocation60_spill] sm:$0xff] %v6309_v48  ;;  %v4117_v31 = vld [vmem:[%s7415_s3 + $0x3d8] sm:$0xff] }
  0x96   : > { %4875 = vmatprep.subr.mxu1 %v4027_v18  ;;  %4955 = vmatprep.subr.mxu0 %v4011_v19 }
  0x97   : > { %4876 = vmatpush3.msra.mxu1 %v4027_v18  ;;  %4764 = vmatprep.mubr.msk.f32.mxu1 %vm446_vm1, %v6293_v13  ;;  %v4073_v18 = vld [vmem:[%s7415_s3 + $0x2f8] sm:$0xff] }
  0x98   : > { %4844 = vmatprep.mubr.f32.mxu0 %v6301_v54  ;;  %4956 = vmatpush3.msra.mxu0 %v4011_v19  ;;  %v4120_v19 = vld [vmem:[%s7415_s3 + $0x3f0] sm:$0xff] }
  0x99   : > { %4765 = vmatmul.mubr.f32.gmra.mxu1 %v6305_v52  ;;  %4845 = vmatmul.mubr.msk.f32.gmra.mxu0 %vm449_vm2, %v6309_v48 }
  0x9a   : > { %4877 = vmatprep.subr.mxu1 %v4026_v61  ;;  %4957 = vmatprep.subr.mxu0 %v4010_v3 }
  0x9b   : > { %4878 = vmatpush3.msra.mxu1 %v4026_v61  ;;  %4879 = vmatprep.mubr.f32.mxu1 %v5533_v50  ;;  %v4072_v50 = vld [vmem:[%s7415_s3 + $0x2f0] sm:$0xff] }
  0x9c   : > { %4958 = vmatpush3.msra.mxu0 %v4010_v3  ;;  %4959 = vmatprep.mubr.msk.f32.mxu0 %vm446_vm1, %v5817_v57  ;;  %v4119_v57 = vld [vmem:[%s7415_s3 + $0x3e8] sm:$0xff]  ;;  %v4068_v61 = vld [vmem:[%s7415_s3 + $0x2d0] sm:$0xff] }
  0x9d   : > { %4880 = vmatmul.mubr.f32.vlgmr.msra.gmra.mxu1 %v5540_v55  ;;  %4960 = vmatmul.mubr.f32.vlgmr.msra.gmra.mxu0 %v5833_v1  ;;  %v4071_v55 = vld [vmem:[%s7415_s3 + $0x2e8] sm:$0xff]  ;;  %v4070_v1 = vld [vmem:[%s7415_s3 + $0x2e0] sm:$0xff]  ;;  %v4116_v3 = vld [vmem:[%s7415_s3 + $0x3d0] sm:$0xff] }
  0x9e   : > { %5007 = vmatprep.subr.mxu1 %v4073_v18  ;;  %5087 = vmatprep.subr.mxu0 %v4121_v29 }
  0x9f   : > { %5008 = vmatpush3.msra.mxu1 %v4073_v18  ;;  %4882 = vmatprep.mubr.f32.mxu1 %v5569_v6  ;;  %v4067_v18 = vld [vmem:[%s7415_s3 + $0x2c8] sm:$0xff] }
  0xa0   : > { %4962 = vmatprep.mubr.msk.f32.mxu0 %vm446_vm1, %v5851_v5  ;;  %5088 = vmatpush3.msra.mxu0 %v4121_v29  ;;  %v4115_v29 = vld [vmem:[%s7415_s3 + $0x3c8] sm:$0xff] }
  0xa1   : > { %4883 = vmatmul.mubr.f32.gmra.mxu1 %v5576_v12  ;;  %4963 = vmatmul.mubr.f32.gmra.mxu0 %v5867_v26 }
  0xa2   : > { %5009 = vmatprep.subr.mxu1 %v4072_v50  ;;  %5089 = vmatprep.subr.mxu0 %v4120_v19 }
  0xa3   : > { %5010 = vmatpush3.msra.mxu1 %v4072_v50  ;;  %4885 = vmatprep.mubr.f32.mxu1 %v5605_v28  ;;  %v4066_v50 = vld [vmem:[%s7415_s3 + $0x2c0] sm:$0xff] }
  0xa4   : > { %4965 = vmatprep.mubr.msk.f32.mxu0 %vm446_vm1, %v5885_v40  ;;  %5090 = vmatpush3.msra.mxu0 %v4120_v19  ;;  %v4114_v19 = vld [vmem:[%s7415_s3 + $0x3c0] sm:$0xff] }
  0xa5   : > { %4886 = vmatmul.mubr.f32.gmra.mxu1 %v5612_v34  ;;  %4966 = vmatmul.mubr.f32.gmra.mxu0 %v5901_v59 }
  0xa6   : > { %5011 = vmatprep.subr.mxu1 %v4071_v55  ;;  %5091 = vmatprep.subr.mxu0 %v4119_v57 }
  0xa7   : > { %5012 = vmatpush3.msra.mxu1 %v4071_v55  ;;  %4888 = vmatprep.mubr.f32.mxu1 %v5641_v53  ;;  %v4065_v55 = vld [vmem:[%s7415_s3 + $0x2b8] sm:$0xff] }
  0xa8   : > { %4968 = vmatprep.mubr.msk.f32.mxu0 %vm446_vm1, %v5919_v4  ;;  %5092 = vmatpush3.msra.mxu0 %v4119_v57  ;;  %v4113_v57 = vld [vmem:[%s7415_s3 + $0x3b8] sm:$0xff] }
  0xa9   : > { %4889 = vmatmul.mubr.f32.gmra.mxu1 %v5648_v60  ;;  %4969 = vmatmul.mubr.f32.gmra.mxu0 %v5935_v39 }
  0xaa   : > { %5013 = vmatprep.subr.mxu1 %v4070_v1  ;;  %5093 = vmatprep.subr.mxu0 %v4118_v10 }
  0xab   : > { %5014 = vmatpush3.msra.mxu1 %v4070_v1  ;;  %4891 = vmatprep.mubr.f32.mxu1 %v5677_v16  ;;  %v4064_v1 = vld [vmem:[%s7415_s3 + $0x2b0] sm:$0xff] }
  0xac   : > { %4971 = vmatprep.mubr.msk.f32.mxu0 %vm446_vm1, %v5953_v42  ;;  %5094 = vmatpush3.msra.mxu0 %v4118_v10  ;;  %v4112_v10 = vld [vmem:[%s7415_s3 + $0x3b0] sm:$0xff] }
  0xad   : > { %4892 = vmatmul.mubr.f32.gmra.mxu1 %v5684_v22  ;;  %4972 = vmatmul.mubr.f32.gmra.mxu0 %v5969_v24 }
  0xae   : > { %5015 = vmatprep.subr.mxu1 %v4069_v23  ;;  %5095 = vmatprep.subr.mxu0 %v4117_v31 }
  0xaf   : > { %5016 = vmatpush3.msra.mxu1 %v4069_v23  ;;  %4894 = vmatprep.mubr.f32.mxu1 %v5713_v43  ;;  %v7574_v23 = vld [vmem:[#allocation4_spill] sm:$0xff] }
  0xb0   : > { %4974 = vmatprep.mubr.msk.f32.mxu0 %vm446_vm1, %v5987_v11  ;;  %5096 = vmatpush3.msra.mxu0 %v4117_v31  ;;  %v7575_v31 = vld [vmem:[#allocation5_spill] sm:$0xff] }
  0xb1   : > { %4895 = vmatmul.mubr.f32.gmra.mxu1 %v5718_v47  ;;  %4975 = vmatmul.mubr.f32.gmra.mxu0 %v6003_v58 }
  0xb2   : > { %5017 = vmatprep.subr.mxu1 %v4068_v61  ;;  %5097 = vmatprep.subr.mxu0 %v4116_v3 }
  0xb3   : > { %5018 = vmatpush3.msra.mxu1 %v4068_v61  ;;  %4897 = vmatprep.mubr.f32.mxu1 %v5746_v8  ;;  %v4063_v61 = vld [vmem:[%s7415_s3 + $0x2a8] sm:$0xff] }
  0xb4   : > { %4977 = vmatprep.mubr.msk.f32.mxu0 %vm446_vm1, %v6021_v45  ;;  %5098 = vmatpush3.msra.mxu0 %v4116_v3  ;;  %v4111_v3 = vld [vmem:[%s7415_s3 + $0x3a8] sm:$0xff] }
  0xb5   : > { %4898 = vmatmul.mubr.f32.gmra.mxu1 %v5754_v15  ;;  %4978 = vmatmul.mubr.f32.gmra.mxu0 %v6037_v25 }
  0xb6   : > { %5019 = vmatprep.subr.mxu1 %v4067_v18  ;;  %5099 = vmatprep.subr.mxu0 %v4115_v29 }
  0xb7   : > { %5020 = vmatpush3.msra.mxu1 %v4067_v18  ;;  %4900 = vmatprep.mubr.f32.mxu1 %v5503_v33  ;;  %v7576_v18 = vld [vmem:[#allocation6_spill] sm:$0xff] }
  0xb8   : > { %4980 = vmatprep.mubr.msk.f32.mxu0 %vm446_vm1, %v6055_v37  ;;  %5100 = vmatpush3.msra.mxu0 %v4115_v29  ;;  %v7577_v29 = vld [vmem:[#allocation7_spill] sm:$0xff] }
  0xb9   : > { %4901 = vmatmul.mubr.f32.gmra.mxu1 %v5506_v35  ;;  %4981 = vmatmul.mubr.f32.gmra.mxu0 %v6071_v0 }
  0xba   : > { %5021 = vmatprep.subr.mxu1 %v4066_v50  ;;  %5101 = vmatprep.subr.mxu0 %v4114_v19 }
  0xbb   : > { %5022 = vmatpush3.msra.mxu1 %v4066_v50  ;;  %4903 = vmatprep.mubr.f32.mxu1 %v5535_v51  ;;  %v4062_v50 = vld [vmem:[%s7415_s3 + $0x2a0] sm:$0xff] }
  0xbc   : > { %4983 = vmatprep.mubr.msk.f32.mxu0 %vm446_vm1, %v6089_v46  ;;  %5102 = vmatpush3.msra.mxu0 %v4114_v19  ;;  %v4110_v19 = vld [vmem:[%s7415_s3 + $0x3a0] sm:$0xff] }
  0xbd   : > { %4904 = vmatmul.mubr.f32.gmra.mxu1 %v5542_v56  ;;  %4984 = vmatmul.mubr.f32.gmra.mxu0 %v6105_v32 }
  0xbe   : > { %5023 = vmatprep.subr.mxu1 %v4065_v55  ;;  %5103 = vmatprep.subr.mxu0 %v4113_v57 }
  0xbf   : > { %5024 = vmatpush3.msra.mxu1 %v4065_v55  ;;  %4906 = vmatprep.mubr.f32.mxu1 %v5571_v7  ;;  %v7578_v55 = vld [vmem:[#allocation8_spill] sm:$0xff] }
  0xc0   : > { %4986 = vmatprep.mubr.msk.f32.mxu0 %vm446_vm1, %v6123_v63  ;;  %5104 = vmatpush3.msra.mxu0 %v4113_v57  ;;  %v7579_v57 = vld [vmem:[#allocation9_spill] sm:$0xff]  ;;  %v4144_v63 = vld [vmem:[%s7415_s3 + $0x430] sm:$0xff] }
  0xc1   : > { %4907 = vmatmul.mubr.f32.gmra.mxu1 %v7574_v23  ;;  %4987 = vmatmul.mubr.f32.gmra.mxu0 %v6139_v49 }
  0xc2   : > { %5025 = vmatprep.subr.mxu1 %v4064_v1  ;;  %5105 = vmatprep.subr.mxu0 %v4112_v10 }
  0xc3   : > { %5026 = vmatpush3.msra.mxu1 %v4064_v1  ;;  %4909 = vmatprep.mubr.f32.mxu1 %v7575_v31  ;;  %v4061_v1 = vld [vmem:[%s7415_s3 + $0x298] sm:$0xff] }
  0xc4   : > { %4989 = vmatprep.mubr.msk.f32.mxu0 %vm446_vm1, %v6157_v30  ;;  %5106 = vmatpush3.msra.mxu0 %v4112_v10  ;;  %v4109_v10 = vld [vmem:[%s7415_s3 + $0x398] sm:$0xff] }
  0xc5   : > { %4910 = vmatmul.mubr.f32.gmra.mxu1 %v7576_v18  ;;  %4990 = vmatmul.mubr.f32.gmra.mxu0 %v6173_v17 }
  0xc6   : > { %5027 = vmatprep.subr.mxu1 %v4063_v61  ;;  %5107 = vmatprep.subr.mxu0 %v4111_v3 }
  0xc7   : > { %5028 = vmatpush3.msra.mxu1 %v4063_v61  ;;  %4912 = vmatprep.mubr.f32.mxu1 %v7577_v29  ;;  %v7580_v61 = vld [vmem:[#allocation10_spill] sm:$0xff] }
  0xc8   : > { %4992 = vmatprep.mubr.msk.f32.mxu0 %vm446_vm1, %v6191_v2  ;;  %5108 = vmatpush3.msra.mxu0 %v4111_v3  ;;  %v7581_v3 = vld [vmem:[#allocation11_spill] sm:$0xff]  ;;  %v4148_v2 = vld [vmem:[%s7415_s3 + $0x450] sm:$0xff] }
  0xc9   : > { %4913 = vmatmul.mubr.f32.gmra.mxu1 %v7578_v55  ;;  %4993 = vmatmul.mubr.f32.gmra.mxu0 %v6207_v62  ;;  %v4108_v62 = vld [vmem:[%s7415_s3 + $0x390] sm:$0xff] }
  0xca   : > { %5029 = vmatprep.subr.mxu1 %v4062_v50  ;;  %5109 = vmatprep.subr.mxu0 %v4110_v19 }
  0xcb   : > { %5030 = vmatpush3.msra.mxu1 %v4062_v50  ;;  %4915 = vmatprep.mubr.f32.mxu1 %v7579_v57  ;;  %v4060_v50 = vld [vmem:[%s7415_s3 + $0x290] sm:$0xff] }
  0xcc   : > { %4995 = vmatprep.mubr.msk.f32.mxu0 %vm446_vm1, %v6225_v41  ;;  %5110 = vmatpush3.msra.mxu0 %v4110_v19  ;;  %v7582_v19 = vld [vmem:[#allocation12_spill] sm:$0xff]  ;;  %v7585_v41 = vld [vmem:[#allocation19_spill] sm:$0xff] }
  0xcd   : > { %4916 = vmatmul.mubr.f32.gmra.mxu1 %v7580_v61  ;;  %4996 = vmatmul.mubr.f32.gmra.mxu0 %v6241_v21  ;;  %v4107_v21 = vld [vmem:[%s7415_s3 + $0x388] sm:$0xff] }
  0xce   : > { %5031 = vmatprep.subr.mxu1 %v4061_v1  ;;  %5111 = vmatprep.subr.mxu0 %v4109_v10 }
  0xcf   : > { %5032 = vmatpush3.msra.mxu1 %v4061_v1  ;;  %4918 = vmatprep.mubr.f32.mxu1 %v7581_v3  ;;  %v4059_v1 = vld [vmem:[%s7415_s3 + $0x288] sm:$0xff] }
  0xd0   : > { %4998 = vmatprep.mubr.msk.f32.mxu0 %vm446_vm1, %v6259_v38  ;;  %5112 = vmatpush3.msra.mxu0 %v4109_v10  ;;  %v7583_v10 = vld [vmem:[#allocation14_spill] sm:$0xff]  ;;  %v4106_v38 = vld [vmem:[%s7415_s3 + $0x380] sm:$0xff] }
  0xd1   : > { %4919 = vmatmul.mubr.f32.gmra.mxu1 %v7582_v19  ;;  %4999 = vmatmul.mubr.f32.gmra.mxu0 %v6275_v20  ;;  %v4058_v20 = vld [vmem:[%s7415_s3 + $0x280] sm:$0xff] }
  0xd2   : > { %5033 = vmatprep.subr.mxu1 %v4060_v50  ;;  %5113 = vmatprep.subr.mxu0 %v4108_v62 }
  0xd3   : > { %5034 = vmatpush3.msra.mxu1 %v4060_v50  ;;  %4921 = vmatprep.mubr.f32.mxu1 %v5748_v9  ;;  %v7584_v50 = vld [vmem:[#allocation15_spill] sm:$0xff] }
  0xd4   : > { %5001 = vmatprep.mubr.msk.f32.mxu0 %vm446_vm1, %v6293_v13  ;;  %5114 = vmatpush3.msra.mxu0 %v4108_v62  ;;  %v7586_v62 = vld [vmem:[#allocation16_spill] sm:$0xff]  ;;  %v7588_v13 = vld [vmem:[#allocation21_spill] sm:$0xff] }
  0xd5   : > { %4922 = vmatmul.mubr.f32.gmra.mxu1 %v7583_v10  ;;  %5002 = vmatmul.mubr.f32.gmra.mxu0 %v6305_v52  ;;  %v7587_v52 = vld [vmem:[#allocation20_spill] sm:$0xff] }
  0xd6   : > { %5035 = vmatprep.subr.mxu1 %v4059_v1  ;;  %5115 = vmatprep.subr.mxu0 %v4107_v21 }
  0xd7   : > { %5036 = vmatpush3.msra.mxu1 %v4059_v1  ;;  %4924 = vmatprep.mubr.f32.mxu1 %v7584_v50  ;;  %v4105_v1 = vld [vmem:[%s7415_s3 + $0x378] sm:$0xff] }
  0xd8   : > { %5004 = vmatprep.mubr.msk.f32.mxu0 %vm446_vm1, %v7585_v41  ;;  %5116 = vmatpush3.msra.mxu0 %v4107_v21  ;;  %v4153_v21 = vld [vmem:[%s7415_s3 + $0x478] sm:$0xff]  ;;  %v7589_v41 = vld [vmem:[#allocation22_spill] sm:$0xff] }
  0xd9   : > { %4925 = vmatmul.mubr.f32.gmra.mxu1 %v7586_v62  ;;  %5005 = vmatmul.mubr.f32.gmra.mxu0 %v7587_v52 }
  0xda   : > { %5037 = vmatprep.subr.mxu1 %v4058_v20  ;;  %5117 = vmatprep.subr.mxu0 %v4106_v38 }
  0xdb   : > { %5038 = vmatpush3.msra.mxu1 %v4058_v20  ;;  %5039 = vmatprep.mubr.f32.mxu1 %v7588_v13  ;;  %v4104_v20 = vld [vmem:[%s7415_s3 + $0x370] sm:$0xff]  ;;  %v7591_v13 = vld [vmem:[#allocation24_spill] sm:$0xff] }
  0xdc   : > { %5118 = vmatpush3.msra.mxu0 %v4106_v38  ;;  %5119 = vmatprep.mubr.f32.mxu0 %v5569_v6  ;;  %v7590_v38 = vld [vmem:[#allocation23_spill] sm:$0xff]  ;;  %v4152_v6 = vld [vmem:[%s7415_s3 + $0x470] sm:$0xff] }
  0xdd   : > { %5040 = vmatmul.mubr.msk.f32.vlgmr.msra.gmra.mxu1 %vm449_vm2, %v7589_v41  ;;  %5167 = vmatprep.subr.mxu1 %v4105_v1  ;;  %v7592_v41 = vld [vmem:[#allocation25_spill] sm:$0xff] }
  0xde   : > { %5120 = vmatmul.mubr.f32.vlgmr.msra.gmra.mxu0 %v5576_v12  ;;  %5168 = vmatpush3.msra.mxu1 %v4105_v1  ;;  %v4103_v12 = vld [vmem:[%s7415_s3 + $0x368] sm:$0xff]  ;;  %v7593_v1 = vld [vmem:[#allocation26_spill] sm:$0xff] }
  0xdf   : > { %5247 = vmatprep.subr.mxu0 %v4153_v21  ;;  %5042 = vmatprep.mubr.f32.mxu1 %v7590_v38 }
  0xe0   : > { %5248 = vmatpush3.msra.mxu0 %v4153_v21  ;;  %5122 = vmatprep.mubr.f32.mxu0 %v5605_v28  ;;  %v4151_v28 = vld [vmem:[%s7415_s3 + $0x468] sm:$0xff]  ;;  %v7594_v21 = vld [vmem:[#allocation27_spill] sm:$0xff] }
  0xe1   : > { %5043 = vmatmul.mubr.msk.f32.gmra.mxu1 %vm449_vm2, %v7591_v13  ;;  %5169 = vmatprep.subr.mxu1 %v4104_v20 }
  0xe2   : > { %5123 = vmatmul.mubr.f32.gmra.mxu0 %v5612_v34  ;;  %5170 = vmatpush3.msra.mxu1 %v4104_v20  ;;  %v4102_v34 = vld [vmem:[%s7415_s3 + $0x360] sm:$0xff] }
  0xe3   : > { %5249 = vmatprep.subr.mxu0 %v4152_v6  ;;  %5045 = vmatprep.mubr.f32.mxu1 %v7592_v41  ;;  %v7595_v20 = vld [vmem:[#allocation28_spill] sm:$0xff] }
  0xe4   : > { %5250 = vmatpush3.msra.mxu0 %v4152_v6  ;;  %5125 = vmatprep.mubr.f32.mxu0 %v5641_v53  ;;  %v4150_v53 = vld [vmem:[%s7415_s3 + $0x460] sm:$0xff]  ;;  %v7596_v6 = vld [vmem:[#allocation29_spill] sm:$0xff] }
  0xe5   : > { %5046 = vmatmul.mubr.msk.f32.gmra.mxu1 %vm449_vm2, %v7593_v1  ;;  %5171 = vmatprep.subr.mxu1 %v4103_v12 }
  0xe6   : > { %5126 = vmatmul.mubr.f32.gmra.mxu0 %v5648_v60  ;;  %5172 = vmatpush3.msra.mxu1 %v4103_v12  ;;  %v4101_v60 = vld [vmem:[%s7415_s3 + $0x358] sm:$0xff]  ;;  %v7597_v12 = vld [vmem:[#allocation30_spill] sm:$0xff] }
  0xe7   : > { %5251 = vmatprep.subr.mxu0 %v4151_v28  ;;  %5048 = vmatprep.mubr.f32.mxu1 %v7594_v21 }
  0xe8   : > { %5252 = vmatpush3.msra.mxu0 %v4151_v28  ;;  %5128 = vmatprep.mubr.f32.mxu0 %v5677_v16  ;;  %v4149_v16 = vld [vmem:[%s7415_s3 + $0x458] sm:$0xff] }
  0xe9   : > { %5049 = vmatmul.mubr.msk.f32.gmra.mxu1 %vm449_vm2, %v7595_v20  ;;  %5173 = vmatprep.subr.mxu1 %v4102_v34 }
  0xea   : > { %5129 = vmatmul.mubr.f32.gmra.mxu0 %v5684_v22  ;;  %5174 = vmatpush3.msra.mxu1 %v4102_v34  ;;  %v7599_v34 = vld [vmem:[#allocation31_spill] sm:$0xff] }
  0xeb   : > { %5253 = vmatprep.subr.mxu0 %v4150_v53  ;;  %5051 = vmatprep.mubr.f32.mxu1 %v7596_v6 }
  0xec   : > { %5254 = vmatpush3.msra.mxu0 %v4150_v53  ;;  %5131 = vmatprep.mubr.f32.mxu0 %v5713_v43  ;;  %v4100_v43 = vld [vmem:[%s7415_s3 + $0x350] sm:$0xff] }
  0xed   : > { %5052 = vmatmul.mubr.msk.f32.gmra.mxu1 %vm449_vm2, %v7597_v12  ;;  %5175 = vmatprep.subr.mxu1 %v4101_v60  ;;  %v6576_v22 = vpop.f32.mrf.mxu0  ;;  %v6578_v28 = vpop.f32.mrf.mxu1 }
  0xee   : > { %7598 = vst [vmem:[#allocation4_spill] sm:$0xff] %v6578_v28  ;;  %5132 = vmatmul.mubr.f32.gmra.mxu0 %v5718_v47  ;;  %5176 = vmatpush3.msra.mxu1 %v4101_v60  ;;  %v7601_v47 = vld [vmem:[#allocation32_spill] sm:$0xff]  ;;  %v4099_v60 = vld [vmem:[%s7415_s3 + $0x348] sm:$0xff] }
  0xef   : > { %5255 = vmatprep.subr.mxu0 %v4149_v16  ;;  %5054 = vmatprep.mubr.f32.mxu1 %v7599_v34  ;;  %v6585_v53 = vpop.f32.mrf.mxu0  ;;  %v6587_v52 = vpop.f32.mrf.mxu1  ;;  %v7607_v28 = vld [vmem:[#allocation36_spill] sm:$0xff] }
  0xf0   : > { %7600 = vst [vmem:[#allocation5_spill] sm:$0xff] %v6587_v52  ;;  %5256 = vmatpush3.msra.mxu0 %v4149_v16  ;;  %5134 = vmatprep.mubr.f32.mxu0 %v5746_v8  ;;  %v7602_v16 = vld [vmem:[#allocation33_spill] sm:$0xff] }
  0xf1   : > { %5055 = vmatmul.mubr.msk.f32.gmra.mxu1 %vm449_vm2, %v7601_v47  ;;  %5177 = vmatprep.subr.mxu1 %v4100_v43  ;;  %v4147_v52 = vld [vmem:[%s7415_s3 + $0x448] sm:$0xff] }
  0xf2   : > { %5135 = vmatmul.mubr.f32.gmra.mxu0 %v5754_v15  ;;  %5178 = vmatpush3.msra.mxu1 %v4100_v43  ;;  %v7604_v15 = vld [vmem:[#allocation34_spill] sm:$0xff] }
  0xf3   : > { %5257 = vmatprep.subr.mxu0 %v4148_v2  ;;  %5057 = vmatprep.mubr.f32.mxu1 %v7602_v16  ;;  %v6601_v8 = vpop.f32.mrf.mxu0  ;;  %v6603_v17 = vpop.f32.mrf.mxu1 }
  0xf4   : > { %7603 = vst [vmem:[#allocation6_spill] sm:$0xff] %v6603_v17  ;;  %5258 = vmatpush3.msra.mxu0 %v4148_v2  ;;  %5137 = vmatprep.mubr.f32.mxu0 %v5503_v33  ;;  %v4098_v33 = vld [vmem:[%s7415_s3 + $0x340] sm:$0xff]  ;;  %v7606_v2 = vld [vmem:[#allocation35_spill] sm:$0xff] }
  0xf5   : > { %5058 = vmatmul.mubr.msk.f32.gmra.mxu1 %vm449_vm2, %v7604_v15  ;;  %5179 = vmatprep.subr.mxu1 %v4099_v60  ;;  %v6612_v43 = vpop.f32.mrf.mxu0  ;;  %v6614_v30 = vpop.f32.mrf.mxu1  ;;  %v4146_v17 = vld [vmem:[%s7415_s3 + $0x440] sm:$0xff] }
  0xf6   : > { %7605 = vst [vmem:[#allocation7_spill] sm:$0xff] %v6614_v30  ;;  %5138 = vmatmul.mubr.f32.gmra.mxu0 %v5506_v35  ;;  %5180 = vmatpush3.msra.mxu1 %v4099_v60 }
  0xf7   : > { %5259 = vmatprep.subr.mxu0 %v4147_v52  ;;  %5060 = vmatprep.mubr.f32.mxu1 %v7606_v2 }
  0xf8   : > { %5260 = vmatpush3.msra.mxu0 %v4147_v52  ;;  %5140 = vmatprep.mubr.f32.mxu0 %v5535_v51  ;;  %v4097_v51 = vld [vmem:[%s7415_s3 + $0x338] sm:$0xff]  ;;  %v7609_v52 = vld [vmem:[#allocation37_spill] sm:$0xff] }
  0xf9   : > { %5061 = vmatmul.mubr.msk.f32.gmra.mxu1 %vm449_vm2, %v7607_v28  ;;  %5181 = vmatprep.subr.mxu1 %v4098_v33  ;;  %v6628_v35 = vpop.f32.mrf.mxu0  ;;  %v6630_v60 = vpop.f32.mrf.mxu1 }
  0xfa   : > { %7608 = vst [vmem:[#allocation8_spill] sm:$0xff] %v6630_v60  ;;  %5141 = vmatmul.mubr.f32.gmra.mxu0 %v5542_v56  ;;  %5182 = vmatpush3.msra.mxu1 %v4098_v33  ;;  %v4145_v60 = vld [vmem:[%s7415_s3 + $0x438] sm:$0xff]  ;;  %v7611_v56 = vld [vmem:[#allocation38_spill] sm:$0xff] }
  0xfb   : > { %5261 = vmatprep.subr.mxu0 %v4146_v17  ;;  %5063 = vmatprep.mubr.f32.mxu1 %v7609_v52  ;;  %v6637_v30 = vpop.f32.mrf.mxu0  ;;  %v6639_v49 = vpop.f32.mrf.mxu1  ;;  %v4096_v33 = vld [vmem:[%s7415_s3 + $0x330] sm:$0xff] }
  0xfc   : > { %7610 = vst [vmem:[#allocation9_spill] sm:$0xff] %v6639_v49  ;;  %5262 = vmatpush3.msra.mxu0 %v4146_v17  ;;  %5143 = vmatprep.mubr.f32.mxu0 %v5571_v7  ;;  %v7612_v17 = vld [vmem:[#allocation40_spill] sm:$0xff] }
  0xfd   : > { %5064 = vmatmul.mubr.msk.f32.gmra.mxu1 %vm449_vm2, %v7611_v56  ;;  %5183 = vmatprep.subr.mxu1 %v4097_v51 }
  0xfe   : > { %5144 = vmatmul.mubr.f32.gmra.mxu0 %v7574_v23  ;;  %5184 = vmatpush3.msra.mxu1 %v4097_v51  ;;  %v7614_v23 = vld [vmem:[#allocation42_spill] sm:$0xff] }
  0xff   : > { %5263 = vmatprep.subr.mxu0 %v4145_v60  ;;  %5066 = vmatprep.mubr.f32.mxu1 %v7612_v17  ;;  %v6653_v7 = vpop.f32.mrf.mxu0  ;;  %v6655_v49 = vpop.f32.mrf.mxu1 }
 0x100   : > { %7613 = vst [vmem:[#allocation10_spill] sm:$0xff] %v6655_v49  ;;  %5264 = vmatpush3.msra.mxu0 %v4145_v60  ;;  %5146 = vmatprep.mubr.f32.mxu0 %v7575_v31  ;;  %v4095_v31 = vld [vmem:[%s7415_s3 + $0x328] sm:$0xff]  ;;  %v7616_v60 = vld [vmem:[#allocation44_spill] sm:$0xff] }
 0x101   : > { %5067 = vmatmul.mubr.msk.f32.gmra.mxu1 %vm449_vm2, %v7614_v23  ;;  %5185 = vmatprep.subr.mxu1 %v4096_v33  ;;  %v6664_v51 = vpop.f32.mrf.mxu0  ;;  %v6666_v56 = vpop.f32.mrf.mxu1  ;;  %v4143_v49 = vld [vmem:[%s7415_s3 + $0x428] sm:$0xff]  ;;  %v7617_v23 = vld [vmem:[#allocation46_spill] sm:$0xff] }
 0x102   : > { %7615 = vst [vmem:[#allocation11_spill] sm:$0xff] %v6666_v56  ;;  %5147 = vmatmul.mubr.f32.gmra.mxu0 %v7576_v18  ;;  %5186 = vmatpush3.msra.mxu1 %v4096_v33 }
 0x103   : > { %5265 = vmatprep.subr.mxu0 %v4144_v63  ;;  %5069 = vmatprep.mubr.f32.mxu1 %v7616_v60 }
 0x104   : > { %5266 = vmatpush3.msra.mxu0 %v4144_v63  ;;  %5149 = vmatprep.mubr.f32.mxu0 %v7577_v29  ;;  %v4094_v63 = vld [vmem:[%s7415_s3 + $0x320] sm:$0xff] }
 0x105   : > { %5070 = vmatmul.mubr.msk.f32.gmra.mxu1 %vm449_vm2, %v7617_v23  ;;  %5187 = vmatprep.subr.mxu1 %v4095_v31  ;;  %v6680_v18 = vpop.f32.mrf.mxu0  ;;  %v6682_v33 = vpop.f32.mrf.mxu1  ;;  %v7619_v29 = vld [vmem:[#allocation48_spill] sm:$0xff] }
 0x106   : > { %7618 = vst [vmem:[#allocation12_spill] sm:$0xff] %v6682_v33  ;;  %5150 = vmatmul.mubr.f32.gmra.mxu0 %v7578_v55  ;;  %5188 = vmatpush3.msra.mxu1 %v4095_v31  ;;  %v4142_v33 = vld [vmem:[%s7415_s3 + $0x420] sm:$0xff]  ;;  %v7621_v55 = vld [vmem:[#allocation50_spill] sm:$0xff]  ;;  %v4093_v31 = vld [vmem:[%s7415_s3 + $0x318] sm:$0xff] }
 0x107   : > { %5267 = vmatprep.subr.mxu0 %v4143_v49  ;;  %5072 = vmatprep.mubr.f32.mxu1 %v7619_v29  ;;  %v6689_v56 = vpop.f32.mrf.mxu0  ;;  %v6691_v60 = vpop.f32.mrf.mxu1 }
 0x108   : > { %7620 = vst [vmem:[#allocation14_spill] sm:$0xff] %v6691_v60  ;;  %5268 = vmatpush3.msra.mxu0 %v4143_v49  ;;  %5152 = vmatprep.mubr.f32.mxu0 %v7579_v57  ;;  %v7622_v49 = vld [vmem:[#allocation52_spill] sm:$0xff] }
 0x109   : > { %5073 = vmatmul.mubr.msk.f32.gmra.mxu1 %vm449_vm2, %v7621_v55  ;;  %5189 = vmatprep.subr.mxu1 %v4094_v63  ;;  %v4141_v55 = vld [vmem:[%s7415_s3 + $0x418] sm:$0xff] }
 0x10a   : > { %5153 = vmatmul.mubr.f32.gmra.mxu0 %v7580_v61  ;;  %5190 = vmatpush3.msra.mxu1 %v4094_v63  ;;  %v7624_v61 = vld [vmem:[#allocation54_spill] sm:$0xff] }
 0x10b   : > { %5269 = vmatprep.subr.mxu0 %v4142_v33  ;;  %5075 = vmatprep.mubr.f32.mxu1 %v7622_v49  ;;  %v6705_v57 = vpop.f32.mrf.mxu0  ;;  %v6707_v60 = vpop.f32.mrf.mxu1 }
 0x10c   : > { %7623 = vst [vmem:[#allocation15_spill] sm:$0xff] %v6707_v60  ;;  %5270 = vmatpush3.msra.mxu0 %v4142_v33  ;;  %5155 = vmatprep.mubr.f32.mxu0 %v7581_v3  ;;  %v4092_v3 = vld [vmem:[%s7415_s3 + $0x310] sm:$0xff]  ;;  %v1616_v60 = vrot.slane %v7584_v50, 1 }
 0x10d   : > { %5076 = vmatmul.mubr.msk.f32.gmra.mxu1 %vm449_vm2, %v7624_v61  ;;  %5191 = vmatprep.subr.mxu1 %v4093_v31  ;;  %v6716_v63 = vpop.f32.mrf.mxu0  ;;  %v6718_v29 = vpop.f32.mrf.mxu1  ;;  %v4140_v33 = vld [vmem:[%s7415_s3 + $0x410] sm:$0xff] }
 0x10e   : > { %7625 = vst [vmem:[#allocation16_spill] sm:$0xff] %v6718_v29  ;;  %5156 = vmatmul.mubr.f32.gmra.mxu0 %v7582_v19  ;;  %5192 = vmatpush3.msra.mxu1 %v4093_v31  ;;  %v1632_v29 = vrot.slane %v7586_v62, 1 }
 0x10f   : > { %5271 = vmatprep.subr.mxu0 %v4141_v55  ;;  %5078 = vmatprep.mubr.f32.mxu1 %v6269_v36 }
 0x110   : > { %5272 = vmatpush3.msra.mxu0 %v4141_v55  ;;  %5158 = vmatprep.mubr.f32.mxu0 %v5748_v9  ;;  %v4091_v9 = vld [vmem:[%s7415_s3 + $0x308] sm:$0xff] }
 0x111   : > { %5079 = vmatmul.mubr.msk.f32.gmra.mxu1 %vm449_vm2, %v6279_v44  ;;  %5193 = vmatprep.subr.mxu1 %v4092_v3  ;;  %v6734_v19 = vpop.f32.mrf.mxu0  ;;  %v6736_v31 = vpop.f32.mrf.mxu1 }
 0x112   : > { %7626 = vst [vmem:[#allocation21_spill] sm:$0xff] %v6736_v31  ;;  %5159 = vmatmul.mubr.f32.gmra.mxu0 %v7583_v10  ;;  %5194 = vmatpush3.msra.mxu1 %v4092_v3  ;;  %v4139_v31 = vld [vmem:[%s7415_s3 + $0x408] sm:$0xff]  ;;  %v6753_v10 = vsel %vm615_vm3, %v1616_v60, %v1632_v29  ;;  %v6761_v3 = vsel %vm615_vm3, %v1632_v29, %v1616_v60 }
 0x113   : > { %5273 = vmatprep.subr.mxu0 %v4140_v33  ;;  %5081 = vmatprep.mubr.f32.mxu1 %v6301_v54  ;;  %v6743_v55 = vpop.f32.mrf.mxu0  ;;  %v6745_v36 = vpop.f32.mrf.mxu1 }
 0x114   : > { %7627 = vst [vmem:[#allocation22_spill] sm:$0xff] %v6745_v36  ;;  %5274 = vmatpush3.msra.mxu0 %v4140_v33  ;;  %5161 = vmatprep.mubr.f32.mxu0 %v7584_v50  ;;  %v4090_v50 = vld [vmem:[%s7415_s3 + $0x300] sm:$0xff] }
 0x115   : > { %5082 = vmatmul.mubr.msk.f32.gmra.mxu1 %vm449_vm2, %v6309_v48  ;;  %5195 = vmatprep.subr.mxu1 %v4091_v9  ;;  %v7629_v48 = vmov 0.0  }
 0x116   : > { %5162 = vmatmul.mubr.f32.gmra.mxu0 %v7586_v62  ;;  %5196 = vmatpush3.msra.mxu1 %v4091_v9  ;;  %v4138_v62 = vld [vmem:[%s7415_s3 + $0x400] sm:$0xff] }
 0x117   : > { %5275 = vmatprep.subr.mxu0 %v4139_v31  ;;  %5084 = vmatprep.mubr.f32.mxu1 %v6753_v10  ;;  %v6767_v33 = vpop.f32.mrf.mxu0  ;;  %v6769_v36 = vpop.f32.mrf.mxu1 }
 0x118   : > { %7628 = vst [vmem:[#allocation23_spill] sm:$0xff] %v6769_v36  ;;  %5276 = vmatpush3.msra.mxu0 %v4139_v31  ;;  %5164 = vmatprep.mubr.f32.mxu0 %v7629_v48 }
 0x119   : > { %5085 = vmatmul.mubr.msk.f32.gmra.mxu1 %vm449_vm2, %v6761_v3  ;;  %5197 = vmatprep.subr.mxu1 %v4090_v50  ;;  %v6778_v60 = vpop.f32.mrf.mxu0  ;;  %v6780_v29 = vpop.f32.mrf.mxu1 }
 0x11a   : > { %5165 = vmatmul.mubr.f32.gmra.mxu0 %v7629_v48  ;;  %5198 = vmatpush3.msra.mxu1 %v4090_v50 }
 0x11b   : > { %5277 = vmatprep.subr.mxu0 %v4138_v62  ;;  %5199 = vmatprep.mubr.msk.f32.mxu1 %vm446_vm1, %v5851_v5 }
 0x11c   : > { %5278 = vmatpush3.msra.mxu0 %v4138_v62  ;;  %5279 = vmatprep.mubr.f32.mxu0 %v7590_v38 }
 0x11d   : > { %v4721_v31 = vpop.f32.mrf.mxu1  ;;  %v4801_v9 = vpop.f32.mrf.mxu0  ;;  %5200 = vmatmul.mubr.f32.vlgmr.msra.gmra.mxu1 %v5867_v26 }
 0x11e   : > { %v1014_v36 = vadd.f32 %v4721_v31, %v6576_v22  ;;  %5280 = vmatmul.mubr.msk.f32.vlgmr.msra.gmra.mxu0 %vm449_vm2, %v7591_v13  ;;  %5202 = vmatprep.mubr.msk.f32.mxu1 %vm446_vm1, %v5885_v40 }
 0x11f   : > { %v1008_v48 = vpop.f32.mrf.mxu1  ;;  %v1250_v50 = vpop.f32.mrf.mxu0  ;;  %5282 = vmatprep.mubr.f32.mxu0 %v7592_v41 }
 0x120   : > { %v6796_v5 = vadd.f32 %v4801_v9, %v1014_v36  ;;  %v1009_v38 = vadd.f32 %v1008_v48, %v6585_v53 }
 0x121   : > { %v4724_v62 = vpop.f32.mrf.mxu1  ;;  %v4804_v26 = vpop.f32.mrf.mxu0  ;;  %5203 = vmatmul.mubr.f32.gmra.mxu1 %v5901_v59 }
 0x122   : > { %v6800_v22 = vadd.f32 %v1250_v50, %v1009_v38  ;;  %v1024_v13 = vadd.f32 %v4724_v62, %v6601_v8  ;;  %5283 = vmatmul.mubr.msk.f32.gmra.mxu0 %vm449_vm2, %v7593_v1  ;;  %5205 = vmatprep.mubr.msk.f32.mxu1 %vm446_vm1, %v5919_v4 }
 0x123   : > { %v1018_v40 = vpop.f32.mrf.mxu1  ;;  %v1260_v36 = vpop.f32.mrf.mxu0  ;;  %5285 = vmatprep.mubr.f32.mxu0 %v7594_v21 }
 0x124   : > { %v6810_v41 = vadd.f32 %v4804_v26, %v1024_v13  ;;  %v1019_v59 = vadd.f32 %v1018_v40, %v6612_v43 }
 0x125   : > { %v4727_v53 = vpop.f32.mrf.mxu1  ;;  %v4807_v31 = vpop.f32.mrf.mxu0  ;;  %5206 = vmatmul.mubr.f32.gmra.mxu1 %v5935_v39 }
 0x126   : > { %v6814_v8 = vadd.f32 %v1260_v36, %v1019_v59  ;;  %v1034_v1 = vadd.f32 %v4727_v53, %v6628_v35  ;;  %5286 = vmatmul.mubr.msk.f32.gmra.mxu0 %vm449_vm2, %v7595_v20  ;;  %5208 = vmatprep.mubr.msk.f32.mxu1 %vm446_vm1, %v5953_v42  ;;  %v7630_v53 = vld [vmem:[#allocation38_spill] sm:$0xff] }
 0x127   : > { %v1028_v4 = vpop.f32.mrf.mxu1  ;;  %v1270_v21 = vpop.f32.mrf.mxu0  ;;  %5288 = vmatprep.mubr.f32.mxu0 %v7596_v6 }
 0x128   : > { %v6824_v43 = vadd.f32 %v4807_v31, %v1034_v1  ;;  %v1029_v39 = vadd.f32 %v1028_v4, %v6637_v30 }
 0x129   : > { %v4730_v9 = vpop.f32.mrf.mxu1  ;;  %v4810_v48 = vpop.f32.mrf.mxu0  ;;  %5209 = vmatmul.mubr.f32.gmra.mxu1 %v5969_v24 }
 0x12a   : > { %v6828_v35 = vadd.f32 %v1270_v21, %v1029_v39  ;;  %v1044_v20 = vadd.f32 %v4730_v9, %v6653_v7  ;;  %5289 = vmatmul.mubr.msk.f32.gmra.mxu0 %vm449_vm2, %v7597_v12  ;;  %5211 = vmatprep.mubr.msk.f32.mxu1 %vm446_vm1, %v5987_v11  ;;  %v7632_v21 = vld [vmem:[#allocation41_spill] sm:$0xff]  ;;  %v7633_v39 = vld [vmem:[#allocation4_spill] sm:$0xff] }
 0x12b   : > { %v1038_v42 = vpop.f32.mrf.mxu1  ;;  %v1280_v6 = vpop.f32.mrf.mxu0  ;;  %5291 = vmatprep.mubr.f32.mxu0 %v7599_v34 }
 0x12c   : > { %v6838_v30 = vadd.f32 %v4810_v48, %v1044_v20  ;;  %v1039_v24 = vadd.f32 %v1038_v42, %v6664_v51  ;;  %v7634_v48 = vld [vmem:[#allocation42_spill] sm:$0xff]  ;;  %v7635_v20 = vld [vmem:[#allocation43_spill] sm:$0xff] }
 0x12d   : > { %v4733_v50 = vpop.f32.mrf.mxu1  ;;  %v4813_v38 = vpop.f32.mrf.mxu0  ;;  %5212 = vmatmul.mubr.f32.gmra.mxu1 %v6003_v58 }
 0x12e   : > { %v6842_v7 = vadd.f32 %v1280_v6, %v1039_v24  ;;  %v1054_v12 = vadd.f32 %v4733_v50, %v6680_v18  ;;  %5292 = vmatmul.mubr.msk.f32.gmra.mxu0 %vm449_vm2, %v7601_v47  ;;  %5214 = vmatprep.mubr.msk.f32.mxu1 %vm446_vm1, %v6021_v45  ;;  %v7636_v6 = vld [vmem:[#allocation44_spill] sm:$0xff]  ;;  %v7637_v24 = vld [vmem:[#allocation5_spill] sm:$0xff] }
 0x12f   : > { %v1048_v11 = vpop.f32.mrf.mxu1  ;;  %v1290_v34 = vpop.f32.mrf.mxu0  ;;  %5294 = vmatprep.mubr.f32.mxu0 %v7602_v16 }
 0x130   : > { %v6852_v51 = vadd.f32 %v4813_v38, %v1054_v12  ;;  %v1049_v58 = vadd.f32 %v1048_v11, %v6689_v56  ;;  %v7638_v11 = vld [vmem:[#allocation45_spill] sm:$0xff] }
 0x131   : > { %v4736_v62 = vpop.f32.mrf.mxu1  ;;  %v4816_v26 = vpop.f32.mrf.mxu0  ;;  %5215 = vmatmul.mubr.f32.gmra.mxu1 %v6037_v25 }
 0x132   : > { %v6856_v18 = vadd.f32 %v1290_v34, %v1049_v58  ;;  %v1064_v47 = vadd.f32 %v4736_v62, %v6705_v57  ;;  %5295 = vmatmul.mubr.msk.f32.gmra.mxu0 %vm449_vm2, %v7604_v15  ;;  %5217 = vmatprep.mubr.msk.f32.mxu1 %vm446_vm1, %v6055_v37  ;;  %v7639_v58 = vld [vmem:[#allocation6_spill] sm:$0xff] }
 0x133   : > { %v1058_v45 = vpop.f32.mrf.mxu1  ;;  %v1300_v16 = vpop.f32.mrf.mxu0  ;;  %5297 = vmatprep.mubr.f32.mxu0 %v7606_v2 }
 0x134   : > { %v6866_v56 = vadd.f32 %v4816_v26, %v1064_v47  ;;  %v1059_v25 = vadd.f32 %v1058_v45, %v6716_v63  ;;  %v7640_v26 = vld [vmem:[#allocation47_spill] sm:$0xff] }
 0x135   : > { %v4739_v13 = vpop.f32.mrf.mxu1  ;;  %v4819_v40 = vpop.f32.mrf.mxu0  ;;  %5218 = vmatmul.mubr.f32.gmra.mxu1 %v6071_v0 }
 0x136   : > { %v6870_v57 = vadd.f32 %v1300_v16, %v1059_v25  ;;  %v1074_v15 = vadd.f32 %v4739_v13, %v6734_v19  ;;  %5298 = vmatmul.mubr.msk.f32.gmra.mxu0 %vm449_vm2, %v7607_v28  ;;  %5220 = vmatprep.mubr.msk.f32.mxu1 %vm446_vm1, %v6089_v46  ;;  %v7631_v46 = vld [vmem:[#allocation39_spill] sm:$0xff]  ;;  %v7641_v16 = vld [vmem:[#allocation48_spill] sm:$0xff] }
 0x137   : > { %v1068_v37 = vpop.f32.mrf.mxu1  ;;  %v1310_v2 = vpop.f32.mrf.mxu0  ;;  %5300 = vmatprep.mubr.f32.mxu0 %v7609_v52  ;;  %v7642_v13 = vld [vmem:[#allocation7_spill] sm:$0xff] }
 0x138   : > { %v6880_v63 = vadd.f32 %v4819_v40, %v1074_v15  ;;  %v1069_v0 = vadd.f32 %v1068_v37, %v6743_v55 }
 0x139   : > { %v4742_v36 = vpop.f32.mrf.mxu1  ;;  %v4822_v59 = vpop.f32.mrf.mxu0  ;;  %5221 = vmatmul.mubr.f32.gmra.mxu1 %v6105_v32 }
 0x13a   : > { %v6884_v19 = vadd.f32 %v1310_v2, %v1069_v0  ;;  %v1084_v28 = vadd.f32 %v4742_v36, %v6767_v33  ;;  %5301 = vmatmul.mubr.msk.f32.gmra.mxu0 %vm449_vm2, %v7630_v53  ;;  %5223 = vmatprep.mubr.msk.f32.mxu1 %vm446_vm1, %v7631_v46  ;;  %v7643_v2 = vld [vmem:[#allocation49_spill] sm:$0xff]  ;;  %v7644_v36 = vld [vmem:[#allocation8_spill] sm:$0xff] }
 0x13b   : > { %v1078_v52 = vpop.f32.mrf.mxu1  ;;  %v1320_v31 = vpop.f32.mrf.mxu0  ;;  %5303 = vmatprep.mubr.f32.mxu0 %v7612_v17 }
 0x13c   : > { %v6894_v55 = vadd.f32 %v4822_v59, %v1084_v28  ;;  %v1079_v32 = vadd.f32 %v1078_v52, %v6778_v60  ;;  %v7645_v59 = vld [vmem:[#allocation50_spill] sm:$0xff]  ;;  %v7646_v28 = vld [vmem:[#allocation51_spill] sm:$0xff] }
 0x13d   : > { %v4745_v1 = vpop.f32.mrf.mxu1  ;;  %v4825_v4 = vpop.f32.mrf.mxu0  ;;  %5224 = vmatmul.mubr.f32.gmra.mxu1 %v7632_v21  ;;  %v7648_v21 = vld [vmem:[#allocation53_spill] sm:$0xff] }
 0x13e   : > { %v6898_v33 = vadd.f32 %v1320_v31, %v1079_v32  ;;  %v1094_v9 = vadd.f32 %v4745_v1, %v7633_v39  ;;  %5304 = vmatmul.mubr.msk.f32.gmra.mxu0 %vm449_vm2, %v7634_v48  ;;  %5226 = vmatprep.mubr.msk.f32.mxu1 %vm446_vm1, %v7635_v20  ;;  %v7647_v31 = vld [vmem:[#allocation9_spill] sm:$0xff]  ;;  %v7650_v20 = vld [vmem:[#allocation55_spill] sm:$0xff] }
 0x13f   : > { %v1088_v17 = vpop.f32.mrf.mxu1  ;;  %v1330_v42 = vpop.f32.mrf.mxu0  ;;  %5306 = vmatprep.mubr.f32.mxu0 %v7636_v6 }
 0x140   : > { %v6908_v60 = vadd.f32 %v4825_v4, %v1094_v9  ;;  %v1089_v50 = vadd.f32 %v1088_v17, %v7637_v24  ;;  %v7649_v9 = vld [vmem:[#allocation10_spill] sm:$0xff]  ;;  %v7652_v24 = vld [vmem:[#allocation11_spill] sm:$0xff] }
 0x141   : > { %v4748_v38 = vpop.f32.mrf.mxu1  ;;  %v4828_v12 = vpop.f32.mrf.mxu0  ;;  %5227 = vmatmul.mubr.f32.gmra.mxu1 %v7638_v11  ;;  %v7653_v11 = vld [vmem:[#allocation57_spill] sm:$0xff] }
 0x142   : > { %v6912_v34 = vadd.f32 %v1330_v42, %v1089_v50  ;;  %v1104_v62 = vadd.f32 %v4748_v38, %v7639_v58  ;;  %5307 = vmatmul.mubr.msk.f32.gmra.mxu0 %vm449_vm2, %v7617_v23  ;;  %5229 = vmatprep.mubr.msk.f32.mxu1 %vm446_vm1, %v7640_v26  ;;  %v7651_v42 = vld [vmem:[#allocation56_spill] sm:$0xff]  ;;  %v7656_v26 = vld [vmem:[#allocation58_spill] sm:$0xff] }
 0x143   : > { %v1098_v47 = vpop.f32.mrf.mxu1  ;;  %v1340_v45 = vpop.f32.mrf.mxu0  ;;  %5309 = vmatprep.mubr.f32.mxu0 %v7641_v16 }
 0x144   : > { %v6922_v25 = vadd.f32 %v4828_v12, %v1104_v62  ;;  %v1099_v40 = vadd.f32 %v1098_v47, %v7642_v13  ;;  %v7655_v62 = vld [vmem:[#allocation12_spill] sm:$0xff]  ;;  %v7658_v13 = vld [vmem:[#allocation14_spill] sm:$0xff] }
 0x145   : > { %v4751_v15 = vpop.f32.mrf.mxu1  ;;  %v4831_v37 = vpop.f32.mrf.mxu0  ;;  %5230 = vmatmul.mubr.f32.gmra.mxu1 %v7643_v2  ;;  %v7659_v2 = vld [vmem:[#allocation59_spill] sm:$0xff] }
 0x146   : > { %v6926_v0 = vadd.f32 %v1340_v45, %v1099_v40  ;;  %v1114_v23 = vadd.f32 %v4751_v15, %v7644_v36  ;;  %5310 = vmatmul.mubr.msk.f32.gmra.mxu0 %vm449_vm2, %v7645_v59  ;;  %5232 = vmatprep.mubr.msk.f32.mxu1 %vm446_vm1, %v7646_v28  ;;  %v7662_v59 = vld [vmem:[#allocation60_spill] sm:$0xff]  ;;  %v7663_v28 = vld [vmem:[#allocation19_spill] sm:$0xff] }
 0x147   : > { %v1108_v53 = vpop.f32.mrf.mxu1  ;;  %v1350_v46 = vpop.f32.mrf.mxu0  ;;  %5312 = vmatprep.mubr.f32.mxu0 %v7622_v49 }
 0x148   : > { %v6936_v52 = vadd.f32 %v4831_v37, %v1114_v23  ;;  %v1109_v32 = vadd.f32 %v1108_v53, %v7647_v31  ;;  %v7661_v23 = vld [vmem:[#allocation15_spill] sm:$0xff]  ;;  %v7665_v31 = vld [vmem:[#allocation16_spill] sm:$0xff] }
 0x149   : > { %v4754_v1 = vpop.f32.mrf.mxu1  ;;  %v4834_v4 = vpop.f32.mrf.mxu0  ;;  %5233 = vmatmul.mubr.f32.gmra.mxu1 %v7648_v21  ;;  %v7666_v21 = vld [vmem:[#allocation20_spill] sm:$0xff] }
 0x14a   : > { %v6940_v39 = vadd.f32 %v1350_v46, %v1109_v32  ;;  %v1124_v48 = vadd.f32 %v4754_v1, %v7649_v9  ;;  %5313 = vmatmul.mubr.msk.f32.gmra.mxu0 %vm449_vm2, %v7624_v61  ;;  %5235 = vmatprep.mubr.msk.f32.mxu1 %vm446_vm1, %v7650_v20 }
 0x14b   : > { %v1118_v49 = vpop.f32.mrf.mxu1  ;;  %v1360_v17 = vpop.f32.mrf.mxu0  ;;  %5315 = vmatprep.mubr.f32.mxu0 %v7651_v42  ;;  %v7670_v42 = vld [vmem:[#allocation18_spill] sm:$0xff] }
 0x14c   : > { %v6950_v6 = vadd.f32 %v4834_v4, %v1124_v48  ;;  %v1119_v50 = vadd.f32 %v1118_v49, %v7652_v24  ;;  %v7668_v48 = vld [vmem:[#allocation21_spill] sm:$0xff] }
 0x14d   : > { %v4757_v38 = vpop.f32.mrf.mxu1  ;;  %v4837_v12 = vpop.f32.mrf.mxu0  ;;  %5236 = vmatmul.mubr.f32.gmra.mxu1 %v7653_v11  ;;  %v7669_v49 = vld [vmem:[#allocation17_spill] sm:$0xff] }
 0x14e   : > { %v6954_v58 = vadd.f32 %v1360_v17, %v1119_v50  ;;  %v1134_v61 = vadd.f32 %v4757_v38, %v7655_v62  ;;  %5316 = vmatmul.mubr.msk.f32.gmra.mxu0 %vm449_vm2, %v6279_v44  ;;  %5238 = vmatprep.mubr.msk.f32.mxu1 %vm446_vm1, %v7656_v26  ;;  %v7672_v50 = vld [vmem:[#allocation22_spill] sm:$0xff] }
 0x14f   : > { %v1128_v47 = vpop.f32.mrf.mxu1  ;;  %v1370_v45 = vpop.f32.mrf.mxu0  ;;  %5318 = vmatprep.mubr.f32.mxu0 %v6301_v54 }
 0x150   : > { %7654 = vst [vmem:[#allocation24_spill] sm:$0xff] %v6954_v58  ;;  %v6964_v16 = vadd.f32 %v4837_v12, %v1134_v61  ;;  %v1129_v40 = vadd.f32 %v1128_v47, %v7658_v13  ;;  %v7674_v61 = vld [vmem:[#allocation23_spill] sm:$0xff] }
 0x151   : > { %v4760_v15 = vpop.f32.mrf.mxu1  ;;  %v4840_v37 = vpop.f32.mrf.mxu0  ;;  %5239 = vmatmul.mubr.f32.gmra.mxu1 %v7659_v2 }
 0x152   : > { %7657 = vst [vmem:[#allocation25_spill] sm:$0xff] %v6964_v16  ;;  %v6968_v36 = vadd.f32 %v1370_v45, %v1129_v40  ;;  %v1144_v44 = vadd.f32 %v4760_v15, %v7661_v23  ;;  %5319 = vmatmul.mubr.msk.f32.gmra.mxu0 %vm449_vm2, %v7662_v59  ;;  %5241 = vmatprep.mubr.msk.f32.mxu1 %vm446_vm1, %v7663_v28 }
 0x153   : > { %v1138_v54 = vpop.f32.mrf.mxu1  ;;  %v1380_v53 = vpop.f32.mrf.mxu0  ;;  %5321 = vmatprep.mubr.f32.mxu0 %v6753_v10 }
 0x154   : > { %7660 = vst [vmem:[#allocation26_spill] sm:$0xff] %v6968_v36  ;;  %v6978_v46 = vadd.f32 %v4840_v37, %v1144_v44  ;;  %v1139_v32 = vadd.f32 %v1138_v54, %v7665_v31 }
 0x155   : > { %v4763_v1 = vpop.f32.mrf.mxu1  ;;  %v4843_v4 = vpop.f32.mrf.mxu0  ;;  %5242 = vmatmul.mubr.f32.gmra.mxu1 %v7666_v21 }
 0x156   : > { %7664 = vst [vmem:[#allocation27_spill] sm:$0xff] %v6978_v46  ;;  %v6982_v9 = vadd.f32 %v1380_v53, %v1139_v32  ;;  %v1154_v20 = vadd.f32 %v4763_v1, %v7668_v48  ;;  %5322 = vmatmul.mubr.msk.f32.gmra.mxu0 %vm449_vm2, %v6761_v3  ;;  %5244 = vmatprep.mubr.msk.f32.mxu1 %vm446_vm1, %v7669_v49 }
 0x157   : > { %v1148_v10 = vpop.f32.mrf.mxu1  ;;  %v1390_v17 = vpop.f32.mrf.mxu0  ;;  %5324 = vmatprep.mubr.f32.mxu0 %v7670_v42 }
 0x158   : > { %7667 = vst [vmem:[#allocation28_spill] sm:$0xff] %v6982_v9  ;;  %v6992_v24 = vadd.f32 %v4843_v4, %v1154_v20  ;;  %v1149_v38 = vadd.f32 %v1148_v10, %v7672_v50 }
 0x159   : > { %v4766_v12 = vpop.f32.mrf.mxu1  ;;  %v4846_v11 = vpop.f32.mrf.mxu0  ;;  %5245 = vmatmul.mubr.f32.gmra.mxu1 %v7669_v49 }
 0x15a   : > { %7671 = vst [vmem:[#allocation29_spill] sm:$0xff] %v6992_v24  ;;  %v6996_v62 = vadd.f32 %v1390_v17, %v1149_v38  ;;  %v1164_v3 = vadd.f32 %v4766_v12, %v7674_v61  ;;  %5325 = vmatmul.mubr.msk.f32.gmra.mxu0 %vm449_vm2, %v7670_v42 }
 0x15b   : > { %v1158_v26 = vpop.f32.mrf.mxu1  ;;  %v1400_v47 = vpop.f32.mrf.mxu0 }
 0x15c   : > { %7673 = vst [vmem:[#allocation30_spill] sm:$0xff] %v6996_v62  ;;  %v7002_v45 = vadd.f32 %v4846_v11, %v1164_v3  ;;  %v1159_v13 = vadd.f32 %v1158_v26, %v6780_v29 }
 0x15d   : > { %v4881_v40 = vpop.f32.mrf.mxu1  ;;  %v4961_v15 = vpop.f32.mrf.mxu0 }
 0x15e   : > { %7675 = vst [vmem:[#allocation31_spill] sm:$0xff] %v7002_v45  ;;  %v7005_v37 = vadd.f32 %v1400_v47, %v1159_v13  ;;  %v7007_v2 = vadd.f32 %v4961_v15, %v4881_v40 }
 0x15f   : > { %v1797_v23 = vpop.f32.mrf.mxu1  ;;  %v2022_v44 = vpop.f32.mrf.mxu0 }
 0x160   : > { %7676 = vst [vmem:[#allocation32_spill] sm:$0xff] %v7005_v37  ;;  %v7009_v59 = vadd.f32 %v2022_v44, %v1797_v23 }
 0x161   : > { %v4884_v28 = vpop.f32.mrf.mxu1  ;;  %v4964_v54 = vpop.f32.mrf.mxu0 }
 0x162   : > { %v7011_v27 = vadd.f32 %v4964_v54, %v4884_v28 }
 0x163   : > { %v1807_v53 = vpop.f32.mrf.mxu1  ;;  %v2032_v31 = vpop.f32.mrf.mxu0 }
 0x164   : > { %v7013_v32 = vadd.f32 %v2032_v31, %v1807_v53 }
 0x165   : > { %v4887_v1 = vpop.f32.mrf.mxu1  ;;  %v4967_v29 = vpop.f32.mrf.mxu0 }
 0x166   : > { %v7015_v4 = vadd.f32 %v4967_v29, %v4887_v1 }
 0x167   : > { %v1817_v21 = vpop.f32.mrf.mxu1  ;;  %v2042_v48 = vpop.f32.mrf.mxu0 }
 0x168   : > { %v7017_v20 = vadd.f32 %v2042_v48, %v1817_v21 }
 0x169   : > { %v4890_v49 = vpop.f32.mrf.mxu1  ;;  %v4970_v10 = vpop.f32.mrf.mxu0 }
 0x16a   : > { %v7019_v17 = vadd.f32 %v4970_v10, %v4890_v49 }
 0x16b   : > { %v1827_v42 = vpop.f32.mrf.mxu1  ;;  %v2052_v50 = vpop.f32.mrf.mxu0 }
 0x16c   : > { %v7021_v38 = vadd.f32 %v2052_v50, %v1827_v42 }
 0x16d   : > { %v4893_v12 = vpop.f32.mrf.mxu1  ;;  %v4973_v11 = vpop.f32.mrf.mxu0 }
 0x16e   : > { %v7023_v61 = vadd.f32 %v4973_v11, %v4893_v12 }
 0x16f   : > { %v1837_v3 = vpop.f32.mrf.mxu1  ;;  %v2062_v26 = vpop.f32.mrf.mxu0 }
 0x170   : > { %v7025_v47 = vadd.f32 %v2062_v26, %v1837_v3 }
 0x171   : > { %v4896_v13 = vpop.f32.mrf.mxu1  ;;  %v4976_v40 = vpop.f32.mrf.mxu0 }
 0x172   : > { %v7027_v15 = vadd.f32 %v4976_v40, %v4896_v13 }
 0x173   : > { %v1847_v23 = vpop.f32.mrf.mxu1  ;;  %v2072_v44 = vpop.f32.mrf.mxu0 }
 0x174   : > { %v7029_v28 = vadd.f32 %v2072_v44, %v1847_v23 }
 0x175   : > { %v4899_v54 = vpop.f32.mrf.mxu1  ;;  %v4979_v53 = vpop.f32.mrf.mxu0 }
 0x176   : > { %v7031_v31 = vadd.f32 %v4979_v53, %v4899_v54 }
 0x177   : > { %v1857_v1 = vpop.f32.mrf.mxu1  ;;  %v2082_v29 = vpop.f32.mrf.mxu0 }
 0x178   : > { %v7033_v21 = vadd.f32 %v2082_v29, %v1857_v1 }
 0x179   : > { %v4902_v48 = vpop.f32.mrf.mxu1  ;;  %v4982_v49 = vpop.f32.mrf.mxu0 }
 0x17a   : > { %v7035_v10 = vadd.f32 %v4982_v49, %v4902_v48 }
 0x17b   : > { %v1867_v42 = vpop.f32.mrf.mxu1  ;;  %v2092_v50 = vpop.f32.mrf.mxu0 }
 0x17c   : > { %v7037_v12 = vadd.f32 %v2092_v50, %v1867_v42 }
 0x17d   : > { %v4905_v11 = vpop.f32.mrf.mxu1  ;;  %v4985_v3 = vpop.f32.mrf.mxu0 }
 0x17e   : > { %v7039_v26 = vadd.f32 %v4985_v3, %v4905_v11 }
 0x17f   : > { %v1877_v13 = vpop.f32.mrf.mxu1  ;;  %v2102_v40 = vpop.f32.mrf.mxu0 }
 0x180   : > { %v7041_v23 = vadd.f32 %v2102_v40, %v1877_v13 }
 0x181   : > { %v4908_v44 = vpop.f32.mrf.mxu1  ;;  %v4988_v54 = vpop.f32.mrf.mxu0 }
 0x182   : > { %v7043_v53 = vadd.f32 %v4988_v54, %v4908_v44 }
 0x183   : > { %v1887_v1 = vpop.f32.mrf.mxu1  ;;  %v2112_v29 = vpop.f32.mrf.mxu0 }
 0x184   : > { %v7045_v48 = vadd.f32 %v2112_v29, %v1887_v1 }
 0x185   : > { %v4911_v49 = vpop.f32.mrf.mxu1  ;;  %v4991_v14 = vpop.f32.mrf.mxu0 }
 0x186   : > { %v7047_v42 = vadd.f32 %v4991_v14, %v4911_v49 }
 0x187   : > { %v1897_v50 = vpop.f32.mrf.mxu1  ;;  %v2122_v37 = vpop.f32.mrf.mxu0 }
 0x188   : > { %v7049_v11 = vadd.f32 %v2122_v37, %v1897_v50 }
 0x189   : > { %v4914_v3 = vpop.f32.mrf.mxu1  ;;  %v4994_v45 = vpop.f32.mrf.mxu0 }
 0x18a   : > { %v7051_v13 = vadd.f32 %v4994_v45, %v4914_v3 }
 0x18b   : > { %v1907_v40 = vpop.f32.mrf.mxu1  ;;  %v2132_v62 = vpop.f32.mrf.mxu0 }
 0x18c   : > { %v7053_v44 = vadd.f32 %v2132_v62, %v1907_v40 }
 0x18d   : > { %v4917_v54 = vpop.f32.mrf.mxu1  ;;  %v4997_v24 = vpop.f32.mrf.mxu0 }
 0x18e   : > { %v7055_v1 = vadd.f32 %v4997_v24, %v4917_v54 }
 0x18f   : > { %v1917_v29 = vpop.f32.mrf.mxu1  ;;  %v2142_v9 = vpop.f32.mrf.mxu0 }
 0x190   : > { %7677 = vst [vmem:[#allocation33_spill] sm:$0xff] %v7055_v1  ;;  %v7057_v14 = vadd.f32 %v2142_v9, %v1917_v29 }
 0x191   : > { %v4920_v49 = vpop.f32.mrf.mxu1  ;;  %v5000_v46 = vpop.f32.mrf.mxu0 }
 0x192   : > { %7678 = vst [vmem:[#allocation34_spill] sm:$0xff] %v7057_v14  ;;  %v7059_v37 = vadd.f32 %v5000_v46, %v4920_v49 }
 0x193   : > { %v1927_v50 = vpop.f32.mrf.mxu1  ;;  %v2152_v36 = vpop.f32.mrf.mxu0 }
 0x194   : > { %v7061_v45 = vadd.f32 %v2152_v36, %v1927_v50 }
 0x195   : > { %v4923_v3 = vpop.f32.mrf.mxu1  ;;  %v5003_v16 = vpop.f32.mrf.mxu0 }
 0x196   : > { %7679 = vst [vmem:[#allocation35_spill] sm:$0xff] %v7061_v45  ;;  %v7063_v62 = vadd.f32 %v5003_v16, %v4923_v3 }
 0x197   : > { %v1937_v40 = vpop.f32.mrf.mxu1  ;;  %v2162_v58 = vpop.f32.mrf.mxu0 }
 0x198   : > { %v7065_v24 = vadd.f32 %v2162_v58, %v1937_v40 }
 0x199   : > { %v4926_v54 = vpop.f32.mrf.mxu1  ;;  %v5006_v1 = vpop.f32.mrf.mxu0 }
 0x19a   : > { %v7067_v9 = vadd.f32 %v5006_v1, %v4926_v54 }
 0x19b   : > { %v1947_v29 = vpop.f32.mrf.mxu1  ;;  %v2172_v14 = vpop.f32.mrf.mxu0 }
 0x19c   : > { %v7069_v46 = vadd.f32 %v2172_v14, %v1947_v29 }
 0x19d   : > { %v5041_v49 = vpop.f32.mrf.mxu1 }
 0x19e   : > { %v2424_v36 = vadd.f32 %v5041_v49, %v7007_v2  ;;  %v7072_v50 = vpop.f32.mrf.mxu0 }
 0x19f   : > { %v2264_v45 = vpop.f32.mrf.mxu1 }
 0x1a0   : > { %v7075_v16 = vadd.f32 %v2424_v36, %v6796_v5  ;;  %v2423_v58 = vadd.f32 %v2264_v45, %v7009_v59  ;;  %v7078_v3 = vpop.f32.mrf.mxu0 }
 0x1a1   : > { %v5044_v40 = vpop.f32.mrf.mxu1 }
 0x1a2   : > { %v7081_v1 = vadd.f32 %v2423_v58, %v6800_v22  ;;  %v2426_v14 = vadd.f32 %v5044_v40, %v7011_v27  ;;  %v7084_v54 = vpop.f32.mrf.mxu0 }
 0x1a3   : > { %v2274_v29 = vpop.f32.mrf.mxu1 }
 0x1a4   : > { %v7087_v2 = vadd.f32 %v2426_v14, %v6810_v41  ;;  %v2425_v49 = vadd.f32 %v2274_v29, %v7013_v32  ;;  %v7090_v5 = vpop.f32.mrf.mxu0 }
 0x1a5   : > { %v5047_v36 = vpop.f32.mrf.mxu1 }
 0x1a6   : > { %v7093_v59 = vadd.f32 %v2425_v49, %v6814_v8  ;;  %v2428_v45 = vadd.f32 %v5047_v36, %v7015_v4  ;;  %v7096_v22 = vpop.f32.mrf.mxu0 }
 0x1a7   : > { %v2284_v58 = vpop.f32.mrf.mxu1 }
 0x1a8   : > { %v7099_v27 = vadd.f32 %v2428_v45, %v6824_v43  ;;  %v2427_v40 = vadd.f32 %v2284_v58, %v7017_v20  ;;  %v7102_v41 = vpop.f32.mrf.mxu0 }
 0x1a9   : > { %v5050_v14 = vpop.f32.mrf.mxu1 }
 0x1aa   : > { %v7105_v32 = vadd.f32 %v2427_v40, %v6828_v35  ;;  %v2430_v29 = vadd.f32 %v5050_v14, %v7019_v17  ;;  %v7108_v8 = vpop.f32.mrf.mxu0 }
 0x1ab   : > { %v2294_v49 = vpop.f32.mrf.mxu1 }
 0x1ac   : > { %v7111_v4 = vadd.f32 %v2430_v29, %v6838_v30  ;;  %v2429_v36 = vadd.f32 %v2294_v49, %v7021_v38  ;;  %v7114_v43 = vpop.f32.mrf.mxu0 }
 0x1ad   : > { %v5053_v45 = vpop.f32.mrf.mxu1 }
 0x1ae   : > { %v7117_v20 = vadd.f32 %v2429_v36, %v6842_v7  ;;  %v2432_v58 = vadd.f32 %v5053_v45, %v7023_v61  ;;  %v7120_v35 = vpop.f32.mrf.mxu0 }
 0x1af   : > { %v2304_v40 = vpop.f32.mrf.mxu1 }
 0x1b0   : > { %v7123_v17 = vadd.f32 %v2432_v58, %v6852_v51  ;;  %v2431_v14 = vadd.f32 %v2304_v40, %v7025_v47  ;;  %v7126_v30 = vpop.f32.mrf.mxu0 }
 0x1b1   : > { %v5056_v29 = vpop.f32.mrf.mxu1 }
 0x1b2   : > { %v7129_v38 = vadd.f32 %v2431_v14, %v6856_v18  ;;  %v2434_v49 = vadd.f32 %v5056_v29, %v7027_v15  ;;  %v7132_v7 = vpop.f32.mrf.mxu0 }
 0x1b3   : > { %v2314_v36 = vpop.f32.mrf.mxu1 }
 0x1b4   : > { %v7135_v61 = vadd.f32 %v2434_v49, %v6866_v56  ;;  %v2433_v45 = vadd.f32 %v2314_v36, %v7029_v28  ;;  %v7138_v51 = vpop.f32.mrf.mxu0 }
 0x1b5   : > { %v5059_v58 = vpop.f32.mrf.mxu1 }
 0x1b6   : > { %v7141_v47 = vadd.f32 %v2433_v45, %v6870_v57  ;;  %v2436_v40 = vadd.f32 %v5059_v58, %v7031_v31  ;;  %v7144_v18 = vpop.f32.mrf.mxu0 }
 0x1b7   : > { %v2324_v14 = vpop.f32.mrf.mxu1 }
 0x1b8   : > { %v7147_v15 = vadd.f32 %v2436_v40, %v6880_v63  ;;  %v2435_v29 = vadd.f32 %v2324_v14, %v7033_v21  ;;  %v7150_v56 = vpop.f32.mrf.mxu0 }
 0x1b9   : > { %v5062_v49 = vpop.f32.mrf.mxu1 }
 0x1ba   : > { %v7153_v28 = vadd.f32 %v2435_v29, %v6884_v19  ;;  %v2438_v36 = vadd.f32 %v5062_v49, %v7035_v10  ;;  %v7156_v57 = vpop.f32.mrf.mxu0 }
 0x1bb   : > { %v2334_v45 = vpop.f32.mrf.mxu1 }
 0x1bc   : > { %v7159_v31 = vadd.f32 %v2438_v36, %v6894_v55  ;;  %v2437_v58 = vadd.f32 %v2334_v45, %v7037_v12  ;;  %v7162_v63 = vpop.f32.mrf.mxu0 }
 0x1bd   : > { %v5065_v40 = vpop.f32.mrf.mxu1 }
 0x1be   : > { %v7165_v21 = vadd.f32 %v2437_v58, %v6898_v33  ;;  %v2440_v14 = vadd.f32 %v5065_v40, %v7039_v26  ;;  %v7168_v19 = vpop.f32.mrf.mxu0 }
 0x1bf   : > { %v2344_v29 = vpop.f32.mrf.mxu1 }
 0x1c0   : > { %v7171_v10 = vadd.f32 %v2440_v14, %v6908_v60  ;;  %v2439_v49 = vadd.f32 %v2344_v29, %v7041_v23  ;;  %v7174_v55 = vpop.f32.mrf.mxu0 }
 0x1c1   : > { %v5068_v36 = vpop.f32.mrf.mxu1 }
 0x1c2   : > { %v7177_v12 = vadd.f32 %v2439_v49, %v6912_v34  ;;  %v2442_v45 = vadd.f32 %v5068_v36, %v7043_v53  ;;  %v7180_v33 = vpop.f32.mrf.mxu0 }
 0x1c3   : > { %v2354_v58 = vpop.f32.mrf.mxu1 }
 0x1c4   : > { %v7183_v26 = vadd.f32 %v2442_v45, %v6922_v25  ;;  %v2441_v40 = vadd.f32 %v2354_v58, %v7045_v48  ;;  %v7186_v60 = vpop.f32.mrf.mxu0 }
 0x1c5   : > { %v5071_v14 = vpop.f32.mrf.mxu1 }
 0x1c6   : > { %v7189_v23 = vadd.f32 %v2441_v40, %v6926_v0  ;;  %v2444_v29 = vadd.f32 %v5071_v14, %v7047_v42  ;;  %v7192_v34 = vpop.f32.mrf.mxu0 }
 0x1c7   : > { %v2364_v49 = vpop.f32.mrf.mxu1 }
 0x1c8   : > { %v7195_v53 = vadd.f32 %v2444_v29, %v6936_v52  ;;  %v2443_v36 = vadd.f32 %v2364_v49, %v7049_v11  ;;  %v7198_v25 = vpop.f32.mrf.mxu0  ;;  %v7685_v11 = vld [vmem:[#allocation24_spill] sm:$0xff] }
 0x1c9   : > { %7681 = vst [vmem:[#allocation37_spill] sm:$0xff] %v7198_v25  ;;  %v5074_v45 = vpop.f32.mrf.mxu1 }
 0x1ca   : > { %7680 = vst [vmem:[#allocation36_spill] sm:$0xff] %v7195_v53  ;;  %v7201_v48 = vadd.f32 %v2443_v36, %v6940_v39  ;;  %v2446_v58 = vadd.f32 %v5074_v45, %v7051_v13  ;;  %v7204_v0 = vpop.f32.mrf.mxu0  ;;  %v7687_v53 = vld [vmem:[#allocation33_spill] sm:$0xff] }
 0x1cb   : > { %7683 = vst [vmem:[#allocation46_spill] sm:$0xff] %v7204_v0  ;;  %v2374_v40 = vpop.f32.mrf.mxu1  ;;  %v7689_v13 = vld [vmem:[#allocation25_spill] sm:$0xff] }
 0x1cc   : > { %7682 = vst [vmem:[#allocation40_spill] sm:$0xff] %v7201_v48  ;;  %v7207_v42 = vadd.f32 %v2446_v58, %v6950_v6  ;;  %v2445_v14 = vadd.f32 %v2374_v40, %v7053_v44  ;;  %v7210_v52 = vpop.f32.mrf.mxu0  ;;  %v7691_v48 = vld [vmem:[#allocation34_spill] sm:$0xff] }
 0x1cd   : > { %v5077_v29 = vpop.f32.mrf.mxu1  ;;  %v7692_v44 = vld [vmem:[#allocation26_spill] sm:$0xff] }
 0x1ce   : > { %7684 = vst [vmem:[#allocation52_spill] sm:$0xff] %v7207_v42  ;;  %v7213_v49 = vadd.f32 %v2445_v14, %v7685_v11  ;;  %v2448_v25 = vadd.f32 %v5077_v29, %v7687_v53  ;;  %v7216_v39 = vpop.f32.mrf.mxu0  ;;  %v7694_v53 = vld [vmem:[#allocation27_spill] sm:$0xff] }
 0x1cf   : > { %7688 = vst [vmem:[#allocation38_spill] sm:$0xff] %v7216_v39  ;;  %v2384_v36 = vpop.f32.mrf.mxu1 }
 0x1d0   : > { %7686 = vst [vmem:[#allocation54_spill] sm:$0xff] %v7213_v49  ;;  %v7219_v45 = vadd.f32 %v2448_v25, %v7689_v13  ;;  %v2447_v0 = vadd.f32 %v2384_v36, %v7691_v48  ;;  %v7222_v6 = vpop.f32.mrf.mxu0  ;;  %v7696_v49 = vld [vmem:[#allocation35_spill] sm:$0xff]  ;;  %v7697_v48 = vld [vmem:[#allocation28_spill] sm:$0xff] }
 0x1d1   : > { %v5080_v58 = vpop.f32.mrf.mxu1 }
 0x1d2   : > { %7690 = vst [vmem:[#allocation39_spill] sm:$0xff] %v7219_v45  ;;  %v7225_v40 = vadd.f32 %v2447_v0, %v7692_v44  ;;  %v2450_v42 = vadd.f32 %v5080_v58, %v7059_v37  ;;  %v7228_v14 = vpop.f32.mrf.mxu0  ;;  %v7699_v37 = vld [vmem:[#allocation29_spill] sm:$0xff] }
 0x1d3   : > { %v2394_v11 = vpop.f32.mrf.mxu1 }
 0x1d4   : > { %7693 = vst [vmem:[#allocation41_spill] sm:$0xff] %v7225_v40  ;;  %v7231_v29 = vadd.f32 %v2450_v42, %v7694_v53  ;;  %v2449_v39 = vadd.f32 %v2394_v11, %v7696_v49  ;;  %v7234_v25 = vpop.f32.mrf.mxu0  ;;  %v7701_v49 = vld [vmem:[#allocation30_spill] sm:$0xff] }
 0x1d5   : > { %v5083_v13 = vpop.f32.mrf.mxu1 }
 0x1d6   : > { %7695 = vst [vmem:[#allocation4_spill] sm:$0xff] %v7231_v29  ;;  %v7237_v36 = vadd.f32 %v2449_v39, %v7697_v48  ;;  %v2452_v45 = vadd.f32 %v5083_v13, %v7063_v62  ;;  %v7240_v0 = vpop.f32.mrf.mxu0  ;;  %v7703_v62 = vld [vmem:[#allocation31_spill] sm:$0xff] }
 0x1d7   : > { %v2404_v44 = vpop.f32.mrf.mxu1 }
 0x1d8   : > { %7698 = vst [vmem:[#allocation42_spill] sm:$0xff] %v7237_v36  ;;  %v7243_v58 = vadd.f32 %v2452_v45, %v7699_v37  ;;  %v2451_v40 = vadd.f32 %v2404_v44, %v7065_v24  ;;  %v7246_v42 = vpop.f32.mrf.mxu0  ;;  %v7706_v44 = vld [vmem:[#allocation32_spill] sm:$0xff] }
 0x1d9   : > { %v5086_v53 = vpop.f32.mrf.mxu1 }
 0x1da   : > { %7700 = vst [vmem:[#allocation43_spill] sm:$0xff] %v7243_v58  ;;  %v7249_v11 = vadd.f32 %v2451_v40, %v7701_v49  ;;  %v2454_v29 = vadd.f32 %v5086_v53, %v7067_v9  ;;  %v7252_v39 = vpop.f32.mrf.mxu0 }
 0x1db   : > { %v2414_v48 = vpop.f32.mrf.mxu1 }
 0x1dc   : > { %7702 = vst [vmem:[#allocation44_spill] sm:$0xff] %v7249_v11  ;;  %v7255_v13 = vadd.f32 %v2454_v29, %v7703_v62  ;;  %v2453_v36 = vadd.f32 %v2414_v48, %v7069_v46  ;;  %v7258_v45 = vpop.f32.mrf.mxu0  ;;  %v7268_v29 = vld [vmem:[%s7416_s4] ss:$0 sm:$0xff] }
 0x1dd   : > { %7705 = vst [vmem:[#allocation45_spill] sm:$0xff] %v7258_v45  ;;  %v5201_v24 = vpop.f32.mrf.mxu1 }
 0x1de   : > { %7704 = vst [vmem:[#allocation5_spill] sm:$0xff] %v7255_v13  ;;  %v7261_v37 = vadd.f32 %v2453_v36, %v7706_v44  ;;  %v3107_v40 = vadd.f32 %v5201_v24, %v7072_v50  ;;  %v5281_v49 = vpop.f32.mrf.mxu0 }
 0x1df   : > { %v3101_v11 = vpop.f32.mrf.mxu1 }
 0x1e0   : > { %7707 = vst [vmem:[#allocation6_spill] sm:$0xff] %v7261_v37  ;;  %v3503_v9 = vadd.f32 %v5281_v49, %v3107_v40  ;;  %v3102_v53 = vadd.f32 %v3101_v11, %v7078_v3  ;;  %v3343_v58 = vpop.f32.mrf.mxu0 }
 0x1e1   : > { %v5204_v46 = vpop.f32.mrf.mxu1 }
 0x1e2   : > { %v3567_v48 = vadd.f32 %v3503_v9, %v7075_v16  ;;  %v3502_v62 = vadd.f32 %v3343_v58, %v3102_v53  ;;  %v3117_v36 = vadd.f32 %v5204_v46, %v7084_v54  ;;  %v5284_v44 = vpop.f32.mrf.mxu0 }
 0x1e3   : > { %v3111_v50 = vpop.f32.mrf.mxu1 }
 0x1e4   : > { %v3670_v3 = vadd.f32 %v7268_v29, %v3567_v48  ;;  %v3566_v11 = vadd.f32 %v3502_v62, %v7081_v1  ;;  %v3505_v24 = vadd.f32 %v5284_v44, %v3117_v36  ;;  %v3112_v16 = vadd.f32 %v3111_v50, %v7090_v5  ;;  %v3353_v58 = vpop.f32.mrf.mxu0 }
 0x1e5   : > { %v5207_v40 = vpop.f32.mrf.mxu1 }
 0x1e6   : > { %3817 = vst [vmem:[%s7277_s7 + $0x8] sm:$0xff] %v3670_v3  ;;  %v3669_v54 = vadd.f32 %v7268_v29, %v3566_v11  ;;  %v3569_v49 = vadd.f32 %v3505_v24, %v7087_v2  ;;  %v3504_v9 = vadd.f32 %v3353_v58, %v3112_v16  ;;  %v5287_v53 = vpop.f32.mrf.mxu0  ;;  %v3739_v46 = vmul.f32 %v3670_v3, %v3670_v3 }
 0x1e7   : > { %v3127_v37 = vadd.f32 %v5207_v40, %v7096_v22  ;;  %v3121_v48 = vpop.f32.mrf.mxu1 }
 0x1e8   : > { %v3701_v13 = vadd.f32 %v3670_v3, %v3669_v54  ;;  %v3738_v45 = vmul.f32 %v3669_v54, %v3669_v54  ;;  %3816 = vst [vmem:[%s7277_s7] sm:$0xff] %v3669_v54  ;;  %v3672_v1 = vadd.f32 %v7268_v29, %v3569_v49  ;;  %v3568_v5 = vadd.f32 %v3504_v9, %v7093_v59  ;;  %v3363_v62 = vpop.f32.mrf.mxu0 }
 0x1e9   : > { %v3507_v36 = vadd.f32 %v5287_v53, %v3127_v37  ;;  %v3122_v44 = vadd.f32 %v3121_v48, %v7102_v41  ;;  %v5210_v2 = vpop.f32.mrf.mxu1 }
 0x1ea   : > { %v3770_v50 = vadd.f32 %v3739_v46, %v3738_v45  ;;  %3819 = vst [vmem:[%s7277_s7 + $0x18] sm:$0xff] %v3672_v1  ;;  %v3671_v11 = vadd.f32 %v7268_v29, %v3568_v5  ;;  %v3137_v22 = vadd.f32 %v5210_v2, %v7108_v8  ;;  %v5290_v24 = vpop.f32.mrf.mxu0  ;;  %v3741_v49 = vmul.f32 %v3672_v1, %v3672_v1 }
 0x1eb   : > { %v3571_v3 = vadd.f32 %v3507_v36, %v7099_v27  ;;  %v3506_v16 = vadd.f32 %v3363_v62, %v3122_v44  ;;  %v3131_v58 = vpop.f32.mrf.mxu1 }
 0x1ec   : > { %v3702_v40 = vadd.f32 %v3701_v13, %v3671_v11  ;;  %v3740_v54 = vmul.f32 %v3671_v11, %v3671_v11  ;;  %3818 = vst [vmem:[%s7277_s7 + $0x10] sm:$0xff] %v3671_v11  ;;  %v3509_v59 = vadd.f32 %v5290_v24, %v3137_v22  ;;  %v3132_v37 = vadd.f32 %v3131_v58, %v7114_v43  ;;  %v3373_v41 = vpop.f32.mrf.mxu0 }
 0x1ed   : > { %v3674_v45 = vadd.f32 %v7268_v29, %v3571_v3  ;;  %v3570_v9 = vadd.f32 %v3506_v16, %v7105_v32  ;;  %v5213_v53 = vpop.f32.mrf.mxu1 }
 0x1ee   : > { %v3771_v8 = vadd.f32 %v3770_v50, %v3740_v54  ;;  %v3703_v46 = vadd.f32 %v3702_v40, %v3672_v1  ;;  %v3573_v27 = vadd.f32 %v3509_v59, %v7111_v4  ;;  %v3508_v48 = vadd.f32 %v3373_v41, %v3132_v37  ;;  %v5293_v13 = vpop.f32.mrf.mxu0 }
 0x1ef   : > { %3821 = vst [vmem:[%s7277_s7 + $0x28] sm:$0xff] %v3674_v45  ;;  %v3673_v5 = vadd.f32 %v7268_v29, %v3570_v9  ;;  %v3147_v43 = vadd.f32 %v5213_v53, %v7120_v35  ;;  %v3141_v62 = vpop.f32.mrf.mxu1  ;;  %v3743_v58 = vmul.f32 %v3674_v45, %v3674_v45 }
 0x1f0   : > { %v3772_v36 = vadd.f32 %v3771_v8, %v3741_v49  ;;  %v3676_v44 = vadd.f32 %v7268_v29, %v3573_v27  ;;  %v3572_v32 = vadd.f32 %v3508_v48, %v7117_v20  ;;  %v3142_v2 = vadd.f32 %v3141_v62, %v7126_v30  ;;  %v3383_v50 = vpop.f32.mrf.mxu0 }
 0x1f1   : > { %v3704_v1 = vadd.f32 %v3703_v46, %v3673_v5  ;;  %v3742_v4 = vmul.f32 %v3673_v5, %v3673_v5  ;;  %3820 = vst [vmem:[%s7277_s7 + $0x20] sm:$0xff] %v3673_v5  ;;  %v3511_v11 = vadd.f32 %v5293_v13, %v3147_v43  ;;  %v5216_v22 = vpop.f32.mrf.mxu1 }
 0x1f2   : > { %3823 = vst [vmem:[%s7277_s7 + $0x38] sm:$0xff] %v3676_v44  ;;  %v3675_v24 = vadd.f32 %v7268_v29, %v3572_v32  ;;  %v3510_v3 = vadd.f32 %v3383_v50, %v3142_v2  ;;  %v3157_v35 = vadd.f32 %v5216_v22, %v7132_v7  ;;  %v5296_v16 = vpop.f32.mrf.mxu0 }
 0x1f3   : > { %v3773_v40 = vadd.f32 %v3772_v36, %v3742_v4  ;;  %v3705_v54 = vadd.f32 %v3704_v1, %v3674_v45  ;;  %v3575_v20 = vadd.f32 %v3511_v11, %v7123_v17  ;;  %v3151_v30 = vpop.f32.mrf.mxu1 }
 0x1f4   : > { %v3744_v59 = vmul.f32 %v3675_v24, %v3675_v24  ;;  %3822 = vst [vmem:[%s7277_s7 + $0x30] sm:$0xff] %v3675_v24  ;;  %v3574_v37 = vadd.f32 %v3510_v3, %v7129_v38  ;;  %v3513_v41 = vadd.f32 %v5296_v16, %v3157_v35  ;;  %v3152_v49 = vadd.f32 %v3151_v30, %v7138_v51  ;;  %v3393_v9 = vpop.f32.mrf.mxu0 }
 0x1f5   : > { %v3706_v53 = vadd.f32 %v3705_v54, %v3675_v24  ;;  %v3774_v8 = vadd.f32 %v3773_v40, %v3743_v58  ;;  %v3678_v7 = vadd.f32 %v7268_v29, %v3575_v20  ;;  %v5219_v46 = vpop.f32.mrf.mxu1  ;;  %v3745_v38 = vmul.f32 %v3676_v44, %v3676_v44 }
 0x1f6   : > { %v3677_v45 = vadd.f32 %v7268_v29, %v3574_v37  ;;  %v3577_v17 = vadd.f32 %v3513_v41, %v7135_v61  ;;  %v3512_v27 = vadd.f32 %v3393_v9, %v3152_v49  ;;  %v3167_v48 = vadd.f32 %v5219_v46, %v7144_v18  ;;  %v5299_v13 = vpop.f32.mrf.mxu0 }
 0x1f7   : > { %v3775_v5 = vadd.f32 %v3774_v8, %v3744_v59  ;;  %3825 = vst [vmem:[%s7277_s7 + $0x48] sm:$0xff] %v3678_v7  ;;  %v3707_v51 = vadd.f32 %v3706_v53, %v3676_v44  ;;  %v3161_v43 = vpop.f32.mrf.mxu1  ;;  %v3747_v3 = vmul.f32 %v3678_v7, %v3678_v7 }
 0x1f8   : > { %v3746_v62 = vmul.f32 %v3677_v45, %v3677_v45  ;;  %3824 = vst [vmem:[%s7277_s7 + $0x40] sm:$0xff] %v3677_v45  ;;  %v3680_v36 = vadd.f32 %v7268_v29, %v3577_v17  ;;  %v3576_v32 = vadd.f32 %v3512_v27, %v7141_v47  ;;  %v3515_v2 = vadd.f32 %v5299_v13, %v3167_v48  ;;  %v3403_v50 = vpop.f32.mrf.mxu0 }
 0x1f9   : > { %v3708_v61 = vadd.f32 %v3707_v51, %v3677_v45  ;;  %v3776_v1 = vadd.f32 %v3775_v5, %v3745_v38  ;;  %v3162_v18 = vadd.f32 %v3161_v43, %v7150_v56  ;;  %v5222_v4 = vpop.f32.mrf.mxu1 }
 0x1fa   : > { %3827 = vst [vmem:[%s7277_s7 + $0x58] sm:$0xff] %v3680_v36  ;;  %v3679_v11 = vadd.f32 %v7268_v29, %v3576_v32  ;;  %v3579_v44 = vadd.f32 %v3515_v2, %v7147_v15  ;;  %v3177_v22 = vadd.f32 %v5222_v4, %v7156_v57  ;;  %v5302_v24 = vpop.f32.mrf.mxu0  ;;  %v3749_v8 = vmul.f32 %v3680_v36, %v3680_v36 }
 0x1fb   : > { %v3777_v35 = vadd.f32 %v3776_v1, %v3746_v62  ;;  %v3709_v47 = vadd.f32 %v3708_v61, %v3678_v7  ;;  %v3514_v16 = vadd.f32 %v3403_v50, %v3162_v18  ;;  %v3171_v58 = vpop.f32.mrf.mxu1 }
 0x1fc   : > { %v3748_v40 = vmul.f32 %v3679_v11, %v3679_v11  ;;  %3826 = vst [vmem:[%s7277_s7 + $0x50] sm:$0xff] %v3679_v11  ;;  %v3682_v54 = vadd.f32 %v7268_v29, %v3579_v44  ;;  %v3517_v56 = vadd.f32 %v5302_v24, %v3177_v22  ;;  %v3172_v20 = vadd.f32 %v3171_v58, %v7162_v63  ;;  %v3413_v30 = vpop.f32.mrf.mxu0 }
 0x1fd   : > { %v3710_v59 = vadd.f32 %v3709_v47, %v3679_v11  ;;  %v3778_v37 = vadd.f32 %v3777_v35, %v3747_v3  ;;  %v3578_v15 = vadd.f32 %v3514_v16, %v7153_v28  ;;  %v5225_v57 = vpop.f32.mrf.mxu1 }
 0x1fe   : > { %3829 = vst [vmem:[%s7277_s7 + $0x68] sm:$0xff] %v3682_v54  ;;  %v3581_v41 = vadd.f32 %v3517_v56, %v7159_v31  ;;  %v3516_v49 = vadd.f32 %v3413_v30, %v3172_v20  ;;  %v3187_v9 = vadd.f32 %v5225_v57, %v7168_v19  ;;  %v5305_v53 = vpop.f32.mrf.mxu0  ;;  %v3751_v32 = vmul.f32 %v3682_v54, %v3682_v54  ;;  %v7708_v30 = vld [vmem:[#allocation37_spill] sm:$0xff] }
 0x1ff   : > { %v3779_v7 = vadd.f32 %v3778_v37, %v3748_v40  ;;  %v3681_v46 = vadd.f32 %v7268_v29, %v3578_v15  ;;  %v3711_v63 = vadd.f32 %v3710_v59, %v3680_v36  ;;  %v3181_v45 = vpop.f32.mrf.mxu1 }
 0x200   : > { %v3684_v17 = vadd.f32 %v7268_v29, %v3581_v41  ;;  %v3580_v28 = vadd.f32 %v3516_v49, %v7165_v21  ;;  %v3519_v27 = vadd.f32 %v5305_v53, %v3187_v9  ;;  %v3182_v48 = vadd.f32 %v3181_v45, %v7174_v55  ;;  %v3423_v31 = vpop.f32.mrf.mxu0  ;;  %v7709_v9 = vld [vmem:[#allocation36_spill] sm:$0xff] }
 0x201   : > { %v3712_v13 = vadd.f32 %v3711_v63, %v3681_v46  ;;  %v3750_v38 = vmul.f32 %v3681_v46, %v3681_v46  ;;  %v3780_v19 = vadd.f32 %v3779_v7, %v3749_v8  ;;  %3828 = vst [vmem:[%s7277_s7 + $0x60] sm:$0xff] %v3681_v46  ;;  %v5228_v5 = vpop.f32.mrf.mxu1  ;;  %v7710_v8 = vld [vmem:[#allocation46_spill] sm:$0xff] }
 0x202   : > { %3831 = vst [vmem:[%s7277_s7 + $0x78] sm:$0xff] %v3684_v17  ;;  %v3683_v51 = vadd.f32 %v7268_v29, %v3580_v28  ;;  %v3583_v43 = vadd.f32 %v3519_v27, %v7171_v10  ;;  %v3518_v62 = vadd.f32 %v3423_v31, %v3182_v48  ;;  %v5308_v36 = vpop.f32.mrf.mxu0  ;;  %v3197_v55 = vadd.f32 %v5228_v5, %v7180_v33  ;;  %v7711_v48 = vld [vmem:[#allocation40_spill] sm:$0xff] }
 0x203   : > { %v3781_v21 = vadd.f32 %v3780_v19, %v3750_v38  ;;  %v3713_v2 = vadd.f32 %v3712_v13, %v3682_v54  ;;  %v3191_v50 = vpop.f32.mrf.mxu1  ;;  %v3753_v16 = vmul.f32 %v3684_v17, %v3684_v17 }
 0x204   : > { %v3752_v61 = vmul.f32 %v3683_v51, %v3683_v51  ;;  %3830 = vst [vmem:[%s7277_s7 + $0x70] sm:$0xff] %v3683_v51  ;;  %v3686_v1 = vadd.f32 %v7268_v29, %v3583_v43  ;;  %v3582_v18 = vadd.f32 %v3518_v62, %v7177_v12  ;;  %v3192_v4 = vadd.f32 %v3191_v50, %v7186_v60  ;;  %v3433_v11 = vpop.f32.mrf.mxu0 }
 0x205   : > { %v3714_v10 = vadd.f32 %v3713_v2, %v3683_v51  ;;  %v3782_v44 = vadd.f32 %v3781_v21, %v3751_v32  ;;  %v3521_v22 = vadd.f32 %v5308_v36, %v3197_v55  ;;  %v5231_v24 = vpop.f32.mrf.mxu1  ;;  %v7712_v36 = vld [vmem:[#allocation52_spill] sm:$0xff]  ;;  %v7713_v21 = vld [vmem:[#allocation38_spill] sm:$0xff] }
 0x206   : > { %3833 = vst [vmem:[%s7277_s7 + $0x88] sm:$0xff] %v3686_v1  ;;  %v3685_v3 = vadd.f32 %v7268_v29, %v3582_v18  ;;  %v3520_v35 = vadd.f32 %v3433_v11, %v3192_v4  ;;  %v3207_v33 = vadd.f32 %v5231_v24, %v7192_v34  ;;  %v5311_v47 = vpop.f32.mrf.mxu0 }
 0x207   : > { %v3783_v58 = vadd.f32 %v3782_v44, %v3752_v61  ;;  %v3715_v40 = vadd.f32 %v3714_v10, %v3684_v17  ;;  %v3585_v12 = vadd.f32 %v3521_v22, %v7183_v26  ;;  %v3201_v54 = vpop.f32.mrf.mxu1 }
 0x208   : > { %v3754_v60 = vmul.f32 %v3685_v3, %v3685_v3  ;;  %3832 = vst [vmem:[%s7277_s7 + $0x80] sm:$0xff] %v3685_v3  ;;  %v3584_v56 = vadd.f32 %v3520_v35, %v7189_v23  ;;  %v3523_v20 = vadd.f32 %v5311_v47, %v3207_v33  ;;  %v3202_v59 = vadd.f32 %v3201_v54, %v7708_v30  ;;  %v3443_v37 = vpop.f32.mrf.mxu0  ;;  %v7714_v35 = vld [vmem:[#allocation54_spill] sm:$0xff] }
 0x209   : > { %v3716_v15 = vadd.f32 %v3715_v40, %v3685_v3  ;;  %v3784_v57 = vadd.f32 %v3783_v58, %v3753_v16  ;;  %v3688_v34 = vadd.f32 %v7268_v29, %v3585_v12  ;;  %v5234_v41 = vpop.f32.mrf.mxu1  ;;  %v3755_v23 = vmul.f32 %v3686_v1, %v3686_v1  ;;  %v7715_v16 = vld [vmem:[#allocation39_spill] sm:$0xff] }
 0x20a   : > { %v3687_v49 = vadd.f32 %v7268_v29, %v3584_v56  ;;  %v3587_v26 = vadd.f32 %v3523_v20, %v7709_v9  ;;  %v3522_v53 = vadd.f32 %v3443_v37, %v3202_v59  ;;  %v3217_v7 = vadd.f32 %v5234_v41, %v7710_v8  ;;  %v5314_v46 = vpop.f32.mrf.mxu0  ;;  %v7716_v37 = vld [vmem:[#allocation41_spill] sm:$0xff]  ;;  %v7717_v8 = vld [vmem:[#allocation4_spill] sm:$0xff] }
 0x20b   : > { %v3785_v63 = vadd.f32 %v3784_v57, %v3754_v60  ;;  %3835 = vst [vmem:[%s7277_s7 + $0x98] sm:$0xff] %v3688_v34  ;;  %v3717_v45 = vadd.f32 %v3716_v15, %v3686_v1  ;;  %v3211_v17 = vpop.f32.mrf.mxu1  ;;  %v3757_v50 = vmul.f32 %v3688_v34, %v3688_v34 }
 0x20c   : > { %v3756_v28 = vmul.f32 %v3687_v49, %v3687_v49  ;;  %3834 = vst [vmem:[%s7277_s7 + $0x90] sm:$0xff] %v3687_v49  ;;  %v3690_v27 = vadd.f32 %v7268_v29, %v3587_v26  ;;  %v3586_v31 = vadd.f32 %v3522_v53, %v7711_v48  ;;  %v3525_v13 = vadd.f32 %v5314_v46, %v3217_v7  ;;  %v3453_v38 = vpop.f32.mrf.mxu0 }
 0x20d   : > { %v3718_v19 = vadd.f32 %v3717_v45, %v3687_v49  ;;  %v3786_v5 = vadd.f32 %v3785_v63, %v3755_v23  ;;  %v3212_v51 = vadd.f32 %v3211_v17, %v7210_v52  ;;  %v5237_v43 = vpop.f32.mrf.mxu1 }
 0x20e   : > { %3837 = vst [vmem:[%s7277_s7 + $0xa8] sm:$0xff] %v3690_v27  ;;  %v3689_v62 = vadd.f32 %v7268_v29, %v3586_v31  ;;  %v3589_v32 = vadd.f32 %v3525_v13, %v7712_v36  ;;  %v3227_v2 = vadd.f32 %v5237_v43, %v7713_v21  ;;  %v5317_v55 = vpop.f32.mrf.mxu0  ;;  %v3759_v60 = vmul.f32 %v3690_v27, %v3690_v27  ;;  %v7718_v31 = vld [vmem:[#allocation42_spill] sm:$0xff] }
 0x20f   : > { %v3787_v61 = vadd.f32 %v3786_v5, %v3756_v28  ;;  %v3719_v1 = vadd.f32 %v3718_v19, %v3688_v34  ;;  %v3524_v18 = vadd.f32 %v3453_v38, %v3212_v51  ;;  %v3221_v4 = vpop.f32.mrf.mxu1 }
 0x210   : > { %v3758_v11 = vmul.f32 %v3689_v62, %v3689_v62  ;;  %3836 = vst [vmem:[%s7277_s7 + $0xa0] sm:$0xff] %v3689_v62  ;;  %v3692_v10 = vadd.f32 %v7268_v29, %v3589_v32  ;;  %v3527_v52 = vadd.f32 %v5317_v55, %v3227_v2  ;;  %v3222_v44 = vadd.f32 %v3221_v4, %v7222_v6  ;;  %v3463_v22 = vpop.f32.mrf.mxu0  ;;  %v7720_v4 = vld [vmem:[#allocation44_spill] sm:$0xff] }
 0x211   : > { %v3720_v24 = vadd.f32 %v3719_v1, %v3689_v62  ;;  %v3788_v3 = vadd.f32 %v3787_v61, %v3757_v50  ;;  %v3588_v33 = vadd.f32 %v3524_v18, %v7714_v35  ;;  %v5240_v47 = vpop.f32.mrf.mxu1  ;;  %v7719_v61 = vld [vmem:[#allocation43_spill] sm:$0xff] }
 0x212   : > { %3839 = vst [vmem:[%s7277_s7 + $0xb8] sm:$0xff] %v3692_v10  ;;  %v3591_v58 = vadd.f32 %v3527_v52, %v7715_v16  ;;  %v3526_v40 = vadd.f32 %v3463_v22, %v3222_v44  ;;  %v3237_v12 = vadd.f32 %v5240_v47, %v7228_v14  ;;  %v5320_v54 = vpop.f32.mrf.mxu0  ;;  %v3761_v63 = vmul.f32 %v3692_v10, %v3692_v10  ;;  %v7721_v52 = vld [vmem:[#allocation45_spill] sm:$0xff] }
 0x213   : > { %v3789_v56 = vadd.f32 %v3788_v3, %v3758_v11  ;;  %v3691_v20 = vadd.f32 %v7268_v29, %v3588_v33  ;;  %v3721_v6 = vadd.f32 %v3720_v24, %v3690_v27  ;;  %v3231_v30 = vpop.f32.mrf.mxu1  ;;  %v7722_v33 = vld [vmem:[#allocation5_spill] sm:$0xff] }
 0x214   : > { %v3694_v59 = vadd.f32 %v7268_v29, %v3591_v58  ;;  %v3590_v15 = vadd.f32 %v3526_v40, %v7716_v37  ;;  %v3529_v57 = vadd.f32 %v5320_v54, %v3237_v12  ;;  %v3232_v34 = vadd.f32 %v3231_v30, %v7234_v25  ;;  %v3473_v41 = vpop.f32.mrf.mxu0 }
 0x215   : > { %v3722_v49 = vadd.f32 %v3721_v6, %v3691_v20  ;;  %v3760_v9 = vmul.f32 %v3691_v20, %v3691_v20  ;;  %v3790_v14 = vadd.f32 %v3789_v56, %v3759_v60  ;;  %3838 = vst [vmem:[%s7277_s7 + $0xb0] sm:$0xff] %v3691_v20  ;;  %v5243_v26 = vpop.f32.mrf.mxu1  ;;  %v7723_v56 = vld [vmem:[#allocation6_spill] sm:$0xff] }
 0x216   : > { %3841 = vst [vmem:[%s7277_s7 + $0xc8] sm:$0xff] %v3694_v59  ;;  %v3693_v53 = vadd.f32 %v7268_v29, %v3590_v15  ;;  %v3593_v7 = vadd.f32 %v3529_v57, %v7717_v8  ;;  %v3528_v46 = vadd.f32 %v3473_v41, %v3232_v34  ;;  %v5323_v23 = vpop.f32.mrf.mxu0  ;;  %v3247_v25 = vadd.f32 %v5243_v26, %v7240_v0 }
 0x217   : > { %v3791_v45 = vadd.f32 %v3790_v14, %v3760_v9  ;;  %v3723_v17 = vadd.f32 %v3722_v49, %v3692_v10  ;;  %v3241_v28 = vpop.f32.mrf.mxu1  ;;  %v3763_v2 = vmul.f32 %v3694_v59, %v3694_v59 }
 0x218   : > { %v3762_v27 = vmul.f32 %v3693_v53, %v3693_v53  ;;  %3840 = vst [vmem:[%s7277_s7 + $0xc0] sm:$0xff] %v3693_v53  ;;  %v3696_v48 = vadd.f32 %v7268_v29, %v3593_v7  ;;  %v3592_v13 = vadd.f32 %v3528_v46, %v7718_v31  ;;  %v3242_v38 = vadd.f32 %v3241_v28, %v7246_v42  ;;  %v3483_v19 = vpop.f32.mrf.mxu0 }
 0x219   : > { %v3724_v5 = vadd.f32 %v3723_v17, %v3693_v53  ;;  %v3792_v51 = vadd.f32 %v3791_v45, %v3761_v63  ;;  %v3531_v43 = vadd.f32 %v5323_v23, %v3247_v25  ;;  %v5246_v62 = vpop.f32.mrf.mxu1 }
 0x21a   : > { %3843 = vst [vmem:[%s7277_s7 + $0xd8] sm:$0xff] %v3696_v48  ;;  %v3695_v36 = vadd.f32 %v7268_v29, %v3592_v13  ;;  %v3530_v32 = vadd.f32 %v3483_v19, %v3242_v38  ;;  %v3257_v0 = vadd.f32 %v5246_v62, %v7252_v39  ;;  %v5326_v21 = vpop.f32.mrf.mxu0  ;;  %v3765_v58 = vmul.f32 %v3696_v48, %v3696_v48 }
 0x21b   : > { %v3793_v55 = vadd.f32 %v3792_v51, %v3762_v27  ;;  %v3725_v50 = vadd.f32 %v3724_v5, %v3694_v59  ;;  %v3595_v1 = vadd.f32 %v3531_v43, %v7719_v61  ;;  %v3251_v42 = vpop.f32.mrf.mxu1  ;;  %v7724_v27 = vld [vmem:[#allocation13_spill] sm:$0xff] }
 0x21c   : > { %v3764_v18 = vmul.f32 %v3695_v36, %v3695_v36  ;;  %3842 = vst [vmem:[%s7277_s7 + $0xd0] sm:$0xff] %v3695_v36  ;;  %v3594_v11 = vadd.f32 %v3530_v32, %v7720_v4  ;;  %v3533_v10 = vadd.f32 %v5326_v21, %v3257_v0  ;;  %v3252_v44 = vadd.f32 %v3251_v42, %v7721_v52  ;;  %v3493_v3 = vpop.f32.mrf.mxu0 }
 0x21d   : > { %v3726_v22 = vadd.f32 %v3725_v50, %v3695_v36  ;;  %v3794_v24 = vadd.f32 %v3793_v55, %v3763_v2  ;;  %v3698_v39 = vadd.f32 %v7268_v29, %v3595_v1  ;;  %vm3808_vm4 = vcmp.eq.s32.totalorder %v7724_v27, 1 }
 0x21e   : > { %v3697_v35 = vadd.f32 %v7268_v29, %v3594_v11  ;;  %v3597_v47 = vadd.f32 %v3533_v10, %v7722_v33  ;;  %v3532_v16 = vadd.f32 %v3493_v3, %v3252_v44  ;;  %vm3807_vm5 = vcmp.eq.s32.totalorder %v7724_v27, 0 }
 0x21f   : > { %v3795_v40 = vadd.f32 %v3794_v24, %v3764_v18  ;;  %3845 = vst [vmem:[%s7277_s7 + $0xe8] sm:$0xff] %v3698_v39  ;;  %v3727_v12 = vadd.f32 %v3726_v22, %v3696_v48  ;;  %v3767_v37 = vmul.f32 %v3698_v39, %v3698_v39 }
 0x220   : > { %v3766_v54 = vmul.f32 %v3697_v35, %v3697_v35  ;;  %3844 = vst [vmem:[%s7277_s7 + $0xe0] sm:$0xff] %v3697_v35  ;;  %v3700_v60 = vadd.f32 %v7268_v29, %v3597_v47  ;;  %v3596_v20 = vadd.f32 %v3532_v16, %v7723_v56 }
 0x221   : > { %v3728_v6 = vadd.f32 %v3727_v12, %v3697_v35  ;;  %v3796_v30 = vadd.f32 %v3795_v40, %v3765_v58 }
 0x222   : > { %3847 = vst [vmem:[%s7277_s7 + $0xf8] sm:$0xff] %v3700_v60  ;;  %v3699_v59 = vadd.f32 %v7268_v29, %v3596_v20  ;;  %v3769_v9 = vmul.f32 %v3700_v60, %v3700_v60 }
 0x223   : > { %v3797_v15 = vadd.f32 %v3796_v30, %v3766_v54  ;;  %v3729_v57 = vadd.f32 %v3728_v6, %v3698_v39 }
 0x224   : > { %v3768_v34 = vmul.f32 %v3699_v59, %v3699_v59  ;;  %3846 = vst [vmem:[%s7277_s7 + $0xf0] sm:$0xff] %v3699_v59 }
 0x225   : > { %v3730_v41 = vadd.f32 %v3729_v57, %v3699_v59  ;;  %v3798_v49 = vadd.f32 %v3797_v15, %v3767_v37 }
 0x227   : > { %v3731_v14 = vadd.f32 %v3730_v41, %v3700_v60  ;;  %v3799_v26 = vadd.f32 %v3798_v49, %v3768_v34 }
 0x229   : > { %v3732_v53 = vrot.slane %v3731_v14, 4  ;;  %v3800_v8 = vadd.f32 %v3799_v26, %v3769_v9 }
 0x22b   : > { %v3733_v7 = vadd.f32 %v3732_v53, %v3731_v14  ;;  %v3801_v46 = vrot.slane %v3800_v8, 4 }
 0x22d   : > { %v3734_v23 = vrot.slane %v3733_v7, 2  ;;  %v3802_v63 = vadd.f32 %v3801_v46, %v3800_v8 }
 0x22f   : > { %v3735_v45 = vadd.f32 %v3734_v23, %v3733_v7  ;;  %v3803_v17 = vrot.slane %v3802_v63, 2 }
 0x231   : > { %v3804_v29 = vadd.f32 %v3803_v17, %v3802_v63  ;;  %v3736_v25 = vrot.slane %v3735_v45, 1 }
 0x233   : > { %v3805_v28 = vrot.slane %v3804_v29, 1  ;;  %v3737_v31 = vadd.f32 %v3736_v25, %v3735_v45 }
 0x235   : > { %v3806_v48 = vadd.f32 %v3805_v28, %v3804_v29 }
 0x237   : > { %v3811_v13 = vsel %vm3808_vm4, %v3806_v48, 0.0 }
 0x238   : > { %v3814_v38 = vsel %vm3807_vm5, %v3737_v31, %v3811_v13 }
 0x239   : > { %3815 = vst [vmem:[%s262_s9] sm:$0xff] %v3814_v38 }
 0x23a PF: > { %s17_s21 = sadd.s32 1, %s5374_s21  }
 0x23b   : > { %p14_p4 = scmp.ge.s32.totalorder %s17_s21, 4  }
 0x23d   :  { %16 = sbr.rel (!%p14_p4) target bundleno = 1 (0x1), region = 93 }

</bundles_post_ra>
